<compile_context>
chip_gen: v6e
topology: v6e:2x2x1
jax: 0.10.0
libtpu: 0.0.40
codegen_flags: <defaults>
</compile_context>

<pallas_src>
import functools

import numpy as np
import jax
import jax.numpy as jnp
from jax.experimental import pallas as pl
from jax.experimental.pallas import tpu as pltpu


# ----------------------------------------------------------------------------
# host-side (numpy) polyphase machinery -- memoized, weights folded in
# ----------------------------------------------------------------------------
@functools.lru_cache(maxsize=None)
def _ct_selection_mats(K, s, p, n_in, axis):
    """0/1 matrices realizing the polyphase scatter of a transposed conv.

    For each (output phase r_out, tap t) of a 1-D ConvTranspose(K, stride=s,
    padding=p), input sample j lands at output position (j - (a - t))*s + r_out
    with a = (r_out + p)//s, using kernel tap k = (r_out + p)%s + t*s.

    Returns (taps, stack): taps[i] is the kernel index paired with stack[i];
    'row' matrices are (n_in*s, n_in) (left-multiply), 'col' matrices are
    (n_in, n_in*s) (right-multiply).
    """
    n_out = n_in * s
    taps, mats = [], []
    for r_out in range(s):
        r, a = (r_out + p) % s, (r_out + p) // s
        for t in range((K - 1 - r) // s + 1):
            d = a - t
            m = np.zeros((n_out, n_in), np.float32)
            for j in range(n_in):
                o = (j - d) * s + r_out
                if 0 <= o < n_out:
                    m[o, j] = 1.0
            taps.append(r + t * s)
            mats.append(m if axis == "row" else m.T)
    return tuple(taps), np.stack(mats).astype(np.float32)


def _fold_polyphase(w, scale_w, K, s, p, Hin, Win):
    """Fold kernel weights (and an extra channel scale) into the column mats.

    Returns:
      Rstack: (nr, Hin*s, Hin)  unweighted row-scatter matrices (left-multiply)
      Cfold : (nr, Win, Win*s)  weighted column matrices
              C'_i = scale_w * sum_j w[ky_i, kx_j] * C_j
    so that  conv_transpose(x) == sum_i Rstack[i] @ x @ Cfold[i].
    """
    row_taps, Rmats = _ct_selection_mats(K, s, p, Hin, "row")
    col_taps, Cmats = _ct_selection_mats(K, s, p, Win, "col")
    nr = len(row_taps)
    Cfold = np.zeros((nr, Win, Win * s), np.float32)
    for i, ky in enumerate(row_taps):
        for j, kx in enumerate(col_taps):
            Cfold[i] += float(w[ky, kx]) * Cmats[j]
        Cfold[i] *= float(scale_w)
    return Rmats.astype(np.float32), Cfold


def _lane_block_diag(Cfold, B):
    """(nr, Win, Wout) -> (B*Win, nr*B*Wout): block-diagonal over the
    lane-stacked batch, tap-major / image-minor column layout, so that a single
    matmul  X(H, B*Win) @ Cbig  yields all taps for all B images at once."""
    nr, Win, Wout = Cfold.shape
    out = np.zeros((B * Win, nr * B * Wout), np.float32)
    for i in range(nr):
        for b in range(B):
            out[b * Win:(b + 1) * Win,
                i * B * Wout + b * Wout: i * B * Wout + (b + 1) * Wout] = Cfold[i]
    return out


# ----------------------------------------------------------------------------
# fused kernel body (pure matmul + add; all weights pre-folded host-side)
# ----------------------------------------------------------------------------
def _make_kernel(w0, branch_cfgs, deconv_cfg, bias_const):
    dot_kw = dict(preferred_element_type=jnp.float32,
                  precision=jax.lax.Precision.HIGHEST)

    def tree_sum(parts):
        # balanced reduction: keeps the MXU-result -> add chain short (v5e MRF)
        while len(parts) > 1:
            nxt = [parts[i] + parts[i + 1] for i in range(0, len(parts) - 1, 2)]
            if len(parts) % 2:
                nxt.append(parts[-1])
            parts = nxt
        return parts[0]

    def scatter(x2d, r_ref, c_ref, nr, lane_w):
        # one wide lane-dense column matmul covering all taps & all images ...
        y = jnp.dot(x2d, c_ref[...], **dot_kw)          # (Hin, nr*lane_w)
        # ... then nr row-scatter dots (left-multiply applies per image column
        # block, so no batch block-diagonal is needed on this side).
        parts = [jnp.dot(r_ref[i], y[:, i * lane_w:(i + 1) * lane_w], **dot_kw)
                 for i in range(nr)]
        return tree_sum(parts)

    def kernel(*refs):
        i = 0
        x_ref = refs[i]; i += 1
        comb = w0 * x_ref[0]                            # (H, B*W)
        for nr, lane_w in branch_cfgs:
            xb_ref, r_ref, c_ref = refs[i], refs[i + 1], refs[i + 2]
            i += 3
            comb = comb + scatter(xb_ref[0], r_ref, c_ref, nr, lane_w)
        if deconv_cfg is not None:
            nrd, lane_wo = deconv_cfg
            rd_ref, cd_ref, bias_ref = refs[i], refs[i + 1], refs[i + 2]
            i += 3
            o_ref = refs[i]
            o_ref[0, :, :] = bias_ref[...] + scatter(comb, rd_ref, cd_ref,
                                                     nrd, lane_wo)
        else:
            o_ref = refs[i]
            o_ref[0, :, :] = comb + bias_const

    return kernel


# ----------------------------------------------------------------------------
# ConcatLayer
# ----------------------------------------------------------------------------
class ConcatLayer:
    """Pallas/TPU port of the PyTorch ConcatLayer (NCHW, single-channel maps)."""

    def __init__(self, list_k, k, scale=True, key=None):
        if key is None:
            key = jax.random.PRNGKey(0)
        self.list_k = [int(v) for v in list_k]
        self.k, self.scale = int(k), bool(scale)
        # hard errors at construction time (polyphase equal-phase requirements)
        for K in self.list_k:
            if K % 4 != 0:
                raise ValueError(f"ConcatLayer polyphase path needs list_k[i] % 4 == 0, got {K}")
        if self.scale and self.k % 2 != 0:
            raise ValueError(f"ConcatLayer polyphase path needs even k, got {self.k}")

        keys = jax.random.split(key, 2 * len(self.list_k) + 4)
        ki = iter(keys)
        self.up_w, self.up_b = [], []
        for K in self.list_k:
            bound = 1.0 / float(K)
            self.up_w.append(jax.random.uniform(next(ki), (K, K), jnp.float32, -bound, bound))
            self.up_b.append(jax.random.uniform(next(ki), (1,), jnp.float32, -bound, bound))
        C = len(self.list_k) + 1
        bound = 1.0 / (C ** 0.5)
        self.conv_w = jax.random.uniform(next(ki), (C,), jnp.float32, -bound, bound)
        self.conv_b = jax.random.uniform(next(ki), (1,), jnp.float32, -bound, bound)
        if self.scale:
            Kd = 2 * self.k
            bound = 1.0 / float(Kd)
            self.de_w = jax.random.uniform(next(ki), (Kd, Kd), jnp.float32, -bound, bound)
            self.de_b = jax.random.uniform(next(ki), (1,), jnp.float32, -bound, bound)

        # numpy copies for host-side folding (weights are fixed after init)
        self._np_up_w = [np.asarray(w) for w in self.up_w]
        self._np_up_b = [np.asarray(b) for b in self.up_b]
        self._np_conv_w = np.asarray(self.conv_w)
        self._np_conv_b = np.asarray(self.conv_b)
        if self.scale:
            self._np_de_w = np.asarray(self.de_w)
            self._np_de_b = np.asarray(self.de_b)

        self._plans = {}          # shape-signature -> jitted runner

    # -- public forward -------------------------------------------------------
    def __call__(self, x, list_x):
        N, _c, H, W = (int(d) for d in x.shape)
        sig = (N, H, W, tuple((int(xi.shape[2]), int(xi.shape[3])) for xi in list_x))
        plan = self._plans.get(sig)
        if plan is None:
            plan = self._build_plan(N, H, W,
                                    [(int(xi.shape[2]), int(xi.shape[3])) for xi in list_x])
            self._plans[sig] = plan
        return plan(x, list_x)

    # -- plan construction (memoized per shape) -------------------------------
    def _build_plan(self, N, H, W, br_shapes):
        if len(br_shapes) != len(self.list_k):
            raise ValueError("len(list_x) must equal len(list_k)")
        scale, k = self.scale, self.k
        Ho, Wo = (H * k, W * k) if scale else (H, W)

        # images per grid step: aim for a >=128-lane output tile; for larger
        # batches this still leaves >=2 parallel grid steps (v7x megacore).
        lane_target = max(1, -(-128 // Wo))
        B = max(1, min(N, lane_target))
        G = pl.cdiv(N, B)
        Npad = G * B
        BW, BWo = B * W, B * Wo

        in_specs = [pl.BlockSpec((1, H, BW), lambda g: (g, 0, 0))]
        branch_cfgs, branch_shapes, branch_consts = [], [], []
        for i, (Hin, Win) in enumerate(br_shapes):
            K = self.list_k[i]
            s, p = K // 2, K // 4
            if Hin * s != H or Win * s != W:
                raise ValueError(
                    f"branch {i}: upsampled size {(Hin * s, Win * s)} != x size {(H, W)}")
            Rstack, Cfold = _fold_polyphase(self._np_up_w[i],
                                            float(self._np_conv_w[i + 1]),
                                            K, s, p, Hin, Win)
            Cbig = _lane_block_diag(Cfold, B)
            branch_cfgs.append((Rstack.shape[0], BW))
            branch_shapes.append((Hin, Win))
            branch_consts.append((jnp.asarray(Rstack), jnp.asarray(Cbig)))
            in_specs += [
                pl.BlockSpec((1, Hin, B * Win), lambda g: (g, 0, 0)),
                pl.BlockSpec(Rstack.shape, lambda g: (0, 0, 0)),
                pl.BlockSpec(Cbig.shape, lambda g: (0, 0)),
            ]

        # all 1x1 + upconv biases collapse into one scalar over the H x W plane
        bias_total = float(self._np_conv_b[0]
                           + sum(float(self._np_conv_w[i + 1]) * float(self._np_up_b[i][0])
                                 for i in range(len(self.list_k))))

        deconv_cfg, deconv_consts = None, ()
        if scale:
            Kd, sd, pd = 2 * k, k, k // 2
            Rd, Cdfold = _fold_polyphase(self._np_de_w, 1.0, Kd, sd, pd, H, W)
            Cdbig = _lane_block_diag(Cdfold, B)
            nrd = Rd.shape[0]
            deconv_cfg = (nrd, BWo)
            # precomputed bias image = deconv(bias_total * ones) + de_b
            ones = np.ones((H, W), np.float32)
            bias_img = np.full((Ho, Wo), float(self._np_de_b[0]), np.float32)
            for i in range(nrd):
                bias_img += bias_total * (Rd[i] @ ones @ Cdfold[i])
            bias_lanes = np.tile(bias_img, (1, B))
            deconv_consts = (jnp.asarray(Rd), jnp.asarray(Cdbig), jnp.asarray(bias_lanes))
            in_specs += [
                pl.BlockSpec(Rd.shape, lambda g: (0, 0, 0)),
                pl.BlockSpec(Cdbig.shape, lambda g: (0, 0)),
                pl.BlockSpec(bias_lanes.shape, lambda g: (0, 0)),
            ]

        kernel = _make_kernel(float(self._np_conv_w[0]), branch_cfgs,
                              deconv_cfg, bias_total)

        pcall = pl.pallas_call(
            kernel,
            out_shape=jax.ShapeDtypeStruct((G, Ho, BWo), jnp.float32),
            grid=(G,),
            in_specs=in_specs,
            out_specs=pl.BlockSpec((1, Ho, BWo), lambda g: (g, 0, 0)),
            compiler_params=pltpu.CompilerParams(
                dimension_semantics=("parallel",)),
        )

        def to_lanes(a, h, w):
            # (N, h, w) -> (G, h, B*w): image b of group g at columns [b*w:(b+1)*w]
            if Npad != N:
                a = jnp.pad(a, ((0, Npad - N), (0, 0), (0, 0)))
            return a.reshape(G, B, h, w).transpose(0, 2, 1, 3).reshape(G, h, B * w)

        def run(x, list_x):
            args = [to_lanes(x[:, 0].astype(jnp.float32), H, W)]
            for (Hin, Win), (Rc, Cc), xi in zip(branch_shapes, branch_consts, list_x):
                args += [to_lanes(xi[:, 0].astype(jnp.float32), Hin, Win), Rc, Cc]
            args += list(deconv_consts)
            out_g = pcall(*args)                                   # (G, Ho, B*Wo)
            out = (out_g.reshape(G, Ho, B, Wo)
                        .transpose(0, 2, 1, 3)
                        .reshape(Npad, Ho, Wo)[:N])
            return out[:, None, :, :]                              # NCHW

        return jax.jit(run)


# ----------------------------------------------------------------------------
# pure-jnp reference (zero-insertion formulation, matches torch semantics)
# ----------------------------------------------------------------------------
def _reference_forward(layer, x, list_x):
    def conv_t(xm, w, b, s, p):
        n, h, wd = xm.shape
        kk = w.shape[0]
        up = jnp.zeros((n, (h - 1) * s + 1, (wd - 1) * s + 1), jnp.float32)
        up = up.at[:, ::s, ::s].set(xm)
        pad = kk - 1 - p
        xp = jnp.pad(up, ((0, 0), (pad, pad), (pad, pad)))
        wr = w[::-1, ::-1]
        ho, wo = xp.shape[1] - kk + 1, xp.shape[2] - kk + 1
        out = jnp.zeros((n, ho, wo), jnp.float32)
        for ky in range(kk):
            for kx in range(kk):
                out = out + wr[ky, kx] * xp[:, ky:ky + ho, kx:kx + wo]
        return out + b[0]

    elem = [x[:, 0].astype(jnp.float32)]
    for i, xi in enumerate(list_x):
        elem.append(conv_t(xi[:, 0].astype(jnp.float32), layer.up_w[i], layer.up_b[i],
                           layer.list_k[i] // 2, layer.list_k[i] // 4))
    comb = layer.conv_b[0]
    for c, e in enumerate(elem):
        comb = comb + layer.conv_w[c] * e
    if layer.scale:
        comb = conv_t(comb, layer.de_w, layer.de_b, layer.k, layer.k // 2)
    return comb[:, None, :, :]


if __name__ == "__main__":
    key = jax.random.PRNGKey(0)
    kx, k0, k1, kparam = jax.random.split(key, 4)

    list_k = [4, 8]      # upsample factors 2 and 4
    k = 2                # final deconv upsample factor
    N, H, W = 2, 16, 16

    layer = ConcatLayer(list_k, k, scale=True, key=kparam)

    x = jax.random.normal(kx, (N, 1, H, W), jnp.float32)
    list_x = [
        jax.random.normal(k0, (N, 1, H // (list_k[0] // 2), W // (list_k[0] // 2)), jnp.float32),
        jax.random.normal(k1, (N, 1, H // (list_k[1] // 2), W // (list_k[1] // 2)), jnp.float32),
    ]

    out = jax.block_until_ready(layer(x, list_x))
    assert out.shape == (N, 1, H * k, W * k), out.shape
    assert bool(jnp.all(jnp.isfinite(out)))

    ref = jax.block_until_ready(_reference_forward(layer, x, list_x))
    max_err = float(jnp.max(jnp.abs(out - ref)))
    assert max_err < 1e-3, f"mismatch vs reference: {max_err}"

    print("KERNEL_OK")
</pallas_src>

<mosaic_0001>
module attributes {stable_mosaic.version = 11 : i64} {
  func.func @kernel(%arg0: i32, %arg1: memref<1x16x32xf32, #tpu.memory_space<vmem>>, %arg2: memref<1x8x16xf32, #tpu.memory_space<vmem>>, %arg3: memref<4x16x8xf32, #tpu.memory_space<vmem>>, %arg4: memref<16x128xf32, #tpu.memory_space<vmem>>, %arg5: memref<1x4x8xf32, #tpu.memory_space<vmem>>, %arg6: memref<8x16x4xf32, #tpu.memory_space<vmem>>, %arg7: memref<8x256xf32, #tpu.memory_space<vmem>>, %arg8: memref<4x32x16xf32, #tpu.memory_space<vmem>>, %arg9: memref<32x256xf32, #tpu.memory_space<vmem>>, %arg10: memref<32x64xf32, #tpu.memory_space<vmem>>, %arg11: memref<1x32x64xf32, #tpu.memory_space<vmem>>) attributes {dimension_semantics = [#tpu.dimension_semantics<parallel>], iteration_bounds = array<i64: 1>, scalar_prefetch = 0 : i64, scratch_operands = 0 : i64, tpu.core_type = #tpu.core_type<tc>, window_params = [{transform_indices = @transform_0, window_bounds = array<i64: 1, 16, 32>}, {transform_indices = @transform_1, window_bounds = array<i64: 1, 8, 16>}, {pipeline_mode = #tpu.pipeline_mode<synchronous>, transform_indices = @transform_2, window_bounds = array<i64: 4, 16, 8>}, {pipeline_mode = #tpu.pipeline_mode<synchronous>, transform_indices = @transform_3, window_bounds = array<i64: 16, 128>}, {transform_indices = @transform_4, window_bounds = array<i64: 1, 4, 8>}, {pipeline_mode = #tpu.pipeline_mode<synchronous>, transform_indices = @transform_5, window_bounds = array<i64: 8, 16, 4>}, {pipeline_mode = #tpu.pipeline_mode<synchronous>, transform_indices = @transform_6, window_bounds = array<i64: 8, 256>}, {pipeline_mode = #tpu.pipeline_mode<synchronous>, transform_indices = @transform_7, window_bounds = array<i64: 4, 32, 16>}, {pipeline_mode = #tpu.pipeline_mode<synchronous>, transform_indices = @transform_8, window_bounds = array<i64: 32, 256>}, {pipeline_mode = #tpu.pipeline_mode<synchronous>, transform_indices = @transform_9, window_bounds = array<i64: 32, 64>}, {transform_indices = @transform_10, window_bounds = array<i64: 1, 32, 64>}]} {
    %c0 = arith.constant 0 : index
    %c0_0 = arith.constant 0 : index
    %c0_1 = arith.constant 0 : index
    %0 = vector.load %arg1[%c0, %c0_0, %c0_1] : memref<1x16x32xf32, #tpu.memory_space<vmem>>, vector<1x16x32xf32>
    %1 = vector.shape_cast %0 : vector<1x16x32xf32> to vector<16x32xf32>
    %cst = arith.constant 0.155959859 : f32
    %2 = vector.broadcast %cst : f32 to vector<16x32xf32>
    %3 = arith.mulf %2, %1 : vector<16x32xf32>
    %c0_2 = arith.constant 0 : index
    %c0_3 = arith.constant 0 : index
    %c0_4 = arith.constant 0 : index
    %4 = vector.load %arg2[%c0_2, %c0_3, %c0_4] : memref<1x8x16xf32, #tpu.memory_space<vmem>>, vector<1x8x16xf32>
    %5 = vector.shape_cast %4 : vector<1x8x16xf32> to vector<8x16xf32>
    %c0_5 = arith.constant 0 : index
    %c0_6 = arith.constant 0 : index
    %6 = vector.load %arg4[%c0_5, %c0_6] : memref<16x128xf32, #tpu.memory_space<vmem>>, vector<16x128xf32>
    %cst_7 = arith.constant dense<0.000000e+00> : vector<8x128xf32>
    %7 = tpu.matmul %5, %6, %cst_7 {dimension_numbers = #tpu.dot_dimension_numbers<[1], [0], [0], [1], [0, 0, 1, 1], [], []>, precision = #tpu.contract_precision<fp32>} : vector<8x16xf32>, vector<16x128xf32>, vector<8x128xf32> -> vector<8x128xf32>
    %c0_8 = arith.constant 0 : index
    %c0_9 = arith.constant 0 : index
    %c0_10 = arith.constant 0 : index
    %8 = vector.load %arg3[%c0_8, %c0_9, %c0_10] : memref<4x16x8xf32, #tpu.memory_space<vmem>>, vector<1x16x8xf32>
    %9 = vector.shape_cast %8 : vector<1x16x8xf32> to vector<16x8xf32>
    %10 = vector.extract_strided_slice %7 {offsets = [0, 0], sizes = [8, 32], strides = [1, 1]} : vector<8x128xf32> to vector<8x32xf32>
    %cst_11 = arith.constant dense<0.000000e+00> : vector<16x32xf32>
    %11 = tpu.matmul %9, %10, %cst_11 {dimension_numbers = #tpu.dot_dimension_numbers<[1], [0], [0], [1], [0, 0, 1, 1], [], []>, precision = #tpu.contract_precision<fp32>} : vector<16x8xf32>, vector<8x32xf32>, vector<16x32xf32> -> vector<16x32xf32>
    %c1 = arith.constant 1 : index
    %c0_12 = arith.constant 0 : index
    %c0_13 = arith.constant 0 : index
    %12 = vector.load %arg3[%c1, %c0_12, %c0_13] : memref<4x16x8xf32, #tpu.memory_space<vmem>>, vector<1x16x8xf32>
    %13 = vector.shape_cast %12 : vector<1x16x8xf32> to vector<16x8xf32>
    %14 = vector.extract_strided_slice %7 {offsets = [0, 32], sizes = [8, 32], strides = [1, 1]} : vector<8x128xf32> to vector<8x32xf32>
    %cst_14 = arith.constant dense<0.000000e+00> : vector<16x32xf32>
    %15 = tpu.matmul %13, %14, %cst_14 {dimension_numbers = #tpu.dot_dimension_numbers<[1], [0], [0], [1], [0, 0, 1, 1], [], []>, precision = #tpu.contract_precision<fp32>} : vector<16x8xf32>, vector<8x32xf32>, vector<16x32xf32> -> vector<16x32xf32>
    %c2 = arith.constant 2 : index
    %c0_15 = arith.constant 0 : index
    %c0_16 = arith.constant 0 : index
    %16 = vector.load %arg3[%c2, %c0_15, %c0_16] : memref<4x16x8xf32, #tpu.memory_space<vmem>>, vector<1x16x8xf32>
    %17 = vector.shape_cast %16 : vector<1x16x8xf32> to vector<16x8xf32>
    %18 = vector.extract_strided_slice %7 {offsets = [0, 64], sizes = [8, 32], strides = [1, 1]} : vector<8x128xf32> to vector<8x32xf32>
    %cst_17 = arith.constant dense<0.000000e+00> : vector<16x32xf32>
    %19 = tpu.matmul %17, %18, %cst_17 {dimension_numbers = #tpu.dot_dimension_numbers<[1], [0], [0], [1], [0, 0, 1, 1], [], []>, precision = #tpu.contract_precision<fp32>} : vector<16x8xf32>, vector<8x32xf32>, vector<16x32xf32> -> vector<16x32xf32>
    %c3 = arith.constant 3 : index
    %c0_18 = arith.constant 0 : index
    %c0_19 = arith.constant 0 : index
    %20 = vector.load %arg3[%c3, %c0_18, %c0_19] : memref<4x16x8xf32, #tpu.memory_space<vmem>>, vector<1x16x8xf32>
    %21 = vector.shape_cast %20 : vector<1x16x8xf32> to vector<16x8xf32>
    %22 = vector.extract_strided_slice %7 {offsets = [0, 96], sizes = [8, 32], strides = [1, 1]} : vector<8x128xf32> to vector<8x32xf32>
    %cst_20 = arith.constant dense<0.000000e+00> : vector<16x32xf32>
    %23 = tpu.matmul %21, %22, %cst_20 {dimension_numbers = #tpu.dot_dimension_numbers<[1], [0], [0], [1], [0, 0, 1, 1], [], []>, precision = #tpu.contract_precision<fp32>} : vector<16x8xf32>, vector<8x32xf32>, vector<16x32xf32> -> vector<16x32xf32>
    %24 = arith.addf %11, %15 : vector<16x32xf32>
    %25 = arith.addf %19, %23 : vector<16x32xf32>
    %26 = arith.addf %24, %25 : vector<16x32xf32>
    %27 = arith.addf %3, %26 : vector<16x32xf32>
    %c0_21 = arith.constant 0 : index
    %c0_22 = arith.constant 0 : index
    %c0_23 = arith.constant 0 : index
    %28 = vector.load %arg5[%c0_21, %c0_22, %c0_23] : memref<1x4x8xf32, #tpu.memory_space<vmem>>, vector<1x4x8xf32>
    %29 = vector.shape_cast %28 : vector<1x4x8xf32> to vector<4x8xf32>
    %c0_24 = arith.constant 0 : index
    %c0_25 = arith.constant 0 : index
    %30 = vector.load %arg7[%c0_24, %c0_25] : memref<8x256xf32, #tpu.memory_space<vmem>>, vector<8x256xf32>
    %cst_26 = arith.constant dense<0.000000e+00> : vector<4x256xf32>
    %31 = tpu.matmul %29, %30, %cst_26 {dimension_numbers = #tpu.dot_dimension_numbers<[1], [0], [0], [1], [0, 0, 1, 1], [], []>, precision = #tpu.contract_precision<fp32>} : vector<4x8xf32>, vector<8x256xf32>, vector<4x256xf32> -> vector<4x256xf32>
    %c0_27 = arith.constant 0 : index
    %c0_28 = arith.constant 0 : index
    %c0_29 = arith.constant 0 : index
    %32 = vector.load %arg6[%c0_27, %c0_28, %c0_29] : memref<8x16x4xf32, #tpu.memory_space<vmem>>, vector<1x16x4xf32>
    %33 = vector.shape_cast %32 : vector<1x16x4xf32> to vector<16x4xf32>
    %34 = vector.extract_strided_slice %31 {offsets = [0, 0], sizes = [4, 32], strides = [1, 1]} : vector<4x256xf32> to vector<4x32xf32>
    %cst_30 = arith.constant dense<0.000000e+00> : vector<16x32xf32>
    %35 = tpu.matmul %33, %34, %cst_30 {dimension_numbers = #tpu.dot_dimension_numbers<[1], [0], [0], [1], [0, 0, 1, 1], [], []>, precision = #tpu.contract_precision<fp32>} : vector<16x4xf32>, vector<4x32xf32>, vector<16x32xf32> -> vector<16x32xf32>
    %c1_31 = arith.constant 1 : index
    %c0_32 = arith.constant 0 : index
    %c0_33 = arith.constant 0 : index
    %36 = vector.load %arg6[%c1_31, %c0_32, %c0_33] : memref<8x16x4xf32, #tpu.memory_space<vmem>>, vector<1x16x4xf32>
    %37 = vector.shape_cast %36 : vector<1x16x4xf32> to vector<16x4xf32>
    %38 = vector.extract_strided_slice %31 {offsets = [0, 32], sizes = [4, 32], strides = [1, 1]} : vector<4x256xf32> to vector<4x32xf32>
    %cst_34 = arith.constant dense<0.000000e+00> : vector<16x32xf32>
    %39 = tpu.matmul %37, %38, %cst_34 {dimension_numbers = #tpu.dot_dimension_numbers<[1], [0], [0], [1], [0, 0, 1, 1], [], []>, precision = #tpu.contract_precision<fp32>} : vector<16x4xf32>, vector<4x32xf32>, vector<16x32xf32> -> vector<16x32xf32>
    %c2_35 = arith.constant 2 : index
    %c0_36 = arith.constant 0 : index
    %c0_37 = arith.constant 0 : index
    %40 = vector.load %arg6[%c2_35, %c0_36, %c0_37] : memref<8x16x4xf32, #tpu.memory_space<vmem>>, vector<1x16x4xf32>
    %41 = vector.shape_cast %40 : vector<1x16x4xf32> to vector<16x4xf32>
    %42 = vector.extract_strided_slice %31 {offsets = [0, 64], sizes = [4, 32], strides = [1, 1]} : vector<4x256xf32> to vector<4x32xf32>
    %cst_38 = arith.constant dense<0.000000e+00> : vector<16x32xf32>
    %43 = tpu.matmul %41, %42, %cst_38 {dimension_numbers = #tpu.dot_dimension_numbers<[1], [0], [0], [1], [0, 0, 1, 1], [], []>, precision = #tpu.contract_precision<fp32>} : vector<16x4xf32>, vector<4x32xf32>, vector<16x32xf32> -> vector<16x32xf32>
    %c3_39 = arith.constant 3 : index
    %c0_40 = arith.constant 0 : index
    %c0_41 = arith.constant 0 : index
    %44 = vector.load %arg6[%c3_39, %c0_40, %c0_41] : memref<8x16x4xf32, #tpu.memory_space<vmem>>, vector<1x16x4xf32>
    %45 = vector.shape_cast %44 : vector<1x16x4xf32> to vector<16x4xf32>
    %46 = vector.extract_strided_slice %31 {offsets = [0, 96], sizes = [4, 32], strides = [1, 1]} : vector<4x256xf32> to vector<4x32xf32>
    %cst_42 = arith.constant dense<0.000000e+00> : vector<16x32xf32>
    %47 = tpu.matmul %45, %46, %cst_42 {dimension_numbers = #tpu.dot_dimension_numbers<[1], [0], [0], [1], [0, 0, 1, 1], [], []>, precision = #tpu.contract_precision<fp32>} : vector<16x4xf32>, vector<4x32xf32>, vector<16x32xf32> -> vector<16x32xf32>
    %c4 = arith.constant 4 : index
    %c0_43 = arith.constant 0 : index
    %c0_44 = arith.constant 0 : index
    %48 = vector.load %arg6[%c4, %c0_43, %c0_44] : memref<8x16x4xf32, #tpu.memory_space<vmem>>, vector<1x16x4xf32>
    %49 = vector.shape_cast %48 : vector<1x16x4xf32> to vector<16x4xf32>
    %50 = vector.extract_strided_slice %31 {offsets = [0, 128], sizes = [4, 32], strides = [1, 1]} : vector<4x256xf32> to vector<4x32xf32>
    %cst_45 = arith.constant dense<0.000000e+00> : vector<16x32xf32>
    %51 = tpu.matmul %49, %50, %cst_45 {dimension_numbers = #tpu.dot_dimension_numbers<[1], [0], [0], [1], [0, 0, 1, 1], [], []>, precision = #tpu.contract_precision<fp32>} : vector<16x4xf32>, vector<4x32xf32>, vector<16x32xf32> -> vector<16x32xf32>
    %c5 = arith.constant 5 : index
    %c0_46 = arith.constant 0 : index
    %c0_47 = arith.constant 0 : index
    %52 = vector.load %arg6[%c5, %c0_46, %c0_47] : memref<8x16x4xf32, #tpu.memory_space<vmem>>, vector<1x16x4xf32>
    %53 = vector.shape_cast %52 : vector<1x16x4xf32> to vector<16x4xf32>
    %54 = vector.extract_strided_slice %31 {offsets = [0, 160], sizes = [4, 32], strides = [1, 1]} : vector<4x256xf32> to vector<4x32xf32>
    %cst_48 = arith.constant dense<0.000000e+00> : vector<16x32xf32>
    %55 = tpu.matmul %53, %54, %cst_48 {dimension_numbers = #tpu.dot_dimension_numbers<[1], [0], [0], [1], [0, 0, 1, 1], [], []>, precision = #tpu.contract_precision<fp32>} : vector<16x4xf32>, vector<4x32xf32>, vector<16x32xf32> -> vector<16x32xf32>
    %c6 = arith.constant 6 : index
    %c0_49 = arith.constant 0 : index
    %c0_50 = arith.constant 0 : index
    %56 = vector.load %arg6[%c6, %c0_49, %c0_50] : memref<8x16x4xf32, #tpu.memory_space<vmem>>, vector<1x16x4xf32>
    %57 = vector.shape_cast %56 : vector<1x16x4xf32> to vector<16x4xf32>
    %58 = vector.extract_strided_slice %31 {offsets = [0, 192], sizes = [4, 32], strides = [1, 1]} : vector<4x256xf32> to vector<4x32xf32>
    %cst_51 = arith.constant dense<0.000000e+00> : vector<16x32xf32>
    %59 = tpu.matmul %57, %58, %cst_51 {dimension_numbers = #tpu.dot_dimension_numbers<[1], [0], [0], [1], [0, 0, 1, 1], [], []>, precision = #tpu.contract_precision<fp32>} : vector<16x4xf32>, vector<4x32xf32>, vector<16x32xf32> -> vector<16x32xf32>
    %c7 = arith.constant 7 : index
    %c0_52 = arith.constant 0 : index
    %c0_53 = arith.constant 0 : index
    %60 = vector.load %arg6[%c7, %c0_52, %c0_53] : memref<8x16x4xf32, #tpu.memory_space<vmem>>, vector<1x16x4xf32>
    %61 = vector.shape_cast %60 : vector<1x16x4xf32> to vector<16x4xf32>
    %62 = vector.extract_strided_slice %31 {offsets = [0, 224], sizes = [4, 32], strides = [1, 1]} : vector<4x256xf32> to vector<4x32xf32>
    %cst_54 = arith.constant dense<0.000000e+00> : vector<16x32xf32>
    %63 = tpu.matmul %61, %62, %cst_54 {dimension_numbers = #tpu.dot_dimension_numbers<[1], [0], [0], [1], [0, 0, 1, 1], [], []>, precision = #tpu.contract_precision<fp32>} : vector<16x4xf32>, vector<4x32xf32>, vector<16x32xf32> -> vector<16x32xf32>
    %64 = arith.addf %35, %39 : vector<16x32xf32>
    %65 = arith.addf %43, %47 : vector<16x32xf32>
    %66 = arith.addf %51, %55 : vector<16x32xf32>
    %67 = arith.addf %59, %63 : vector<16x32xf32>
    %68 = arith.addf %64, %65 : vector<16x32xf32>
    %69 = arith.addf %66, %67 : vector<16x32xf32>
    %70 = arith.addf %68, %69 : vector<16x32xf32>
    %71 = arith.addf %27, %70 : vector<16x32xf32>
    %c0_55 = arith.constant 0 : index
    %c0_56 = arith.constant 0 : index
    %72 = vector.load %arg10[%c0_55, %c0_56] : memref<32x64xf32, #tpu.memory_space<vmem>>, vector<32x64xf32>
    %c0_57 = arith.constant 0 : index
    %c0_58 = arith.constant 0 : index
    %73 = vector.load %arg9[%c0_57, %c0_58] : memref<32x256xf32, #tpu.memory_space<vmem>>, vector<32x256xf32>
    %cst_59 = arith.constant dense<0.000000e+00> : vector<16x256xf32>
    %74 = tpu.matmul %71, %73, %cst_59 {dimension_numbers = #tpu.dot_dimension_numbers<[1], [0], [0], [1], [0, 0, 1, 1], [], []>, precision = #tpu.contract_precision<fp32>} : vector<16x32xf32>, vector<32x256xf32>, vector<16x256xf32> -> vector<16x256xf32>
    %c0_60 = arith.constant 0 : index
    %c0_61 = arith.constant 0 : index
    %c0_62 = arith.constant 0 : index
    %75 = vector.load %arg8[%c0_60, %c0_61, %c0_62] : memref<4x32x16xf32, #tpu.memory_space<vmem>>, vector<1x32x16xf32>
    %76 = vector.shape_cast %75 : vector<1x32x16xf32> to vector<32x16xf32>
    %77 = vector.extract_strided_slice %74 {offsets = [0, 0], sizes = [16, 64], strides = [1, 1]} : vector<16x256xf32> to vector<16x64xf32>
    %cst_63 = arith.constant dense<0.000000e+00> : vector<32x64xf32>
    %78 = tpu.matmul %76, %77, %cst_63 {dimension_numbers = #tpu.dot_dimension_numbers<[1], [0], [0], [1], [0, 0, 1, 1], [], []>, precision = #tpu.contract_precision<fp32>} : vector<32x16xf32>, vector<16x64xf32>, vector<32x64xf32> -> vector<32x64xf32>
    %c1_64 = arith.constant 1 : index
    %c0_65 = arith.constant 0 : index
    %c0_66 = arith.constant 0 : index
    %79 = vector.load %arg8[%c1_64, %c0_65, %c0_66] : memref<4x32x16xf32, #tpu.memory_space<vmem>>, vector<1x32x16xf32>
    %80 = vector.shape_cast %79 : vector<1x32x16xf32> to vector<32x16xf32>
    %81 = vector.extract_strided_slice %74 {offsets = [0, 64], sizes = [16, 64], strides = [1, 1]} : vector<16x256xf32> to vector<16x64xf32>
    %cst_67 = arith.constant dense<0.000000e+00> : vector<32x64xf32>
    %82 = tpu.matmul %80, %81, %cst_67 {dimension_numbers = #tpu.dot_dimension_numbers<[1], [0], [0], [1], [0, 0, 1, 1], [], []>, precision = #tpu.contract_precision<fp32>} : vector<32x16xf32>, vector<16x64xf32>, vector<32x64xf32> -> vector<32x64xf32>
    %c2_68 = arith.constant 2 : index
    %c0_69 = arith.constant 0 : index
    %c0_70 = arith.constant 0 : index
    %83 = vector.load %arg8[%c2_68, %c0_69, %c0_70] : memref<4x32x16xf32, #tpu.memory_space<vmem>>, vector<1x32x16xf32>
    %84 = vector.shape_cast %83 : vector<1x32x16xf32> to vector<32x16xf32>
    %85 = vector.extract_strided_slice %74 {offsets = [0, 128], sizes = [16, 64], strides = [1, 1]} : vector<16x256xf32> to vector<16x64xf32>
    %cst_71 = arith.constant dense<0.000000e+00> : vector<32x64xf32>
    %86 = tpu.matmul %84, %85, %cst_71 {dimension_numbers = #tpu.dot_dimension_numbers<[1], [0], [0], [1], [0, 0, 1, 1], [], []>, precision = #tpu.contract_precision<fp32>} : vector<32x16xf32>, vector<16x64xf32>, vector<32x64xf32> -> vector<32x64xf32>
    %c3_72 = arith.constant 3 : index
    %c0_73 = arith.constant 0 : index
    %c0_74 = arith.constant 0 : index
    %87 = vector.load %arg8[%c3_72, %c0_73, %c0_74] : memref<4x32x16xf32, #tpu.memory_space<vmem>>, vector<1x32x16xf32>
    %88 = vector.shape_cast %87 : vector<1x32x16xf32> to vector<32x16xf32>
    %89 = vector.extract_strided_slice %74 {offsets = [0, 192], sizes = [16, 64], strides = [1, 1]} : vector<16x256xf32> to vector<16x64xf32>
    %cst_75 = arith.constant dense<0.000000e+00> : vector<32x64xf32>
    %90 = tpu.matmul %88, %89, %cst_75 {dimension_numbers = #tpu.dot_dimension_numbers<[1], [0], [0], [1], [0, 0, 1, 1], [], []>, precision = #tpu.contract_precision<fp32>} : vector<32x16xf32>, vector<16x64xf32>, vector<32x64xf32> -> vector<32x64xf32>
    %91 = arith.addf %78, %82 : vector<32x64xf32>
    %92 = arith.addf %86, %90 : vector<32x64xf32>
    %93 = arith.addf %91, %92 : vector<32x64xf32>
    %94 = arith.addf %72, %93 : vector<32x64xf32>
    %c0_76 = arith.constant 0 : index
    %c0_77 = arith.constant 0 : index
    %c0_78 = arith.constant 0 : index
    %95 = vector.load %arg11[%c0_76, %c0_77, %c0_78] : memref<1x32x64xf32, #tpu.memory_space<vmem>>, vector<1x32x64xf32>
    %96 = vector.shape_cast %95 : vector<1x32x64xf32> to vector<32x64xf32>
    %97 = vector.shape_cast %94 : vector<32x64xf32> to vector<1x32x64xf32>
    tpu.vector_store %arg11[%c0_76, %c0_77, %c0_78], %97 {strides = array<i32>} : memref<1x32x64xf32, #tpu.memory_space<vmem>>, vector<1x32x64xf32>,
    return
  }
  func.func @transform_0(%arg0: i32) -> (i32, i32, i32) {
    %c0_i32 = arith.constant 0 : i32
    %c0_i32_0 = arith.constant 0 : i32
    %c0_i32_1 = arith.constant 0 : i32
    return %arg0, %c0_i32, %c0_i32_0 : i32, i32, i32
  }
  func.func @transform_1(%arg0: i32) -> (i32, i32, i32) {
    %c0_i32 = arith.constant 0 : i32
    %c0_i32_0 = arith.constant 0 : i32
    %c0_i32_1 = arith.constant 0 : i32
    return %arg0, %c0_i32, %c0_i32_0 : i32, i32, i32
  }
  func.func @transform_2(%arg0: i32) -> (i32, i32, i32) {
    %c0_i32 = arith.constant 0 : i32
    %c0_i32_0 = arith.constant 0 : i32
    %c0_i32_1 = arith.constant 0 : i32
    %c0_i32_2 = arith.constant 0 : i32
    return %c0_i32, %c0_i32_0, %c0_i32_1 : i32, i32, i32
  }
  func.func @transform_3(%arg0: i32) -> (i32, i32) {
    %c0_i32 = arith.constant 0 : i32
    %c0_i32_0 = arith.constant 0 : i32
    %c0_i32_1 = arith.constant 0 : i32
    return %c0_i32, %c0_i32_0 : i32, i32
  }
  func.func @transform_4(%arg0: i32) -> (i32, i32, i32) {
    %c0_i32 = arith.constant 0 : i32
    %c0_i32_0 = arith.constant 0 : i32
    %c0_i32_1 = arith.constant 0 : i32
    return %arg0, %c0_i32, %c0_i32_0 : i32, i32, i32
  }
  func.func @transform_5(%arg0: i32) -> (i32, i32, i32) {
    %c0_i32 = arith.constant 0 : i32
    %c0_i32_0 = arith.constant 0 : i32
    %c0_i32_1 = arith.constant 0 : i32
    %c0_i32_2 = arith.constant 0 : i32
    return %c0_i32, %c0_i32_0, %c0_i32_1 : i32, i32, i32
  }
  func.func @transform_6(%arg0: i32) -> (i32, i32) {
    %c0_i32 = arith.constant 0 : i32
    %c0_i32_0 = arith.constant 0 : i32
    %c0_i32_1 = arith.constant 0 : i32
    return %c0_i32, %c0_i32_0 : i32, i32
  }
  func.func @transform_7(%arg0: i32) -> (i32, i32, i32) {
    %c0_i32 = arith.constant 0 : i32
    %c0_i32_0 = arith.constant 0 : i32
    %c0_i32_1 = arith.constant 0 : i32
    %c0_i32_2 = arith.constant 0 : i32
    return %c0_i32, %c0_i32_0, %c0_i32_1 : i32, i32, i32
  }
  func.func @transform_8(%arg0: i32) -> (i32, i32) {
    %c0_i32 = arith.constant 0 : i32
    %c0_i32_0 = arith.constant 0 : i32
    %c0_i32_1 = arith.constant 0 : i32
    return %c0_i32, %c0_i32_0 : i32, i32
  }
  func.func @transform_9(%arg0: i32) -> (i32, i32) {
    %c0_i32 = arith.constant 0 : i32
    %c0_i32_0 = arith.constant 0 : i32
    %c0_i32_1 = arith.constant 0 : i32
    return %c0_i32, %c0_i32_0 : i32, i32
  }
  func.func @transform_10(%arg0: i32) -> (i32, i32, i32) {
    %c0_i32 = arith.constant 0 : i32
    %c0_i32_0 = arith.constant 0 : i32
    %c0_i32_1 = arith.constant 0 : i32
    return %arg0, %c0_i32, %c0_i32_0 : i32, i32, i32
  }
}

</mosaic_0001>

<bundles_post_ra>
// kernel: run.1
= control target key start
LH: loop header
LB: loop body
LE: loop exit
PB: predicated region body
PF: predicated region fallthrough
CT: control target
= control target key end

     0   :  { %15 = vsyncpa [#allocation3], 0  ;;  %s12737_s0 = inlined_call_operand.vmem [shape: f32[1,16,32], index: 0, kind: input, shape index: {}]   ;;  %s12738_s1 = inlined_call_operand.vmem [shape: f32[1,8,16], index: 1, kind: input, shape index: {}]   ;;  %s12739_s2 = inlined_call_operand.hbm [shape: f32[4,16,8], index: 2, kind: input, shape index: {}]   ;;  %s12740_s3 = inlined_call_operand.hbm [shape: f32[16,128], index: 3, kind: input, shape index: {}]   ;;  %s12741_s4 = inlined_call_operand.vmem [shape: f32[1,4,8], index: 4, kind: input, shape index: {}]   ;;  %s12742_s5 = inlined_call_operand.hbm [shape: f32[8,16,4], index: 5, kind: input, shape index: {}]   ;;  %s12743_s6 = inlined_call_operand.vmem [shape: f32[8,256], index: 6, kind: input, shape index: {}]   ;;  %s12744_s7 = inlined_call_operand.vmem [shape: f32[4,32,16], index: 7, kind: input, shape index: {}]   ;;  %s12745_s8 = inlined_call_operand.vmem [shape: f32[32,256], index: 8, kind: input, shape index: {}]   ;;  %s12746_s9 = inlined_call_operand.hbm [shape: f32[32,64], index: 9, kind: input, shape index: {}]   ;;  %s12747_s10 = inlined_call_operand.vmem [shape: f32[1,32,64], index: 10, kind: output, shape index: {}]  }
   0x1   :  { %16 = vsyncpa [#allocation5], 0 }
   0x2   :  { %17 = vsyncpa [#allocation8], 0  ;;  %s11255_s13 = smov [#allocation4]   ;;  %s11256_s15 = smov [#allocation2]  }
   0x3   :  { %s39_s14 = sshll.u32 %s11255_s13, 4  ;;  %s27_s16 = sshll.u32 %s11256_s15, 4  ;;  %s40_s14 = int_to_ptr.vmem [resolvable:$true] %s39_s14  ;;  %s28_s16 = int_to_ptr.vmem [resolvable:$true] %s27_s16 }
   0x4   :  { %s11177_s17 = scalar_lea.vmem %s40_s14, 256  ;;  %p11182_p1 = scmp.lt.s32.totalorder %s40_s14, %s40_s14 }
   0x5   :  { %p11178_p0 = scmp.ne.s32.totalorder %s40_s14, %s11177_s17  ;;  %p11183_p2 = scmp.lt.s32.totalorder %s11177_s17, %s11177_s17 }
   0x7   :  { %p11184_p3 = por %p11183_p2, %p11182_p1 }
   0x9   :  { %p11185_p4 = pnand %p11184_p3, %p11178_p0 }
   0xb   :  { %11188 = shalt.err (!%p11185_p4)
}
   0xc   :  { %s11257_s18 = smov 128   ;;  %s11258_s19 = smov 8  }
   0xd   :  { %45 = dma.hbm_to_vmem [thread:$0]  %s12740_s3, 256, %s40_s14, [#allocation5], %s11257_s18, %s11257_s18, %s11258_s19  }
   0xe   :  { %s11197_s22 = scalar_lea.vmem %s28_s16, 1024  ;;  %p11202_p6 = scmp.lt.s32.totalorder %s28_s16, %s28_s16 }
   0xf   :  { %p11198_p5 = scmp.ne.s32.totalorder %s28_s16, %s11197_s22  ;;  %p11203_p7 = scmp.lt.s32.totalorder %s11197_s22, %s11197_s22 }
  0x11   :  { %p11204_p8 = por %p11203_p7, %p11202_p6 }
  0x13   :  { %p11205_p9 = pnand %p11204_p8, %p11198_p5 }
  0x15   :  { %11208 = shalt.err (!%p11205_p9)
}
  0x16   :  { %33 = dma.hbm_to_vmem [thread:$0]  %s12739_s2, 1024, %s28_s16, [#allocation3], %s11257_s18, %s11257_s18, %s11258_s19  }
  0x17   :  { %s11259_s25 = smov [#allocation6]   ;;  %s11260_s27 = smov [#allocation7]  }
  0x18   :  { %s53_s26 = sshll.u32 %s11259_s25, 4  ;;  %s71_s28 = sshll.u32 %s11260_s27, 4  ;;  %s54_s26 = int_to_ptr.vmem [resolvable:$true] %s53_s26  ;;  %s72_s28 = int_to_ptr.vmem [resolvable:$true] %s71_s28 }
  0x19   :  { %s11217_s3 = scalar_lea.vmem %s54_s26, 2048  ;;  %p11222_p11 = scmp.lt.s32.totalorder %s54_s26, %s54_s26 }
  0x1a   :  { %p11218_p10 = scmp.ne.s32.totalorder %s54_s26, %s11217_s3  ;;  %p11223_p12 = scmp.lt.s32.totalorder %s11217_s3, %s11217_s3 }
  0x1c   :  { %p11224_p13 = por %p11223_p12, %p11222_p11 }
  0x1e   :  { %p11225_p0 = pnand %p11224_p13, %p11218_p10 }
  0x20   :  { %11228 = shalt.err (!%p11225_p0)
}
  0x21   :  { %59 = dma.hbm_to_vmem [thread:$0]  %s12742_s5, 2048, %s54_s26, [#allocation5], %s11257_s18, %s11257_s18, %s11258_s19  }
  0x22   :  { %s11237_s2 = scalar_lea.vmem %s72_s28, 512  ;;  %p11242_p2 = scmp.lt.s32.totalorder %s72_s28, %s72_s28 }
  0x23   :  { %p11238_p1 = scmp.ne.s32.totalorder %s72_s28, %s11237_s2  ;;  %p11243_p3 = scmp.lt.s32.totalorder %s11237_s2, %s11237_s2 }
  0x25   :  { %p11244_p4 = por %p11243_p3, %p11242_p2 }
  0x27   :  { %p11245_p5 = pnand %p11244_p4, %p11238_p1 }
  0x29   :  { %11248 = shalt.err (!%p11245_p5)
}
  0x2a   :  { %77 = dma.hbm_to_vmem [thread:$0]  %s12746_s9, 512, %s72_s28, [#allocation8], %s11257_s18, %s11257_s18, %s11258_s19  }
  0x2b   :  { %11249 = dma.done.wait [#allocation3], 1024  }
  0x2c   :  { %11250 = vsyncadd [#allocation3], 4294966272 }
  0x2d   :  { %11251 = dma.done.wait [#allocation5], 2304  }
  0x2e   :  { %11252 = vsyncadd [#allocation5], 4294964992 }
  0x2f   :  { %11253 = dma.done.wait [#allocation8], 512  }
  0x30   :  { %11254 = vsyncadd [#allocation8], 4294966784  ;;  %v12756_v0 = vmov 0.0   ;;  %vm11262_vm0 = vmmov 0   ;;  %vm97_vm1 = vcmask 130048   ;;  %v96_v1 = vld [vmem:[#allocation4 + $0x8] sm:$0xff] }
  0x31   :  { %10516 = vmatprep.subr.mxu0 %v12756_v0  ;;  %10523 = vmatprep.subr.mxu1 %v12756_v0  ;;  %v95_v2 = vld [vmem:[#allocation4] sm:$0xff]  ;;  %v130_v4 = vand.u32 4294901760, %v96_v1  ;;  %v563_v20 = vld [vmem:[#allocation2 + $0x10] sm:$0xff]  ;;  %vm569_vm2 = vcmask 64512   ;;  %s11264_s13 = smov 96   ;;  %s11265_s14 = smov 32  }
  0x32   :  { %10520 = vmatprep.mubr.msk.f32.mxu0 %vm11262_vm0, %v12756_v0  ;;  %10527 = vmatprep.mubr.msk.f32.mxu1 %vm11262_vm0, %v12756_v0  ;;  %v94_v3 = vld [vmem:[%s12738_s1] sm:$0xff]  ;;  %v133_v5 = vand.u32 4294901760, %v95_v2  ;;  %v571_v21 = vsel %vm569_vm2, %v563_v20, 0  ;;  %s11263_s1 = smov 64   ;;  %v564_v44 = vld [vmem:[#allocation2 + $0x18] sm:$0xff]  ;;  %v1069_v48 = vld [vmem:[#allocation2 + $0x30] sm:$0xff] }
  0x33   :  { %v99_v6 = vsel %vm97_vm1, %v94_v3, 0  ;;  %10517 = vmatpush3.msra.mxu0 %v130_v4  ;;  %v208_v8 = vsub.f32 %v96_v1, %v130_v4  ;;  %v11374_v22 = vand.u32 4294901760, %v571_v21  ;;  %v574_v45 = vsel %vm569_vm2, %v564_v44, 0  ;;  %v1070_v49 = vld [vmem:[#allocation2 + $0x38] sm:$0xff]  ;;  %v560_v62 = vld [vmem:[#allocation2] sm:$0xff]  ;;  %v561_v1 = vld [vmem:[#allocation2 + $0x8] sm:$0xff] }
  0x34   :  { %v168_v7 = vand.u32 4294901760, %v99_v6  ;;  %v215_v9 = vsub.f32 %v95_v2, %v133_v5  ;;  %10518 = vmatprep.subr.mxu0 %v12756_v0  ;;  %v11393_v46 = vand.u32 4294901760, %v574_v45  ;;  %v1075_v51 = vsel %vm569_vm2, %v1069_v48, 0 }
  0x35   :  { %10519 = vmatpush3.msra.mxu0 %v133_v5  ;;  %v209_v11 = vand.u32 4294901760, %v208_v8  ;;  %v11377_v23 = vsub.f32 %v571_v21, %v11374_v22  ;;  %v1078_v52 = vsel %vm569_vm2, %v1070_v49, 0  ;;  %v11398_v54 = vand.u32 4294901760, %v1075_v51 }
  0x36   :  { %v169_v10 = vsub.f32 %v99_v6, %v168_v7  ;;  %v216_v12 = vand.u32 4294901760, %v215_v9  ;;  %10530 = vmatprep.subr.mxu0 %v12756_v0  ;;  %v653_v47 = vsub.f32 %v574_v45, %v11393_v46  ;;  %v11400_v55 = vand.u32 4294901760, %v1078_v52  ;;  %v2566_v45 = vld [vmem:[%s12741_s4] sm:$0xf] }
  0x37   :  { %v210_v14 = vsub.f32 %v208_v8, %v209_v11  ;;  %v644_v25 = vand.u32 4294901760, %v11377_v23  ;;  %v11403_v59 = vsub.f32 %v1075_v51, %v11398_v54  ;;  %v1570_v6 = vsel %vm569_vm2, %v560_v62, 0 }
  0x38   :  { %v170_v13 = vand.u32 4294901760, %v169_v10  ;;  %v217_v15 = vsub.f32 %v215_v9, %v216_v12  ;;  %v654_v50 = vand.u32 4294901760, %v653_v47  ;;  %v11406_v60 = vsub.f32 %v1078_v52, %v11400_v55 }
  0x39   :  { %v211_v17 = vand.u32 4294901760, %v210_v14  ;;  %v645_v28 = vsub.f32 %v11377_v23, %v644_v25  ;;  %v2570_v48 = vsel %vm569_vm2, %v2566_v45, 0  ;;  %vm3045_vm3 = vcmask 31744  }
  0x3a   :  { %v171_v16 = vsub.f32 %v169_v10, %v170_v13  ;;  %v218_v18 = vand.u32 4294901760, %v217_v15  ;;  %v655_v53 = vsub.f32 %v653_v47, %v654_v50  ;;  %vm3052_vm4 = vcmask 1043456  }
  0x3b   :  { %10524 = vmatpush3.msra.mxu1 %v211_v17  ;;  %v646_v31 = vand.u32 4294901760, %v645_v28  ;;  %vm7072_vm5 = vcmask 261120   ;;  %vm10114_vm6 = vcmask 523264  }
  0x3c   :  { %v172_v19 = vand.u32 4294901760, %v171_v16  ;;  %10525 = vmatprep.subr.mxu1 %v12756_v0  ;;  %v656_v58 = vand.u32 4294901760, %v655_v53  ;;  %v2567_v53 = vld [vmem:[%s12743_s6] sm:$0xff] }
  0x3d   :  { %10526 = vmatpush3.msra.mxu1 %v218_v18 }
  0x3e   :  { %10521 = vmatmul.mubr.f32.vlgmr.msra.gmra.mxu0 %v172_v19  ;;  %10528 = vmatmul.mubr.f32.vlgmr.msra.gmra.mxu1 %v168_v7 }
  0x3f   :  { %10531 = vmatpush3.msra.mxu0 %v208_v8  ;;  %10537 = vmatprep.subr.mxu1 %v12756_v0 }
  0x40   :  { %10532 = vmatprep.subr.mxu0 %v12756_v0  ;;  %10534 = vmatprep.mubr.msk.f32.mxu0 %vm11262_vm0, %v12756_v0 }
  0x41   :  { %10533 = vmatpush3.msra.mxu0 %v215_v9  ;;  %10538 = vmatpush3.msra.mxu1 %v130_v4  ;;  %v1573_v9 = vsel %vm569_vm2, %v561_v1, 0 }
  0x42   :  { %10535 = vmatmul.mubr.f32.vlgmr.msra.gmra.mxu0 %v169_v10  ;;  %10539 = vmatprep.subr.mxu1 %v12756_v0  ;;  %v11425_v15 = vand.u32 4294901760, %v1573_v9 }
  0x43   :  { %10544 = vmatprep.subr.mxu0 %v12756_v0  ;;  %10540 = vmatpush3.msra.mxu1 %v133_v5 }
  0x44   :  { %10541 = vmatprep.mubr.msk.f32.mxu1 %vm11262_vm0, %v12756_v0  ;;  %10545 = vmatpush3.msra.mxu0 %v209_v11  ;;  %v11437_v21 = vsub.f32 %v1573_v9, %v11425_v15 }
  0x45   :  { %10542 = vmatmul.mubr.f32.vlgmr.msra.gmra.mxu1 %v170_v13  ;;  %10546 = vmatprep.subr.mxu0 %v12756_v0  ;;  %v11419_v13 = vand.u32 4294901760, %v1570_v6 }
  0x46   :  { %10551 = vmatprep.subr.mxu1 %v12756_v0  ;;  %10547 = vmatpush3.msra.mxu0 %v216_v12 }
  0x47   :  { %10548 = vmatprep.mubr.msk.f32.mxu0 %vm11262_vm0, %v12756_v0  ;;  %10552 = vmatpush3.msra.mxu1 %v130_v4  ;;  %v1148_v4 = vand.u32 4294901760, %v11403_v59  ;;  %v11433_v19 = vsub.f32 %v1570_v6, %v11419_v13 }
  0x48   :  { %10549 = vmatmul.mubr.f32.vlgmr.msra.gmra.mxu0 %v168_v7  ;;  %10553 = vmatprep.subr.mxu1 %v12756_v0 }
  0x49   :  { %10554 = vmatpush3.msra.mxu1 %v133_v5  ;;  %10555 = vmatprep.mubr.msk.f32.mxu1 %vm11262_vm0, %v12756_v0  ;;  %v1158_v5 = vand.u32 4294901760, %v11406_v60  ;;  %v1149_v11 = vsub.f32 %v11403_v59, %v1148_v4 }
  0x4a   :  { %10556 = vmatmul.mubr.f32.vlgmr.msra.gmra.mxu1 %v168_v7  ;;  %10560 = vmatprep.mubr.f32.mxu0 %v646_v31 }
  0x4b   :  { %10565 = vmatprep.mubr.f32.mxu1 %v11374_v22  ;;  %v1159_v14 = vsub.f32 %v11406_v60, %v1158_v5  ;;  %v1150_v17 = vand.u32 4294901760, %v1149_v11 }
  0x4d   :  { %v1160_v20 = vand.u32 4294901760, %v1159_v14 }
  0xfe   :  { %v174_v24 = vpop.f32.mrf.mxu0  ;;  %v255_v27 = vpop.f32.mrf.mxu1 }
  0xff   :  { %v256_v29 = vadd.f32 %v255_v27, %v174_v24  ;;  %v1066_v24 = vld [vmem:[#allocation2 + $0x20] sm:$0xff] }
 0x100   :  { %v10522_v26 = vpop.f32.mrf.mxu0  ;;  %v10529_v30 = vpop.f32.mrf.mxu1  ;;  %v2068_v31 = vsel %vm569_vm2, %v1066_v24, 0 }
 0x101   :  { %v1067_v26 = vld [vmem:[#allocation2 + $0x28] sm:$0xff]  ;;  %v1653_v30 = vand.u32 4294901760, %v11437_v21 }
 0x102   :  { %v331_v32 = vpop.f32.mrf.mxu0 }
 0x103   :  { %v332_v33 = vadd.f32 %v331_v32, %v256_v29  ;;  %v1643_v29 = vand.u32 4294901760, %v11433_v19 }
 0x104   :  { %v10536_v34 = vpop.f32.mrf.mxu0 }
 0x105   :  { %v406_v35 = vpop.f32.mrf.mxu1 }
 0x106   :  { %v407_v36 = vadd.f32 %v406_v35, %v332_v33  ;;  %v11454_v33 = vand.u32 4294901760, %v2068_v31  ;;  %v1654_v35 = vsub.f32 %v11437_v21, %v1653_v30 }
 0x107   :  { %v10543_v37 = vpop.f32.mrf.mxu1 }
 0x108   :  { %v483_v38 = vpop.f32.mrf.mxu0 }
 0x109   :  { %v484_v39 = vadd.f32 %v483_v38, %v407_v36 }
 0x10a   :  { %v10550_v40 = vpop.f32.mrf.mxu0  ;;  %v556_v41 = vpop.f32.mrf.mxu1 }
 0x10b   :  { %v11384_v42 = vadd.f32 %v556_v41, %v484_v39  ;;  %v11470_v39 = vsub.f32 %v2068_v31, %v11454_v33  ;;  %v1655_v40 = vand.u32 4294901760, %v1654_v35 }
 0x10c   :  { %v10557_v43 = vpop.f32.mrf.mxu1 }
 0x10d   :  { %2064 = vrot.lane.b32.xlu1 %v11384_v42, %s11263_s1  ;;  %566 = vrot.lane.b32.xlu0 %v11384_v42, %s11264_s13  ;;  %v11429_v16 = vand.u32 4294901760, %v11384_v42  ;;  %v2141_v44 = vand.u32 4294901760, %v11470_v39 }
 0x10f   :  { %v1693_v28 = vsub.f32 %v11384_v42, %v11429_v16  ;;  %v2142_v49 = vsub.f32 %v11470_v39, %v2141_v44 }
 0x111   :  { %1071 = vrot.lane.b32.xlu0 %v11384_v42, %s11265_s14  ;;  %v1694_v32 = vand.u32 4294901760, %v1693_v28 }
 0x113   :  { %v1695_v38 = vsub.f32 %v1693_v28, %v1694_v32 }
 0x115   :  { %v1696_v43 = vand.u32 4294901760, %v1695_v38 }
 0x17f   :  { %v567_v56 = vpop.permute.xlu0 %566  ;;  %v2065_v34 = vpop.permute.xlu1 %2064 }
 0x180   :  { %v607_v57 = vand.u32 4294901760, %v567_v56  ;;  %v11465_v36 = vand.u32 4294901760, %v2065_v34 }
 0x182   :  { %v694_v61 = vsub.f32 %v567_v56, %v607_v57  ;;  %10558 = vmatprep.subr.mxu0 %v607_v57  ;;  %v2191_v42 = vsub.f32 %v2065_v34, %v11465_v36 }
 0x183   :  { %10559 = vmatpush3.msra.mxu0 %v607_v57  ;;  %v1072_v63 = vpop.permute.xlu0 %1071 }
 0x184   :  { %v11408_v2 = vand.u32 4294901760, %v1072_v63  ;;  %10561 = vmatmul.mubr.f32.vlgmr.msra.gmra.mxu0 %v656_v58  ;;  %10568 = vmatprep.subr.mxu0 %v694_v61  ;;  %v695_v3 = vand.u32 4294901760, %v694_v61  ;;  %v11518_v58 = vand.u32 4294901760, %v2567_v53 }
 0x185   :  { %10569 = vmatpush3.msra.mxu0 %v694_v61  ;;  %10570 = vmatprep.mubr.f32.mxu0 %v11377_v23  ;;  %v2071_v23 = vsel %vm569_vm2, %v1067_v26, 0 }
 0x186   :  { %v1198_v7 = vsub.f32 %v1072_v63, %v11408_v2  ;;  %10578 = vmatprep.subr.mxu0 %v695_v3  ;;  %v696_v8 = vsub.f32 %v694_v61, %v695_v3  ;;  %v2687_v62 = vsub.f32 %v2567_v53, %v11518_v58 }
 0x188   :  { %10571 = vmatmul.mubr.f32.vlgmr.msra.gmra.mxu0 %v653_v47  ;;  %v697_v10 = vand.u32 4294901760, %v696_v8  ;;  %v1199_v12 = vand.u32 4294901760, %v1198_v7  ;;  %v2568_v47 = vld [vmem:[%s12743_s6 + $0x8] sm:$0xff] }
 0x189   :  { %10579 = vmatpush3.msra.mxu0 %v695_v3  ;;  %10580 = vmatprep.mubr.f32.mxu0 %v11374_v22  ;;  %v11505_v52 = vand.u32 4294901760, %v2568_v47 }
 0x18a   :  { %10588 = vmatprep.subr.mxu0 %v11408_v2  ;;  %10563 = vmatprep.subr.mxu1 %v697_v10  ;;  %v1200_v18 = vsub.f32 %v1198_v7, %v1199_v12 }
 0x18b   :  { %10564 = vmatpush3.msra.mxu1 %v697_v10 }
 0x18c   :  { %10566 = vmatmul.mubr.f32.vlgmr.msra.gmra.mxu1 %v11393_v46  ;;  %10573 = vmatprep.subr.mxu1 %v607_v57  ;;  %v1201_v27 = vand.u32 4294901760, %v1200_v18 }
 0x18d   :  { %10581 = vmatmul.mubr.f32.vlgmr.msra.gmra.mxu0 %v11393_v46  ;;  %10574 = vmatpush3.msra.mxu1 %v607_v57 }
 0x18e   :  { %10589 = vmatpush3.msra.mxu0 %v11408_v2  ;;  %10583 = vmatprep.subr.mxu1 %v607_v57 }
 0x18f   :  { %10598 = vmatprep.subr.mxu0 %v1198_v7  ;;  %10575 = vmatprep.mubr.f32.mxu1 %v644_v25  ;;  %v1644_v25 = vsub.f32 %v11433_v19, %v1643_v29 }
 0x190   :  { %10590 = vmatprep.mubr.f32.mxu0 %v1150_v17  ;;  %10576 = vmatmul.mubr.f32.vlgmr.msra.gmra.mxu1 %v654_v50  ;;  %v2192_v50 = vand.u32 4294901760, %v2191_v42 }
 0x191   :  { %10584 = vmatpush3.msra.mxu1 %v607_v57  ;;  %10591 = vmatmul.mubr.f32.vlgmr.msra.gmra.mxu0 %v1160_v20  ;;  %v1645_v37 = vand.u32 4294901760, %v1644_v25 }
 0x192   :  { %10599 = vmatpush3.msra.mxu0 %v1198_v7  ;;  %10593 = vmatprep.subr.mxu1 %v1201_v27  ;;  %v2193_v56 = vsub.f32 %v2191_v42, %v2192_v50 }
 0x193   :  { %10608 = vmatprep.subr.mxu0 %v1199_v12  ;;  %10585 = vmatprep.mubr.f32.mxu1 %v11374_v22  ;;  %v11460_v22 = vand.u32 4294901760, %v2071_v23 }
 0x194   :  { %10600 = vmatprep.mubr.f32.mxu0 %v11403_v59  ;;  %10586 = vmatmul.mubr.f32.vlgmr.msra.gmra.mxu1 %v11393_v46  ;;  %v2194_v61 = vand.u32 4294901760, %v2193_v56 }
 0x195   :  { %10594 = vmatpush3.msra.mxu1 %v1201_v27  ;;  %10601 = vmatmul.mubr.f32.vlgmr.msra.gmra.mxu0 %v11406_v60  ;;  %v11475_v41 = vsub.f32 %v2071_v23, %v11460_v22  ;;  %v2681_v60 = vsub.f32 %v2568_v47, %v11505_v52 }
 0x196   :  { %10609 = vmatpush3.msra.mxu0 %v1199_v12  ;;  %10603 = vmatprep.subr.mxu1 %v11408_v2 }
 0x197   :  { %10618 = vmatprep.subr.mxu0 %v11429_v16  ;;  %10595 = vmatprep.mubr.f32.mxu1 %v11398_v54  ;;  %v2151_v46 = vand.u32 4294901760, %v11475_v41  ;;  %v2682_v1 = vand.u32 4294901760, %v2681_v60 }
 0x198   :  { %10610 = vmatprep.mubr.f32.mxu0 %v11398_v54  ;;  %10596 = vmatmul.mubr.f32.vlgmr.msra.gmra.mxu1 %v11400_v55 }
 0x199   :  { %10604 = vmatpush3.msra.mxu1 %v11408_v2  ;;  %10611 = vmatmul.mubr.f32.vlgmr.msra.gmra.mxu0 %v11400_v55  ;;  %v2152_v51 = vsub.f32 %v11475_v41, %v2151_v46 }
 0x19a   :  { %10619 = vmatpush3.msra.mxu0 %v11429_v16  ;;  %10613 = vmatprep.subr.mxu1 %v11408_v2 }
 0x19b   :  { %10628 = vmatprep.subr.mxu0 %v1693_v28  ;;  %10605 = vmatprep.mubr.f32.mxu1 %v1148_v4  ;;  %v2153_v57 = vand.u32 4294901760, %v2152_v51  ;;  %v2683_v4 = vsub.f32 %v2681_v60, %v2682_v1 }
 0x19c   :  { %10620 = vmatprep.mubr.f32.mxu0 %v1645_v37  ;;  %10606 = vmatmul.mubr.f32.vlgmr.msra.gmra.mxu1 %v1158_v5 }
 0x19d   :  { %10614 = vmatpush3.msra.mxu1 %v11408_v2  ;;  %10621 = vmatmul.mubr.f32.vlgmr.msra.gmra.mxu0 %v1655_v40  ;;  %v2688_v2 = vand.u32 4294901760, %v2687_v62  ;;  %v2684_v7 = vand.u32 4294901760, %v2683_v4 }
 0x19e   :  { %10629 = vmatpush3.msra.mxu0 %v1693_v28  ;;  %10623 = vmatprep.subr.mxu1 %v1696_v43 }
 0x19f   :  { %10638 = vmatprep.subr.mxu0 %v1694_v32  ;;  %10615 = vmatprep.mubr.f32.mxu1 %v11398_v54  ;;  %v11510_v54 = vand.u32 4294901760, %v2570_v48  ;;  %v2689_v5 = vsub.f32 %v2687_v62, %v2688_v2 }
 0x1a0   :  { %10630 = vmatprep.mubr.f32.mxu0 %v11433_v19  ;;  %10616 = vmatmul.mubr.f32.vlgmr.msra.gmra.mxu1 %v11400_v55  ;;  %v2143_v55 = vand.u32 4294901760, %v2142_v49 }
 0x1a1   :  { %10624 = vmatpush3.msra.mxu1 %v1696_v43  ;;  %10631 = vmatmul.mubr.f32.vlgmr.msra.gmra.mxu0 %v11437_v21  ;;  %v2640_v59 = vsub.f32 %v2570_v48, %v11510_v54  ;;  %v2690_v8 = vand.u32 4294901760, %v2689_v5 }
 0x1a2   :  { %10639 = vmatpush3.msra.mxu0 %v1694_v32  ;;  %10633 = vmatprep.subr.mxu1 %v11429_v16 }
 0x1a3   :  { %10648 = vmatprep.subr.mxu0 %v11465_v36  ;;  %10625 = vmatprep.mubr.f32.mxu1 %v11419_v13  ;;  %v2641_v63 = vand.u32 4294901760, %v2640_v59 }
 0x1a4   :  { %10640 = vmatprep.mubr.f32.mxu0 %v11419_v13  ;;  %10626 = vmatmul.mubr.f32.vlgmr.msra.gmra.mxu1 %v11425_v15 }
 0x1a5   :  { %10634 = vmatpush3.msra.mxu1 %v11429_v16  ;;  %10641 = vmatmul.mubr.f32.vlgmr.msra.gmra.mxu0 %v11425_v15  ;;  %v2642_v3 = vsub.f32 %v2640_v59, %v2641_v63 }
 0x1a6   :  { %10649 = vmatpush3.msra.mxu0 %v11465_v36  ;;  %10643 = vmatprep.subr.mxu1 %v11429_v16 }
 0x1a7   :  { %10658 = vmatprep.subr.mxu0 %v2191_v42  ;;  %10635 = vmatprep.mubr.f32.mxu1 %v1643_v29  ;;  %v2643_v6 = vand.u32 4294901760, %v2642_v3 }
 0x1a8   :  { %10650 = vmatprep.mubr.f32.mxu0 %v2143_v55  ;;  %10636 = vmatmul.mubr.f32.vlgmr.msra.gmra.mxu1 %v1653_v30 }
 0x1a9   :  { %10644 = vmatpush3.msra.mxu1 %v11429_v16  ;;  %10651 = vmatmul.mubr.f32.vlgmr.msra.gmra.mxu0 %v2153_v57 }
 0x1aa   :  { %10659 = vmatpush3.msra.mxu0 %v2191_v42  ;;  %10653 = vmatprep.subr.mxu1 %v2194_v61 }
 0x1ab   :  { %10668 = vmatprep.subr.mxu0 %v2192_v50  ;;  %10645 = vmatprep.mubr.f32.mxu1 %v11419_v13 }
 0x1ac   :  { %10660 = vmatprep.mubr.f32.mxu0 %v11470_v39  ;;  %10646 = vmatmul.mubr.f32.vlgmr.msra.gmra.mxu1 %v11425_v15 }
 0x1ad   :  { %10654 = vmatpush3.msra.mxu1 %v2194_v61  ;;  %10661 = vmatmul.mubr.f32.vlgmr.msra.gmra.mxu0 %v11475_v41 }
 0x1ae   :  { %10669 = vmatpush3.msra.mxu0 %v2192_v50  ;;  %10663 = vmatprep.subr.mxu1 %v11465_v36 }
 0x1af   :  { %10655 = vmatprep.mubr.f32.mxu1 %v11454_v33  ;;  %10670 = vmatprep.mubr.f32.mxu0 %v11454_v33 }
 0x1b0   :  { %10656 = vmatmul.mubr.f32.vlgmr.msra.gmra.mxu1 %v11460_v22  ;;  %2603 = vmatprep.subr.mxu0 %v11505_v52 }
 0x1b1   :  { %10664 = vmatpush3.msra.mxu1 %v11465_v36  ;;  %10665 = vmatprep.mubr.f32.mxu1 %v2141_v44 }
 0x1b2   :  { %10673 = vmatprep.subr.mxu1 %v11465_v36  ;;  %10671 = vmatmul.mubr.f32.vlgmr.msra.gmra.mxu0 %v11460_v22 }
 0x1b3   :  { %2605 = vmatpush1.msra.mxu0 %v11518_v58  ;;  %2638 = vmatprep.mubr.f32.mxu0 %v12756_v0 }
 0x1b4   :  { %10666 = vmatmul.mubr.f32.vlgmr.msra.gmra.mxu1 %v2151_v46  ;;  %2764 = vmatprep.subr.mxu0 %v2681_v60 }
 0x1b5   :  { %10674 = vmatpush3.msra.mxu1 %v11465_v36  ;;  %10675 = vmatprep.mubr.f32.mxu1 %v11454_v33 }
 0x1b6   :  { %2644 = vmatmul.mubr.f32.vlgmr.msra.gmra.mxu0 %v2643_v6  ;;  %2685 = vmatprep.subr.mxu1 %v2684_v7 }
 0x1b7   :  { %2767 = vmatpush1.msra.mxu0 %v2687_v62  ;;  %2800 = vmatprep.mubr.f32.mxu0 %v12756_v0 }
 0x1b8   :  { %10676 = vmatmul.mubr.f32.vlgmr.msra.gmra.mxu1 %v11460_v22  ;;  %2918 = vmatprep.subr.mxu0 %v2682_v1 }
 0x1b9   :  { %2691 = vmatpush1.msra.mxu1 %v2690_v8  ;;  %2724 = vmatprep.mubr.f32.mxu1 %v12756_v0 }
 0x1ba   :  { %2803 = vmatmul.mubr.f32.vlgmr.msra.gmra.mxu0 %v2640_v59  ;;  %2840 = vmatprep.subr.mxu1 %v11505_v52 }
 0x1bb   :  { %2922 = vmatpush1.msra.mxu0 %v2688_v2  ;;  %2955 = vmatprep.mubr.f32.mxu0 %v12756_v0 }
 0x1bc   :  { %2726 = vmatmul.mubr.f32.vlgmr.msra.gmra.mxu1 %v11510_v54 }
 0x1bd   :  { %2842 = vmatpush1.msra.mxu1 %v11518_v58  ;;  %2875 = vmatprep.mubr.f32.mxu1 %v12756_v0 }
 0x1be   :  { %2957 = vmatmul.mubr.f32.vlgmr.msra.gmra.mxu0 %v11510_v54  ;;  %2994 = vmatprep.subr.mxu1 %v11505_v52 }
 0x1c0   :  { %2879 = vmatmul.mubr.f32.vlgmr.msra.gmra.mxu1 %v2641_v63 }
 0x1c1   :  { %2996 = vmatpush1.msra.mxu1 %v11518_v58  ;;  %3029 = vmatprep.mubr.f32.mxu1 %v12756_v0 }
 0x1c4   :  { %3031 = vmatmul.mubr.f32.vlgmr.msra.gmra.mxu1 %v11510_v54 }
 0x244   :  { %v10562_v9 = vpop.f32.mrf.mxu0 }
 0x246   :  { %v11563_v10 = vpop.f32.mrf.mxu0 }
 0x248   :  { %v10572_v11 = vpop.f32.mrf.mxu0 }
 0x24a   :  { %v11565_v12 = vpop.f32.mrf.mxu0 }
 0x24c   :  { %v10567_v13 = vpop.f32.mrf.mxu1 }
 0x24d   :  { %v741_v14 = vadd.f32 %v10567_v13, %v10562_v9  ;;  %v10582_v15 = vpop.f32.mrf.mxu0 }
 0x24e   :  { %v11567_v16 = vpop.f32.mrf.mxu1 }
 0x24f   :  { %v11569_v17 = vpop.f32.mrf.mxu0  ;;  %v822_v18 = vadd.f32 %v10572_v11, %v741_v14  ;;  %v3040_v11 = vld [vmem:[#allocation6 + $0x10] sm:$0xff] }
 0x250   :  { %v10577_v19 = vpop.f32.mrf.mxu1  ;;  %v3047_v14 = vsel %vm3045_vm3, %v3040_v11, 0  ;;  %v3549_v11 = vld [vmem:[#allocation6 + $0x38] sm:$0xff] }
 0x251   :  { %v904_v20 = vadd.f32 %v10577_v19, %v822_v18  ;;  %v10592_v21 = vpop.f32.mrf.mxu0  ;;  %v11610_v19 = vand.u32 4294901760, %v3047_v14 }
 0x252   :  { %v11571_v24 = vpop.f32.mrf.mxu1 }
 0x253   :  { %v11573_v26 = vpop.f32.mrf.mxu0  ;;  %v984_v27 = vadd.f32 %v10582_v15, %v904_v20  ;;  %10685 = vmatprep.mubr.f32.mxu1 %v11610_v19 }
 0x254   :  { %v10587_v28 = vpop.f32.mrf.mxu1 }
 0x255   :  { %v1062_v29 = vadd.f32 %v10587_v28, %v984_v27  ;;  %v10602_v30 = vpop.f32.mrf.mxu0  ;;  %v11613_v28 = vsub.f32 %v3047_v14, %v11610_v19 }
 0x256   :  { %v11575_v31 = vpop.f32.mrf.mxu1 }
 0x257   :  { %v11577_v23 = vpop.f32.mrf.mxu0 }
 0x258   :  { %v10597_v25 = vpop.f32.mrf.mxu1 }
 0x259   :  { %v1245_v32 = vadd.f32 %v10597_v25, %v10592_v21  ;;  %v10612_v33 = vpop.f32.mrf.mxu0 }
 0x25a   :  { %v11579_v34 = vpop.f32.mrf.mxu1 }
 0x25b   :  { %v11581_v35 = vpop.f32.mrf.mxu0  ;;  %v1326_v22 = vadd.f32 %v10602_v30, %v1245_v32  ;;  %v3123_v32 = vand.u32 4294901760, %v11613_v28 }
 0x25c   :  { %v10607_v36 = vpop.f32.mrf.mxu1 }
 0x25d   :  { %v1408_v37 = vadd.f32 %v10607_v36, %v1326_v22  ;;  %v10622_v38 = vpop.f32.mrf.mxu0 }
 0x25e   :  { %v1658_v39 = vadd.f32 %v10622_v38, %v1062_v29  ;;  %v11583_v40 = vpop.f32.mrf.mxu1 }
 0x25f   :  { %v11585_v41 = vpop.f32.mrf.mxu0  ;;  %v1488_v42 = vadd.f32 %v10612_v33, %v1408_v37  ;;  %v3124_v37 = vsub.f32 %v11613_v28, %v3123_v32 }
 0x260   :  { %v10617_v43 = vpop.f32.mrf.mxu1 }
 0x261   :  { %v1566_v44 = vadd.f32 %v10617_v43, %v1488_v42  ;;  %v10632_v45 = vpop.f32.mrf.mxu0  ;;  %v3125_v42 = vand.u32 4294901760, %v3124_v37 }
 0x262   :  { %v11587_v46 = vpop.f32.mrf.mxu1 }
 0x263   :  { %v11589_v47 = vpop.f32.mrf.mxu0  ;;  %10680 = vmatprep.mubr.f32.mxu0 %v3125_v42 }
 0x264   :  { %12788 = vst [vmem:[#allocation12_spill] sm:$0xff] %v11589_v47  ;;  %v10627_v48 = vpop.f32.mrf.mxu1 }
 0x265   :  { %v1740_v49 = vadd.f32 %v10627_v48, %v1658_v39  ;;  %v10642_v50 = vpop.f32.mrf.mxu0 }
 0x266   :  { %v11591_v51 = vpop.f32.mrf.mxu1 }
 0x267   :  { %v11593_v52 = vpop.f32.mrf.mxu0  ;;  %v1821_v53 = vadd.f32 %v10632_v45, %v1740_v49 }
 0x268   :  { %12789 = vst [vmem:[#allocation13_spill] sm:$0xff] %v11593_v52  ;;  %v10637_v54 = vpop.f32.mrf.mxu1 }
 0x269   :  { %v1903_v55 = vadd.f32 %v10637_v54, %v1821_v53  ;;  %v10652_v56 = vpop.f32.mrf.mxu0 }
 0x26a   :  { %v2156_v57 = vadd.f32 %v10652_v56, %v1566_v44  ;;  %v11595_v58 = vpop.f32.mrf.mxu1 }
 0x26b   :  { %12790 = vst [vmem:[#allocation14_spill] sm:$0xff] %v11595_v58  ;;  %v11597_v59 = vpop.f32.mrf.mxu0  ;;  %v1983_v60 = vadd.f32 %v10642_v50, %v1903_v55 }
 0x26c   :  { %v10647_v61 = vpop.f32.mrf.mxu1 }
 0x26d   :  { %v2061_v62 = vadd.f32 %v10647_v61, %v1983_v60  ;;  %v10662_v63 = vpop.f32.mrf.mxu0 }
 0x26e   :  { %v11599_v1 = vpop.f32.mrf.mxu1 }
 0x26f   :  { %12791 = vst [vmem:[#allocation15_spill] sm:$0xff] %v11599_v1  ;;  %v11601_v2 = vpop.f32.mrf.mxu0 }
 0x270   :  { %12792 = vst [vmem:[#allocation16_spill] sm:$0xff] %v11601_v2  ;;  %v10657_v3 = vpop.f32.mrf.mxu1 }
 0x271   :  { %v2238_v4 = vadd.f32 %v10657_v3, %v2156_v57  ;;  %v3041_v3 = vld [vmem:[#allocation6 + $0x18] sm:$0xff] }
 0x272   :  { %v11603_v5 = vpop.f32.mrf.mxu1  ;;  %v10672_v6 = vpop.f32.mrf.mxu0 }
 0x273   :  { %v2319_v7 = vadd.f32 %v10662_v63, %v2238_v4  ;;  %v3050_v4 = vsel %vm3045_vm3, %v3041_v3, 0 }
 0x274   :  { %v10667_v8 = vpop.f32.mrf.mxu1  ;;  %v11605_v9 = vpop.f32.mrf.mxu0 }
 0x275   :  { %12793 = vst [vmem:[#allocation17_spill] sm:$0xff] %v11605_v9  ;;  %v2401_v13 = vadd.f32 %v10667_v8, %v2319_v7  ;;  %v3548_v8 = vld [vmem:[#allocation6 + $0x30] sm:$0xff] }
 0x276   :  { %v11608_v15 = vpop.f32.mrf.mxu1  ;;  %v2645_v18 = vpop.f32.mrf.mxu0  ;;  %v3553_v14 = vsel %vm3045_vm3, %v3548_v8, 0 }
 0x277   :  { %12794 = vst [vmem:[#allocation18_spill] sm:$0xff] %v11608_v15  ;;  %v2481_v20 = vadd.f32 %v10672_v6, %v2401_v13  ;;  %v11641_v6 = vand.u32 4294901760, %v3050_v4  ;;  %v1239_v15 = vadd.f32 %v11579_v34, %v11573_v26 }
 0x278   :  { %v10677_v21 = vpop.f32.mrf.mxu1  ;;  %v2647_v27 = vpop.f32.mrf.mxu0 }
 0x279   :  { %v2559_v29 = vadd.f32 %v10677_v21, %v2481_v20  ;;  %v11644_v7 = vsub.f32 %v3050_v4, %v11641_v6  ;;  %v11652_v21 = vand.u32 4294901760, %v3553_v14 }
 0x27a   :  { %v11616_v30 = vpop.f32.mrf.mxu1  ;;  %v2804_v25 = vpop.f32.mrf.mxu0 }
 0x27b   :  { %12795 = vst [vmem:[#allocation19_spill] sm:$0xff] %v11616_v30  ;;  %v11619_v33 = vadd.f32 %v2559_v29, %v2061_v62  ;;  %v3133_v13 = vand.u32 4294901760, %v11644_v7  ;;  %v11661_v42 = vsub.f32 %v3553_v14, %v11652_v21 }
 0x27c   :  { %v2727_v22 = vpop.f32.mrf.mxu1  ;;  %v2806_v36 = vpop.f32.mrf.mxu0 }
 0x27d   :  { %12796 = vst [vmem:[#allocation20_spill] sm:$0xff] %v11619_v33  ;;  %v2728_v38 = vadd.f32 %v2727_v22, %v2645_v18  ;;  %v3556_v18 = vsel %vm3045_vm3, %v3549_v11, 0  ;;  %v3134_v20 = vsub.f32 %v11644_v7, %v3133_v13 }
 0x27e   :  { %v2729_v39 = vpop.f32.mrf.mxu1  ;;  %v2958_v48 = vpop.f32.mrf.mxu0 }
 0x27f   :  { %v2805_v43 = vadd.f32 %v2804_v25, %v2728_v38  ;;  %v2730_v44 = vadd.f32 %v2729_v39, %v2647_v27  ;;  %v11654_v27 = vand.u32 4294901760, %v3556_v18  ;;  %v3135_v39 = vand.u32 4294901760, %v3134_v20 }
 0x280   :  { %v2880_v45 = vpop.f32.mrf.mxu1  ;;  %v2960_v56 = vpop.f32.mrf.mxu0 }
 0x281   :  { %v2807_v49 = vadd.f32 %v2806_v36, %v2730_v44  ;;  %v2881_v50 = vadd.f32 %v2880_v45, %v2805_v43  ;;  %v11664_v43 = vsub.f32 %v3556_v18, %v11654_v27  ;;  %v4053_v45 = vld [vmem:[#allocation6 + $0x50] sm:$0xff] }
 0x282   :  { %v2882_v53 = vpop.f32.mrf.mxu1 }
 0x283   :  { %v2959_v54 = vadd.f32 %v2958_v48, %v2881_v50  ;;  %v2883_v55 = vadd.f32 %v2882_v53, %v2807_v49  ;;  %v4054_v48 = vld [vmem:[#allocation6 + $0x58] sm:$0xff]  ;;  %v3628_v53 = vand.u32 4294901760, %v11661_v42 }
 0x284   :  { %v3032_v57 = vpop.f32.mrf.mxu1 }
 0x285   :  { %v2961_v60 = vadd.f32 %v2960_v56, %v2883_v55  ;;  %v11624_v61 = vadd.f32 %v3032_v57, %v2959_v54  ;;  %v3638_v54 = vand.u32 4294901760, %v11664_v43  ;;  %v4059_v55 = vsel %vm3045_vm3, %v4053_v45, 0  ;;  %v4560_v45 = vld [vmem:[#allocation6 + $0x78] sm:$0xff] }
 0x286   :  { %v3034_v62 = vpop.f32.mrf.mxu1  ;;  %v3629_v3 = vsub.f32 %v11661_v42, %v3628_v53  ;;  %v11676_v8 = vand.u32 4294901760, %v4059_v55 }
 0x287   :  { %3550 = vrot.lane.b32.xlu0 %v11624_v61, %s11265_s14  ;;  %3043 = vrot.lane.b32.xlu1 %v11624_v61, %s11264_s13  ;;  %v11630_v63 = vadd.f32 %v3034_v62, %v2961_v60  ;;  %v4062_v60 = vsel %vm3045_vm3, %v4054_v48, 0  ;;  %v3639_v14 = vsub.f32 %v11664_v43, %v3638_v54 }
 0x288   :  { %v11683_v18 = vand.u32 4294901760, %v4062_v60 }
 0x28b   :  { %4561 = vrot.lane.b32.xlu0 %v11630_v63, %s11265_s14  ;;  %4056 = vrot.lane.b32.xlu1 %v11630_v63, %s11264_s13 }
 0x28f   :  { %6553 = vrot.lane.b32.xlu0 %v11630_v63, %s11263_s1  ;;  %5557 = vrot.lane.b32.xlu1 %v11624_v61, %s11263_s1 }
 0x2f9   :  { %v3551_v29 = vpop.permute.xlu0 %3550  ;;  %v3044_v25 = vpop.permute.xlu1 %3043 }
 0x2fa   :  { %v3558_v22 = vsel %vm3052_vm4, %v3551_v29, 0  ;;  %v3053_v36 = vsel %vm3052_vm4, %v3044_v25, 0  ;;  %v3630_v29 = vand.u32 4294901760, %v3629_v3 }
 0x2fb   :  { %v11658_v37 = vand.u32 4294901760, %v3558_v22  ;;  %v3086_v38 = vand.u32 4294901760, %v3053_v36 }
 0x2fd   :  { %v3173_v44 = vsub.f32 %v3053_v36, %v3086_v38  ;;  %10678 = vmatprep.subr.mxu0 %v3086_v38  ;;  %v3678_v49 = vsub.f32 %v3558_v22, %v11658_v37  ;;  %v4057_v56 = vpop.permute.xlu1 %4056  ;;  %v11690_v22 = vsub.f32 %v4059_v55, %v11676_v8  ;;  %v3640_v36 = vand.u32 4294901760, %v3639_v14 }
 0x2fe   :  { %10679 = vmatpush3.msra.mxu0 %v3086_v38  ;;  %v4064_v11 = vsel %vm3052_vm4, %v4057_v56, 0 }
 0x2ff   :  { %10681 = vmatmul.mubr.f32.vlgmr.msra.gmra.mxu0 %v3135_v39  ;;  %10688 = vmatprep.subr.mxu0 %v3173_v44  ;;  %v3174_v50 = vand.u32 4294901760, %v3173_v44  ;;  %v3679_v4 = vand.u32 4294901760, %v3678_v49  ;;  %v11686_v20 = vand.u32 4294901760, %v4064_v11  ;;  %v11694_v39 = vsub.f32 %v4062_v60, %v11683_v18  ;;  %v4562_v60 = vpop.permute.xlu0 %4561 }
 0x300   :  { %10689 = vmatpush3.msra.mxu0 %v3173_v44  ;;  %10690 = vmatprep.mubr.f32.mxu0 %v11613_v28  ;;  %v4134_v55 = vand.u32 4294901760, %v11690_v22  ;;  %v4567_v28 = vsel %vm3045_vm3, %v4560_v45, 0 }
 0x301   :  { %10698 = vmatprep.subr.mxu0 %v3174_v50  ;;  %v3175_v57 = vsub.f32 %v3173_v44, %v3174_v50  ;;  %v3680_v25 = vsub.f32 %v3678_v49, %v3679_v4  ;;  %v4559_v44 = vld [vmem:[#allocation6 + $0x70] sm:$0xff]  ;;  %v4184_v48 = vsub.f32 %v4064_v11, %v11686_v20  ;;  %v4144_v56 = vand.u32 4294901760, %v11694_v39 }
 0x303   :  { %10691 = vmatmul.mubr.f32.vlgmr.msra.gmra.mxu0 %v11644_v7  ;;  %v3176_v62 = vand.u32 4294901760, %v3175_v57  ;;  %v4564_v57 = vsel %vm3045_vm3, %v4559_v44, 0  ;;  %v4185_v7 = vand.u32 4294901760, %v4184_v48 }
 0x304   :  { %10699 = vmatpush3.msra.mxu0 %v3174_v50  ;;  %10700 = vmatprep.mubr.f32.mxu0 %v11610_v19  ;;  %v3681_v50 = vand.u32 4294901760, %v3680_v25  ;;  %v3038_v25 = vld [vmem:[#allocation6 + $0x8] sm:$0xff] }
 0x305   :  { %10708 = vmatprep.subr.mxu0 %v11658_v37  ;;  %10683 = vmatprep.subr.mxu1 %v3176_v62  ;;  %v4186_v3 = vsub.f32 %v4184_v48, %v4185_v7 }
 0x306   :  { %10684 = vmatpush3.msra.mxu1 %v3176_v62 }
 0x307   :  { %10686 = vmatmul.mubr.f32.vlgmr.msra.gmra.mxu1 %v11641_v6  ;;  %10693 = vmatprep.subr.mxu1 %v3086_v38  ;;  %v4187_v44 = vand.u32 4294901760, %v4186_v3 }
 0x308   :  { %10701 = vmatmul.mubr.f32.vlgmr.msra.gmra.mxu0 %v11641_v6  ;;  %10694 = vmatpush3.msra.mxu1 %v3086_v38 }
 0x309   :  { %10709 = vmatpush3.msra.mxu0 %v11658_v37  ;;  %10703 = vmatprep.subr.mxu1 %v3086_v38 }
 0x30a   :  { %10718 = vmatprep.subr.mxu0 %v3678_v49  ;;  %10695 = vmatprep.mubr.f32.mxu1 %v3123_v32  ;;  %v4135_v32 = vsub.f32 %v11690_v22, %v4134_v55 }
 0x30b   :  { %10710 = vmatprep.mubr.f32.mxu0 %v3630_v29  ;;  %10696 = vmatmul.mubr.f32.vlgmr.msra.gmra.mxu1 %v3133_v13  ;;  %v11712_v13 = vand.u32 4294901760, %v4564_v57  ;;  %v3037_v29 = vld [vmem:[#allocation6] sm:$0xff] }
 0x30c   :  { %10704 = vmatpush3.msra.mxu1 %v3086_v38  ;;  %10711 = vmatmul.mubr.f32.vlgmr.msra.gmra.mxu0 %v3640_v36  ;;  %v4569_v38 = vsel %vm3052_vm4, %v4562_v60, 0  ;;  %v4136_v62 = vand.u32 4294901760, %v4135_v32 }
 0x30d   :  { %10719 = vmatpush3.msra.mxu0 %v3678_v49  ;;  %10713 = vmatprep.subr.mxu1 %v3681_v50  ;;  %v11719_v49 = vand.u32 4294901760, %v4567_v28  ;;  %v11729_v11 = vsub.f32 %v4564_v57, %v11712_v13  ;;  %v5061_v57 = vsel %vm3045_vm3, %v3037_v29, 0 }
 0x30e   :  { %10728 = vmatprep.subr.mxu0 %v3679_v4  ;;  %10705 = vmatprep.mubr.f32.mxu1 %v11610_v19  ;;  %v4145_v19 = vsub.f32 %v11694_v39, %v4144_v56 }
 0x30f   :  { %10720 = vmatprep.mubr.f32.mxu0 %v11661_v42  ;;  %10706 = vmatmul.mubr.f32.vlgmr.msra.gmra.mxu1 %v11641_v6  ;;  %v11724_v6 = vand.u32 4294901760, %v4569_v38  ;;  %v11734_v14 = vsub.f32 %v4567_v28, %v11719_v49  ;;  %v4639_v45 = vand.u32 4294901760, %v11729_v11  ;;  %v5064_v42 = vsel %vm3045_vm3, %v3038_v25, 0 }
 0x310   :  { %10714 = vmatpush3.msra.mxu1 %v3681_v50  ;;  %10721 = vmatmul.mubr.f32.vlgmr.msra.gmra.mxu0 %v11664_v43 }
 0x311   :  { %10729 = vmatpush3.msra.mxu0 %v3679_v4  ;;  %10723 = vmatprep.subr.mxu1 %v11658_v37  ;;  %v4146_v4 = vand.u32 4294901760, %v4145_v19  ;;  %v4689_v36 = vsub.f32 %v4569_v38, %v11724_v6  ;;  %v4649_v50 = vand.u32 4294901760, %v11734_v14  ;;  %v3545_v38 = vld [vmem:[#allocation6 + $0x20] sm:$0xff]  ;;  %v3546_v19 = vld [vmem:[#allocation6 + $0x28] sm:$0xff] }
 0x312   :  { %10738 = vmatprep.subr.mxu0 %v11686_v20  ;;  %10715 = vmatprep.mubr.f32.mxu1 %v11652_v21  ;;  %v5560_v25 = vsel %vm3045_vm3, %v3545_v38, 0 }
 0x313   :  { %10730 = vmatprep.mubr.f32.mxu0 %v11652_v21  ;;  %10716 = vmatmul.mubr.f32.vlgmr.msra.gmra.mxu1 %v11654_v27  ;;  %v4690_v43 = vand.u32 4294901760, %v4689_v36 }
 0x314   :  { %10724 = vmatpush3.msra.mxu1 %v11658_v37  ;;  %10731 = vmatmul.mubr.f32.vlgmr.msra.gmra.mxu0 %v11654_v27 }
 0x315   :  { %10739 = vmatpush3.msra.mxu0 %v11686_v20  ;;  %10733 = vmatprep.subr.mxu1 %v11658_v37  ;;  %v4691_v60 = vsub.f32 %v4689_v36, %v4690_v43 }
 0x316   :  { %10748 = vmatprep.subr.mxu0 %v4184_v48  ;;  %10725 = vmatprep.mubr.f32.mxu1 %v3628_v53  ;;  %v11754_v53 = vand.u32 4294901760, %v5061_v57 }
 0x317   :  { %10740 = vmatprep.mubr.f32.mxu0 %v4136_v62  ;;  %10726 = vmatmul.mubr.f32.vlgmr.msra.gmra.mxu1 %v3638_v54  ;;  %v5066_v54 = vsel %vm3052_vm4, %v11624_v61, 0  ;;  %v4692_v62 = vand.u32 4294901760, %v4691_v60 }
 0x318   :  { %10734 = vmatpush3.msra.mxu1 %v11658_v37  ;;  %10741 = vmatmul.mubr.f32.vlgmr.msra.gmra.mxu0 %v4146_v4  ;;  %v4640_v37 = vsub.f32 %v11729_v11, %v4639_v45  ;;  %v11772_v28 = vsub.f32 %v5061_v57, %v11754_v53 }
 0x319   :  { %10749 = vmatpush3.msra.mxu0 %v4184_v48  ;;  %10743 = vmatprep.subr.mxu1 %v4187_v44  ;;  %v11762_v48 = vand.u32 4294901760, %v5064_v42 }
 0x31a   :  { %10758 = vmatprep.subr.mxu0 %v4185_v7  ;;  %10735 = vmatprep.mubr.f32.mxu1 %v11652_v21  ;;  %v4650_v21 = vsub.f32 %v11734_v14, %v4649_v50  ;;  %v4641_v61 = vand.u32 4294901760, %v4640_v37  ;;  %v5136_v4 = vand.u32 4294901760, %v11772_v28 }
 0x31b   :  { %10750 = vmatprep.mubr.f32.mxu0 %v11690_v22  ;;  %10736 = vmatmul.mubr.f32.vlgmr.msra.gmra.mxu1 %v11654_v27  ;;  %v11767_v27 = vand.u32 4294901760, %v5066_v54  ;;  %v5563_v22 = vsel %vm3045_vm3, %v3546_v19, 0 }
 0x31c   :  { %10744 = vmatpush3.msra.mxu1 %v4187_v44  ;;  %10751 = vmatmul.mubr.f32.vlgmr.msra.gmra.mxu0 %v11694_v39  ;;  %v4651_v32 = vand.u32 4294901760, %v4650_v21  ;;  %v5558_v44 = vpop.permute.xlu1 %5557  ;;  %v4050_v21 = vld [vmem:[#allocation6 + $0x40] sm:$0xff] }
 0x31d   :  { %10759 = vmatpush3.msra.mxu0 %v4185_v7  ;;  %10753 = vmatprep.subr.mxu1 %v11686_v20  ;;  %v11777_v7 = vsub.f32 %v5064_v42, %v11762_v48  ;;  %v5186_v3 = vsub.f32 %v5066_v54, %v11767_v27 }
 0x31e   :  { %10768 = vmatprep.subr.mxu0 %v11724_v6  ;;  %10745 = vmatprep.mubr.f32.mxu1 %v11676_v8 }
 0x31f   :  { %10760 = vmatprep.mubr.f32.mxu0 %v11676_v8  ;;  %10746 = vmatmul.mubr.f32.vlgmr.msra.gmra.mxu1 %v11683_v18  ;;  %v5146_v29 = vand.u32 4294901760, %v11777_v7  ;;  %v5187_v39 = vand.u32 4294901760, %v5186_v3 }
 0x320   :  { %10754 = vmatpush3.msra.mxu1 %v11686_v20  ;;  %10761 = vmatmul.mubr.f32.vlgmr.msra.gmra.mxu0 %v11683_v18 }
 0x321   :  { %10769 = vmatpush3.msra.mxu0 %v11724_v6  ;;  %10763 = vmatprep.subr.mxu1 %v11686_v20  ;;  %v5188_v42 = vsub.f32 %v5186_v3, %v5187_v39 }
 0x322   :  { %10778 = vmatprep.subr.mxu0 %v4689_v36  ;;  %10755 = vmatprep.mubr.f32.mxu1 %v4134_v55  ;;  %v11797_v55 = vand.u32 4294901760, %v5560_v25 }
 0x323   :  { %10770 = vmatprep.mubr.f32.mxu0 %v4641_v61  ;;  %10756 = vmatmul.mubr.f32.vlgmr.msra.gmra.mxu1 %v4144_v56  ;;  %v5565_v56 = vsel %vm3052_vm4, %v5558_v44, 0  ;;  %v4051_v61 = vld [vmem:[#allocation6 + $0x48] sm:$0xff] }
 0x324   :  { %10764 = vmatpush3.msra.mxu1 %v11686_v20  ;;  %10771 = vmatmul.mubr.f32.vlgmr.msra.gmra.mxu0 %v4651_v32  ;;  %v5137_v20 = vsub.f32 %v11772_v28, %v5136_v4  ;;  %v11814_v37 = vsub.f32 %v5560_v25, %v11797_v55  ;;  %v5189_v32 = vand.u32 4294901760, %v5188_v42 }
 0x325   :  { %10779 = vmatpush3.msra.mxu0 %v4689_v36  ;;  %10773 = vmatprep.subr.mxu1 %v4692_v62  ;;  %v11804_v36 = vand.u32 4294901760, %v5563_v22 }
 0x326   :  { %10788 = vmatprep.subr.mxu0 %v4690_v43  ;;  %10765 = vmatprep.mubr.f32.mxu1 %v11676_v8  ;;  %v5147_v8 = vsub.f32 %v11777_v7, %v5146_v29  ;;  %v5138_v57 = vand.u32 4294901760, %v5137_v20  ;;  %v5635_v38 = vand.u32 4294901760, %v11814_v37 }
 0x327   :  { %10780 = vmatprep.mubr.f32.mxu0 %v11729_v11  ;;  %10766 = vmatmul.mubr.f32.vlgmr.msra.gmra.mxu1 %v11683_v18  ;;  %v11809_v18 = vand.u32 4294901760, %v5565_v56  ;;  %v11819_v54 = vsub.f32 %v5563_v22, %v11804_v36  ;;  %v6060_v11 = vsel %vm3045_vm3, %v4051_v61, 0  ;;  %v6554_v61 = vpop.permute.xlu0 %6553 }
 0x328   :  { %10774 = vmatpush3.msra.mxu1 %v4692_v62  ;;  %10781 = vmatmul.mubr.f32.vlgmr.msra.gmra.mxu0 %v11734_v14  ;;  %v6057_v62 = vsel %vm3045_vm3, %v4050_v21, 0 }
 0x329   :  { %10789 = vmatpush3.msra.mxu0 %v4690_v43  ;;  %10783 = vmatprep.subr.mxu1 %v11724_v6  ;;  %v5148_v43 = vand.u32 4294901760, %v5147_v8  ;;  %v5685_v60 = vsub.f32 %v5565_v56, %v11809_v18  ;;  %v5645_v19 = vand.u32 4294901760, %v11819_v54  ;;  %v4557_v56 = vld [vmem:[#allocation6 + $0x68] sm:$0xff] }
 0x32a   :  { %10798 = vmatprep.subr.mxu0 %v11767_v27  ;;  %10775 = vmatprep.mubr.f32.mxu1 %v11712_v13 }
 0x32b   :  { %10790 = vmatprep.mubr.f32.mxu0 %v11712_v13  ;;  %10776 = vmatmul.mubr.f32.vlgmr.msra.gmra.mxu1 %v11719_v49  ;;  %v5686_v14 = vand.u32 4294901760, %v5685_v60 }
 0x32c   :  { %10784 = vmatpush3.msra.mxu1 %v11724_v6  ;;  %10791 = vmatmul.mubr.f32.vlgmr.msra.gmra.mxu0 %v11719_v49 }
 0x32d   :  { %10799 = vmatpush3.msra.mxu0 %v11767_v27  ;;  %10793 = vmatprep.subr.mxu1 %v11724_v6  ;;  %v5687_v25 = vsub.f32 %v5685_v60, %v5686_v14 }
 0x32e   :  { %10808 = vmatprep.subr.mxu0 %v5186_v3  ;;  %10785 = vmatprep.mubr.f32.mxu1 %v4639_v45  ;;  %v11839_v45 = vand.u32 4294901760, %v6057_v62 }
 0x32f   :  { %10800 = vmatprep.mubr.f32.mxu0 %v5138_v57  ;;  %10786 = vmatmul.mubr.f32.vlgmr.msra.gmra.mxu1 %v4649_v50  ;;  %v6062_v50 = vsel %vm3052_vm4, %v11630_v63, 0  ;;  %v5688_v8 = vand.u32 4294901760, %v5687_v25 }
 0x330   :  { %10794 = vmatpush3.msra.mxu1 %v11724_v6  ;;  %10801 = vmatmul.mubr.f32.vlgmr.msra.gmra.mxu0 %v5148_v43  ;;  %v5636_v6 = vsub.f32 %v11814_v37, %v5635_v38  ;;  %v11857_v44 = vsub.f32 %v6057_v62, %v11839_v45 }
 0x331   :  { %10809 = vmatpush3.msra.mxu0 %v5186_v3  ;;  %10803 = vmatprep.subr.mxu1 %v5189_v32  ;;  %v11847_v3 = vand.u32 4294901760, %v6060_v11 }
 0x332   :  { %10818 = vmatprep.subr.mxu0 %v5187_v39  ;;  %10795 = vmatprep.mubr.f32.mxu1 %v11712_v13  ;;  %v5646_v13 = vsub.f32 %v11819_v54, %v5645_v19  ;;  %v5637_v63 = vand.u32 4294901760, %v5636_v6  ;;  %v6132_v42 = vand.u32 4294901760, %v11857_v44 }
 0x333   :  { %10810 = vmatprep.mubr.f32.mxu0 %v11772_v28  ;;  %10796 = vmatmul.mubr.f32.vlgmr.msra.gmra.mxu1 %v11719_v49  ;;  %v11852_v49 = vand.u32 4294901760, %v6062_v50  ;;  %v11862_v20 = vsub.f32 %v6060_v11, %v11847_v3  ;;  %v6559_v28 = vsel %vm3045_vm3, %v4557_v56, 0  ;;  %v7068_v56 = vld [vmem:[%s12745_s8 + $0x20] sm:$0xff] }
 0x334   :  { %10804 = vmatpush3.msra.mxu1 %v5189_v32  ;;  %10811 = vmatmul.mubr.f32.vlgmr.msra.gmra.mxu0 %v11777_v7  ;;  %v5647_v22 = vand.u32 4294901760, %v5646_v13 }
 0x335   :  { %10819 = vmatpush3.msra.mxu0 %v5187_v39  ;;  %10813 = vmatprep.subr.mxu1 %v11767_v27  ;;  %v4556_v39 = vld [vmem:[#allocation6 + $0x60] sm:$0xff]  ;;  %v6182_v57 = vsub.f32 %v6062_v50, %v11852_v49  ;;  %v6142_v43 = vand.u32 4294901760, %v11862_v20 }
 0x336   :  { %10828 = vmatprep.subr.mxu0 %v11809_v18  ;;  %10805 = vmatprep.mubr.f32.mxu1 %v11754_v53  ;;  %v6556_v21 = vsel %vm3045_vm3, %v4556_v39, 0 }
 0x337   :  { %10820 = vmatprep.mubr.f32.mxu0 %v11754_v53  ;;  %10806 = vmatmul.mubr.f32.vlgmr.msra.gmra.mxu1 %v11762_v48  ;;  %v6183_v7 = vand.u32 4294901760, %v6182_v57 }
 0x338   :  { %10814 = vmatpush3.msra.mxu1 %v11767_v27  ;;  %10821 = vmatmul.mubr.f32.vlgmr.msra.gmra.mxu0 %v11762_v48 }
 0x339   :  { %10829 = vmatpush3.msra.mxu0 %v11809_v18  ;;  %10823 = vmatprep.subr.mxu1 %v11767_v27  ;;  %v6184_v62 = vsub.f32 %v6182_v57, %v6183_v7 }
 0x33a   :  { %10838 = vmatprep.subr.mxu0 %v5685_v60  ;;  %10815 = vmatprep.mubr.f32.mxu1 %v5136_v4  ;;  %v11882_v4 = vand.u32 4294901760, %v6556_v21 }
 0x33b   :  { %10830 = vmatprep.mubr.f32.mxu0 %v5637_v63  ;;  %10816 = vmatmul.mubr.f32.vlgmr.msra.gmra.mxu1 %v5146_v29  ;;  %v6561_v29 = vsel %vm3052_vm4, %v6554_v61, 0  ;;  %v6185_v13 = vand.u32 4294901760, %v6184_v62  ;;  %v7064_v62 = vld [vmem:[%s12745_s8] sm:$0xff] }
 0x33c   :  { %10824 = vmatpush3.msra.mxu1 %v11767_v27  ;;  %10831 = vmatmul.mubr.f32.vlgmr.msra.gmra.mxu0 %v5647_v22  ;;  %v6133_v27 = vsub.f32 %v11857_v44, %v6132_v42  ;;  %v6630_v11 = vsub.f32 %v6556_v21, %v11882_v4  ;;  %v7069_v22 = vld [vmem:[%s12745_s8 + $0x28] sm:$0xff] }
 0x33d   :  { %10839 = vmatpush3.msra.mxu0 %v5685_v60  ;;  %10833 = vmatprep.subr.mxu1 %v5688_v8  ;;  %v11889_v60 = vand.u32 4294901760, %v6559_v28  ;;  %v11958_v39 = vand.u32 4294901760, %v7069_v22 }
 0x33e   :  { %10848 = vmatprep.subr.mxu0 %v5686_v14  ;;  %10825 = vmatprep.mubr.f32.mxu1 %v11754_v53  ;;  %v6143_v53 = vsub.f32 %v11862_v20, %v6142_v43  ;;  %v6134_v32 = vand.u32 4294901760, %v6133_v27  ;;  %v6631_v63 = vand.u32 4294901760, %v6630_v11 }
 0x33f   :  { %10840 = vmatprep.mubr.f32.mxu0 %v11814_v37  ;;  %10826 = vmatmul.mubr.f32.vlgmr.msra.gmra.mxu1 %v11762_v48  ;;  %v11894_v48 = vand.u32 4294901760, %v6561_v29  ;;  %12800 = vst [vmem:[#allocation24_spill] sm:$0xff] %v11958_v39  ;;  %v11975_v21 = vsub.f32 %v7069_v22, %v11958_v39 }
 0x340   :  { %10834 = vmatpush3.msra.mxu1 %v5688_v8  ;;  %10841 = vmatmul.mubr.f32.vlgmr.msra.gmra.mxu0 %v11819_v54  ;;  %v6144_v6 = vand.u32 4294901760, %v6143_v53  ;;  %v6632_v37 = vsub.f32 %v6630_v11, %v6631_v63 }
 0x341   :  { %10849 = vmatpush3.msra.mxu0 %v5686_v14  ;;  %10843 = vmatprep.subr.mxu1 %v11809_v18  ;;  %v6640_v14 = vsub.f32 %v6559_v28, %v11889_v60  ;;  %v6681_v50 = vsub.f32 %v6561_v29, %v11894_v48  ;;  %12803 = vst [vmem:[#allocation27_spill] sm:$0xff] %v11975_v21  ;;  %v7066_v28 = vld [vmem:[%s12745_s8 + $0x10] sm:$0xff]  ;;  %v7065_v29 = vld [vmem:[%s12745_s8 + $0x8] sm:$0xff] }
 0x342   :  { %10858 = vmatprep.subr.mxu0 %v11852_v49  ;;  %10835 = vmatprep.mubr.f32.mxu1 %v11797_v55 }
 0x343   :  { %10850 = vmatprep.mubr.f32.mxu0 %v11797_v55  ;;  %10836 = vmatmul.mubr.f32.vlgmr.msra.gmra.mxu1 %v11804_v36  ;;  %v6641_v25 = vand.u32 4294901760, %v6640_v14 }
 0x344   :  { %10844 = vmatpush3.msra.mxu1 %v11809_v18  ;;  %10851 = vmatmul.mubr.f32.vlgmr.msra.gmra.mxu0 %v11804_v36 }
 0x345   :  { %10859 = vmatpush3.msra.mxu0 %v11852_v49  ;;  %10853 = vmatprep.subr.mxu1 %v11809_v18  ;;  %v6642_v54 = vsub.f32 %v6640_v14, %v6641_v25 }
 0x346   :  { %10868 = vmatprep.subr.mxu0 %v6182_v57  ;;  %10845 = vmatprep.mubr.f32.mxu1 %v5635_v38  ;;  %v6682_v38 = vand.u32 4294901760, %v6681_v50 }
 0x347   :  { %10860 = vmatprep.mubr.f32.mxu0 %v6134_v32  ;;  %10846 = vmatmul.mubr.f32.vlgmr.msra.gmra.mxu1 %v5645_v19  ;;  %v12000_v32 = vand.u32 4294901760, %v7065_v29 }
 0x348   :  { %10854 = vmatpush3.msra.mxu1 %v11809_v18  ;;  %10861 = vmatmul.mubr.f32.vlgmr.msra.gmra.mxu0 %v6144_v6  ;;  %v6683_v18 = vsub.f32 %v6681_v50, %v6682_v38 }
 0x349   :  { %10869 = vmatpush3.msra.mxu0 %v6182_v57  ;;  %10863 = vmatprep.subr.mxu1 %v6185_v13  ;;  %v11967_v57 = vand.u32 4294901760, %v7068_v56  ;;  %12808 = vst [vmem:[#allocation32_spill] sm:$0xff] %v12000_v32 }
 0x34a   :  { %10878 = vmatprep.subr.mxu0 %v6183_v7  ;;  %10855 = vmatprep.mubr.f32.mxu1 %v11797_v55  ;;  %v6633_v55 = vand.u32 4294901760, %v6632_v37  ;;  %v6684_v19 = vand.u32 4294901760, %v6683_v18  ;;  %v12021_v37 = vsub.f32 %v7065_v29, %v12000_v32 }
 0x34b   :  { %10870 = vmatprep.mubr.f32.mxu0 %v11857_v44  ;;  %10856 = vmatmul.mubr.f32.vlgmr.msra.gmra.mxu1 %v11804_v36  ;;  %v6643_v36 = vand.u32 4294901760, %v6642_v54  ;;  %12802 = vst [vmem:[#allocation26_spill] sm:$0xff] %v11967_v57 }
 0x34c   :  { %10864 = vmatpush3.msra.mxu1 %v6185_v13  ;;  %10871 = vmatmul.mubr.f32.vlgmr.msra.gmra.mxu0 %v11862_v20  ;;  %12811 = vst [vmem:[#allocation35_spill] sm:$0xff] %v12021_v37 }
 0x34d   :  { %10879 = vmatpush3.msra.mxu0 %v6183_v7  ;;  %10873 = vmatprep.subr.mxu1 %v11852_v49  ;;  %v11985_v7 = vsub.f32 %v7068_v56, %v11967_v57 }
 0x34e   :  { %10888 = vmatprep.subr.mxu0 %v11894_v48  ;;  %10865 = vmatprep.mubr.f32.mxu1 %v11839_v45 }
 0x34f   :  { %10880 = vmatprep.mubr.f32.mxu0 %v11839_v45  ;;  %10866 = vmatmul.mubr.f32.vlgmr.msra.gmra.mxu1 %v11847_v3  ;;  %12805 = vst [vmem:[#allocation29_spill] sm:$0xff] %v11985_v7  ;;  %v12752_v6 = vand.u32 4294901760, %v11985_v7 }
 0x350   :  { %10874 = vmatpush3.msra.mxu1 %v11852_v49  ;;  %10881 = vmatmul.mubr.f32.vlgmr.msra.gmra.mxu0 %v11847_v3 }
 0x351   :  { %10889 = vmatpush3.msra.mxu0 %v11894_v48  ;;  %10883 = vmatprep.subr.mxu1 %v11852_v49  ;;  %v7219_v54 = vsub.f32 %v11985_v7, %v12752_v6 }
 0x352   :  { %10898 = vmatprep.subr.mxu0 %v6681_v50  ;;  %10875 = vmatprep.mubr.f32.mxu1 %v6132_v42  ;;  %v7067_v42 = vld [vmem:[%s12745_s8 + $0x18] sm:$0xff] }
 0x353   :  { %10890 = vmatprep.mubr.f32.mxu0 %v6633_v55  ;;  %10876 = vmatmul.mubr.f32.vlgmr.msra.gmra.mxu1 %v6142_v43  ;;  %v11977_v61 = vand.u32 4294901760, %v7067_v42 }
 0x354   :  { %10884 = vmatpush3.msra.mxu1 %v11852_v49  ;;  %10891 = vmatmul.mubr.f32.vlgmr.msra.gmra.mxu0 %v6643_v36  ;;  %v7070_v49 = vld [vmem:[%s12745_s8 + $0x30] sm:$0xff] }
 0x355   :  { %10899 = vmatpush3.msra.mxu0 %v6681_v50  ;;  %10893 = vmatprep.subr.mxu1 %v6684_v19  ;;  %v11950_v44 = vand.u32 4294901760, %v7070_v49  ;;  %12804 = vst [vmem:[#allocation28_spill] sm:$0xff] %v11977_v61  ;;  %v12013_v50 = vand.u32 4294901760, %v7064_v62 }
 0x356   :  { %10908 = vmatprep.subr.mxu0 %v6682_v38  ;;  %10885 = vmatprep.mubr.f32.mxu1 %v11839_v45  ;;  %v7071_v45 = vld [vmem:[%s12745_s8 + $0x38] sm:$0xff] }
 0x357   :  { %10900 = vmatprep.mubr.f32.mxu0 %v6630_v11  ;;  %10886 = vmatmul.mubr.f32.vlgmr.msra.gmra.mxu1 %v11847_v3  ;;  %v11945_v3 = vand.u32 4294901760, %v7071_v45  ;;  %12798 = vst [vmem:[#allocation22_spill] sm:$0xff] %v11950_v44  ;;  %v11965_v8 = vsub.f32 %v7070_v49, %v11950_v44  ;;  %12810 = vst [vmem:[#allocation34_spill] sm:$0xff] %v12013_v50  ;;  %v12029_v18 = vsub.f32 %v7064_v62, %v12013_v50 }
 0x358   :  { %10894 = vmatpush3.msra.mxu1 %v6684_v19  ;;  %10901 = vmatmul.mubr.f32.vlgmr.msra.gmra.mxu0 %v6640_v14  ;;  %v7220_v49 = vand.u32 4294901760, %v7219_v54 }
 0x359   :  { %10909 = vmatpush3.msra.mxu0 %v6682_v38  ;;  %10903 = vmatprep.subr.mxu1 %v11894_v48  ;;  %12797 = vst [vmem:[#allocation21_spill] sm:$0xff] %v11945_v3  ;;  %v11956_v20 = vsub.f32 %v7071_v45, %v11945_v3  ;;  %12801 = vst [vmem:[#allocation25_spill] sm:$0xff] %v11965_v8  ;;  %v12754_v27 = vand.u32 4294901760, %v11965_v8  ;;  %v12748_v45 = vand.u32 4294901760, %v12021_v37  ;;  %v12751_v56 = vand.u32 4294901760, %v12029_v18 }
 0x35a   :  { %10895 = vmatprep.mubr.f32.mxu1 %v11882_v4  ;;  %10910 = vmatprep.mubr.f32.mxu0 %v11882_v4  ;;  %12812 = vst [vmem:[#allocation36_spill] sm:$0xff] %v12029_v18 }
 0x35b   :  { %10896 = vmatmul.mubr.f32.vlgmr.msra.gmra.mxu1 %v11889_v60  ;;  %12799 = vst [vmem:[#allocation23_spill] sm:$0xff] %v11956_v20  ;;  %7104 = vmatprep.subr.mxu0 %v11945_v3  ;;  %v12755_v43 = vand.u32 4294901760, %v11956_v20  ;;  %v7207_v11 = vsub.f32 %v11965_v8, %v12754_v27 }
 0x35c   :  { %10904 = vmatpush3.msra.mxu1 %v11894_v48  ;;  %10905 = vmatprep.mubr.f32.mxu1 %v6631_v63 }
 0x35d   :  { %10913 = vmatprep.subr.mxu1 %v11894_v48  ;;  %10911 = vmatmul.mubr.f32.vlgmr.msra.gmra.mxu0 %v11889_v60  ;;  %v7201_v53 = vsub.f32 %v11956_v20, %v12755_v43  ;;  %v7208_v38 = vand.u32 4294901760, %v7207_v11 }
 0x35e   :  { %7151 = vmatprep.mubr.f32.mxu0 %v12756_v0  ;;  %7106 = vmatpush1.msra.mxu0 %v11950_v44 }
 0x35f   :  { %10906 = vmatmul.mubr.f32.vlgmr.msra.gmra.mxu1 %v6641_v25  ;;  %7108 = vmatprep.subr.mxu0 %v11958_v39  ;;  %v7202_v13 = vand.u32 4294901760, %v7201_v53  ;;  %v7243_v53 = vsub.f32 %v12029_v18, %v12751_v56 }
 0x360   :  { %10914 = vmatpush3.msra.mxu1 %v11894_v48  ;;  %10915 = vmatprep.mubr.f32.mxu1 %v11882_v4  ;;  %v11987_v4 = vand.u32 4294901760, %v7066_v28  ;;  %v11998_v48 = vsub.f32 %v7067_v42, %v11977_v61 }
 0x361   :  { %7110 = vmatpush1.msra.mxu0 %v11967_v57  ;;  %7203 = vmatprep.subr.mxu1 %v7202_v13  ;;  %v7244_v11 = vand.u32 4294901760, %v7243_v53 }
 0x362   :  { %12806 = vst [vmem:[#allocation30_spill] sm:$0xff] %v11987_v4  ;;  %12807 = vst [vmem:[#allocation31_spill] sm:$0xff] %v11998_v48  ;;  %7112 = vmatprep.subr.mxu0 %v11977_v61  ;;  %v12011_v14 = vsub.f32 %v7066_v28, %v11987_v4  ;;  %v12750_v25 = vand.u32 4294901760, %v11998_v48  ;;  %v7237_v28 = vsub.f32 %v12021_v37, %v12748_v45 }
 0x363   :  { %10916 = vmatmul.mubr.f32.vlgmr.msra.gmra.mxu1 %v11889_v60  ;;  %v12753_v60 = vand.u32 4294901760, %v11975_v21  ;;  %7114 = vmatpush1.msra.mxu0 %v11987_v4 }
 0x364   :  { %7278 = vmatprep.mubr.f32.mxu1 %v12756_v0  ;;  %12809 = vst [vmem:[#allocation33_spill] sm:$0xff] %v12011_v14  ;;  %7116 = vmatprep.subr.mxu0 %v12000_v32  ;;  %v12749_v55 = vand.u32 4294901760, %v12011_v14  ;;  %v7225_v19 = vsub.f32 %v11998_v48, %v12750_v25  ;;  %v7238_v62 = vand.u32 4294901760, %v7237_v28 }
 0x365   :  { %v7213_v63 = vsub.f32 %v11975_v21, %v12753_v60  ;;  %7118 = vmatpush1.msra.mxu0 %v12013_v50  ;;  %7209 = vmatpush1.msra.mxu1 %v7208_v38 }
 0x366   :  { %7319 = vmatprep.subr.mxu0 %v11956_v20  ;;  %v7231_v22 = vsub.f32 %v12011_v14, %v12749_v55  ;;  %v7226_v42 = vand.u32 4294901760, %v7225_v19 }
 0x367   :  { %v7214_v36 = vand.u32 4294901760, %v7213_v63 }
 0x368   :  { %v7232_v29 = vand.u32 4294901760, %v7231_v22 }
 0x369   :  { %7215 = vmatprep.subr.mxu1 %v7214_v36 }
 0x36a   :  { %7221 = vmatpush1.msra.mxu1 %v7220_v49 }
 0x36b   :  { %7227 = vmatprep.subr.mxu1 %v7226_v42 }
 0x36c   :  { %7233 = vmatpush1.msra.mxu1 %v7232_v29 }
 0x36d   :  { %7239 = vmatprep.subr.mxu1 %v7238_v62 }
 0x36e   :  { %7245 = vmatpush1.msra.mxu1 %v7244_v11 }
 0x36f   :  { %7415 = vmatprep.subr.mxu1 %v11945_v3 }
 0x3bf   :  { %v10682_v13 = vpop.f32.mrf.mxu0 }
 0x3c1   :  { %v3127_v63 = vpop.f32.mrf.mxu0 }
 0x3c3   :  { %v10692_v38 = vpop.f32.mrf.mxu0 }
 0x3c5   :  { %v3293_v54 = vpop.f32.mrf.mxu0 }
 0x3c7   :  { %v10687_v36 = vpop.f32.mrf.mxu1 }
 0x3c8   :  { %v3220_v19 = vadd.f32 %v10687_v36, %v10682_v13  ;;  %v10702_v49 = vpop.f32.mrf.mxu0 }
 0x3c9   :  { %v3213_v22 = vpop.f32.mrf.mxu1 }
 0x3ca   :  { %v3214_v45 = vadd.f32 %v3213_v22, %v3127_v63  ;;  %v3456_v55 = vpop.f32.mrf.mxu0  ;;  %v3301_v25 = vadd.f32 %v10692_v38, %v3220_v19 }
 0x3cb   :  { %v10697_v56 = vpop.f32.mrf.mxu1 }
 0x3cc   :  { %v3383_v42 = vadd.f32 %v10697_v56, %v3301_v25  ;;  %v10712_v28 = vpop.f32.mrf.mxu0  ;;  %v3294_v29 = vadd.f32 %v3293_v54, %v3214_v45 }
 0x3cd   :  { %v3374_v53 = vpop.f32.mrf.mxu1 }
 0x3ce   :  { %v3375_v62 = vadd.f32 %v3374_v53, %v3294_v29  ;;  %v12048_v11 = vpop.f32.mrf.mxu0  ;;  %v3463_v6 = vadd.f32 %v10702_v49, %v3383_v42 }
 0x3cf   :  { %v10707_v60 = vpop.f32.mrf.mxu1 }
 0x3d0   :  { %v3541_v27 = vadd.f32 %v10707_v60, %v3463_v6  ;;  %v10722_v43 = vpop.f32.mrf.mxu0  ;;  %v3457_v0 = vadd.f32 %v3456_v55, %v3375_v62 }
 0x3d1   :  { %v3534_v20 = vpop.f32.mrf.mxu1 }
 0x3d2   :  { %v12050_v13 = vadd.f32 %v3534_v20, %v3457_v0  ;;  %v12052_v36 = vpop.f32.mrf.mxu0 }
 0x3d3   :  { %v10717_v63 = vpop.f32.mrf.mxu1 }
 0x3d4   :  { %12813 = vst [vmem:[#allocation37_spill] sm:$0xff] %v12050_v13  ;;  %v3725_v38 = vadd.f32 %v10717_v63, %v10712_v28  ;;  %v10732_v19 = vpop.f32.mrf.mxu0 }
 0x3d5   :  { %v3718_v25 = vpop.f32.mrf.mxu1 }
 0x3d6   :  { %v12054_v56 = vpop.f32.mrf.mxu0  ;;  %v3806_v45 = vadd.f32 %v10722_v43, %v3725_v38 }
 0x3d7   :  { %v10727_v54 = vpop.f32.mrf.mxu1 }
 0x3d8   :  { %v3888_v22 = vadd.f32 %v10727_v54, %v3806_v45  ;;  %v10742_v29 = vpop.f32.mrf.mxu0 }
 0x3d9   :  { %v12056_v49 = vpop.f32.mrf.mxu1 }
 0x3da   :  { %v4138_v60 = vpop.f32.mrf.mxu0  ;;  %v3968_v6 = vadd.f32 %v10732_v19, %v3888_v22 }
 0x3db   :  { %v10737_v55 = vpop.f32.mrf.mxu1 }
 0x3dc   :  { %v4046_v42 = vadd.f32 %v10737_v55, %v3968_v6  ;;  %v10752_v0 = vpop.f32.mrf.mxu0 }
 0x3dd   :  { %v12058_v20 = vpop.f32.mrf.mxu1 }
 0x3de   :  { %v4304_v53 = vpop.f32.mrf.mxu0 }
 0x3df   :  { %v10747_v62 = vpop.f32.mrf.mxu1 }
 0x3e0   :  { %v12060_v28 = vpop.f32.mrf.mxu0 }
 0x3e1   :  { %v4224_v63 = vpop.f32.mrf.mxu1 }
 0x3e2   :  { %v12062_v18 = vpop.f32.mrf.mxu0 }
 0x3e3   :  { %v10757_v43 = vpop.f32.mrf.mxu1 }
 0x3e4   :  { %v10772_v38 = vpop.f32.mrf.mxu0 }
 0x3e5   :  { %v4385_v45 = vpop.f32.mrf.mxu1 }
 0x3e6   :  { %v4643_v54 = vpop.f32.mrf.mxu0 }
 0x3e7   :  { %v12064_v37 = vpop.f32.mrf.mxu1 }
 0x3e8   :  { %v12066_v14 = vpop.f32.mrf.mxu0 }
 0x3e9   :  { %v12068_v19 = vpop.f32.mrf.mxu1 }
 0x3ea   :  { %v12070_v22 = vpop.f32.mrf.mxu0 }
 0x3eb   :  { %v10777_v6 = vpop.f32.mrf.mxu1 }
 0x3ec   :  { %v12072_v55 = vpop.f32.mrf.mxu0 }
 0x3ed   :  { %v4729_v48 = vpop.f32.mrf.mxu1 }
 0x3ee   :  { %v12074_v7 = vpop.f32.mrf.mxu0 }
 0x3ef   :  { %12814 = vst [vmem:[#allocation38_spill] sm:$0xff] %v12074_v7  ;;  %v12076_v21 = vpop.f32.mrf.mxu1  ;;  %v3719_v7 = vadd.f32 %v3718_v25, %v12048_v11 }
 0x3f0   :  { %v10802_v8 = vpop.f32.mrf.mxu0 }
 0x3f1   :  { %v12078_v3 = vpop.f32.mrf.mxu1  ;;  %v5151_v1 = vadd.f32 %v10802_v8, %v3541_v27 }
 0x3f2   :  { %v12080_v50 = vpop.f32.mrf.mxu0 }
 0x3f3   :  { %12815 = vst [vmem:[#allocation39_spill] sm:$0xff] %v12080_v50  ;;  %v12082_v32 = vpop.f32.mrf.mxu1  ;;  %v3799_v50 = vadd.f32 %v12052_v36, %v3719_v7 }
 0x3f4   :  { %12816 = vst [vmem:[#allocation40_spill] sm:$0xff] %v12082_v32  ;;  %v10812_v4 = vpop.f32.mrf.mxu0 }
 0x3f5   :  { %v12084_v61 = vpop.f32.mrf.mxu1 }
 0x3f6   :  { %12817 = vst [vmem:[#allocation41_spill] sm:$0xff] %v12084_v61  ;;  %v12086_v57 = vpop.f32.mrf.mxu0 }
 0x3f7   :  { %12818 = vst [vmem:[#allocation42_spill] sm:$0xff] %v12086_v57  ;;  %v10807_v39 = vpop.f32.mrf.mxu1  ;;  %v735_v57 = vadd.f32 %v11567_v16, %v11563_v10 }
 0x3f8   :  { %v10822_v44 = vpop.f32.mrf.mxu0  ;;  %v5233_v9 = vadd.f32 %v10807_v39, %v5151_v1  ;;  %v4225_v39 = vadd.f32 %v4224_v63, %v4138_v60 }
 0x3f9   :  { %v12088_v33 = vpop.f32.mrf.mxu1  ;;  %v815_v34 = vadd.f32 %v11565_v12, %v735_v57  ;;  %v3880_v12 = vadd.f32 %v12056_v49, %v3799_v50 }
 0x3fa   :  { %12819 = vst [vmem:[#allocation43_spill] sm:$0xff] %v12088_v33  ;;  %v12090_v30 = vpop.f32.mrf.mxu0  ;;  %v4231_v33 = vadd.f32 %v10747_v62, %v10742_v29  ;;  %v5314_v8 = vadd.f32 %v10812_v4, %v5233_v9  ;;  %v4305_v25 = vadd.f32 %v4304_v53, %v4225_v39  ;;  %v4736_v29 = vadd.f32 %v10777_v6, %v10772_v38 }
 0x3fb   :  { %12820 = vst [vmem:[#allocation44_spill] sm:$0xff] %v12090_v30  ;;  %v10817_v52 = vpop.f32.mrf.mxu1  ;;  %v1319_v30 = vadd.f32 %v11577_v23, %v1239_v15  ;;  %v3962_v53 = vadd.f32 %v12054_v56, %v3880_v12 }
 0x3fc   :  { %v10832_v58 = vpop.f32.mrf.mxu0  ;;  %v4312_v10 = vadd.f32 %v10752_v0, %v4231_v33  ;;  %v5396_v16 = vadd.f32 %v10817_v52, %v5314_v8 }
 0x3fd   :  { %v12094_v47 = vpop.f32.mrf.mxu1  ;;  %v5650_v2 = vadd.f32 %v10832_v58, %v4046_v42  ;;  %v1400_v9 = vadd.f32 %v11583_v40, %v1319_v30  ;;  %v896_v58 = vadd.f32 %v11571_v24, %v815_v34  ;;  %v4386_v40 = vadd.f32 %v4385_v45, %v4305_v25  ;;  %v12824_v25 = vld [vmem:[#allocation16_spill] sm:$0xff] }
 0x3fe   :  { %12821 = vst [vmem:[#allocation45_spill] sm:$0xff] %v12094_v47  ;;  %v12096_v32 = vpop.f32.mrf.mxu0  ;;  %v4394_v57 = vadd.f32 %v10757_v43, %v4312_v10  ;;  %v5476_v42 = vadd.f32 %v10822_v44, %v5396_v16  ;;  %v4817_v24 = vadd.f32 %v12066_v14, %v4736_v29  ;;  %v4040_v45 = vadd.f32 %v12058_v20, %v3962_v53  ;;  %v12823_v10 = vld [vmem:[#allocation39_spill] sm:$0xff] }
 0x3ff   :  { %v10827_v61 = vpop.f32.mrf.mxu1 }
 0x400   :  { %v10842_v27 = vpop.f32.mrf.mxu0  ;;  %v4474_v50 = vadd.f32 %v12060_v28, %v4394_v57  ;;  %v5554_v44 = vadd.f32 %v10827_v61, %v5476_v42  ;;  %v4899_v28 = vadd.f32 %v12076_v21, %v4817_v24  ;;  %v12828_v42 = vld [vmem:[#allocation40_spill] sm:$0xff]  ;;  %v12831_v24 = vld [vmem:[#allocation42_spill] sm:$0xff] }
 0x401   :  { %v12102_v1 = vpop.f32.mrf.mxu1 }
 0x402   :  { %v12104_v26 = vpop.f32.mrf.mxu0  ;;  %v4979_v20 = vadd.f32 %v12072_v55, %v4899_v28 }
 0x403   :  { %v10837_v47 = vpop.f32.mrf.mxu1 }
 0x404   :  { %v5732_v13 = vadd.f32 %v10837_v47, %v5650_v2  ;;  %v10852_v11 = vpop.f32.mrf.mxu0  ;;  %v1482_v47 = vadd.f32 %v11581_v35, %v1400_v9  ;;  %v4730_v2 = vadd.f32 %v4729_v48, %v4643_v54  ;;  %v4468_v48 = vadd.f32 %v12062_v18, %v4386_v40  ;;  %v12829_v40 = vld [vmem:[#allocation18_spill] sm:$0xff] }
 0x405   :  { %v5725_v4 = vpop.f32.mrf.mxu1 }
 0x406   :  { %v12109_v23 = vpop.f32.mrf.mxu0  ;;  %v5813_v15 = vadd.f32 %v10842_v27, %v5732_v13  ;;  %v978_v13 = vadd.f32 %v11569_v17, %v896_v58  ;;  %v1560_v35 = vadd.f32 %v11587_v46, %v1482_v47  ;;  %v4810_v43 = vadd.f32 %v12070_v22, %v4730_v2 }
 0x407   :  { %v10847_v60 = vpop.f32.mrf.mxu1  ;;  %v4552_v46 = vadd.f32 %v12064_v37, %v4474_v50  ;;  %v4546_v8 = vadd.f32 %v12068_v19, %v4468_v48  ;;  %v12822_v37 = vld [vmem:[#allocation37_spill] sm:$0xff] }
 0x408   :  { %v5895_v7 = vadd.f32 %v10847_v60, %v5813_v15  ;;  %v10862_v33 = vpop.f32.mrf.mxu0  ;;  %v1056_v14 = vadd.f32 %v11575_v31, %v978_v13  ;;  %v2146_v56 = vadd.f32 %v11597_v59, %v1560_v35  ;;  %v4891_v27 = vadd.f32 %v12078_v3, %v4810_v43  ;;  %v12825_v3 = vld [vmem:[#allocation38_spill] sm:$0xff] }
 0x409   :  { %v12114_v52 = vpop.f32.mrf.mxu1  ;;  %v5640_v31 = vadd.f32 %v12096_v32, %v4040_v45  ;;  %v6147_v59 = vadd.f32 %v10862_v33, %v4552_v46  ;;  %v5141_v16 = vadd.f32 %v12823_v10, %v12822_v37  ;;  %v12826_v32 = vld [vmem:[#allocation43_spill] sm:$0xff]  ;;  %v12834_v45 = vld [vmem:[#allocation45_spill] sm:$0xff] }
 0x40a   :  { %v6136_v30 = vpop.f32.mrf.mxu0  ;;  %v5975_v36 = vadd.f32 %v10852_v11, %v5895_v7  ;;  %v1648_v6 = vadd.f32 %v11585_v41, %v1056_v14  ;;  %v2232_v18 = vadd.f32 %v11603_v5, %v2146_v56  ;;  %v4973_v58 = vadd.f32 %v12825_v3, %v4891_v27  ;;  %v12836_v37 = vld [vmem:[#allocation19_spill] sm:$0xff] }
 0x40b   :  { %v10857_v0 = vpop.f32.mrf.mxu1  ;;  %v5726_v41 = vadd.f32 %v5725_v4, %v5640_v31  ;;  %v6137_v11 = vadd.f32 %v6136_v30, %v4546_v8  ;;  %v5227_v29 = vadd.f32 %v12826_v32, %v5141_v16  ;;  %v5057_v7 = vadd.f32 %v12828_v42, %v4979_v20  ;;  %v12835_v8 = vld [vmem:[#allocation13_spill] sm:$0xff] }
 0x40c   :  { %v6053_v49 = vadd.f32 %v10857_v0, %v5975_v36  ;;  %v10872_v62 = vpop.f32.mrf.mxu0  ;;  %v1734_v21 = vadd.f32 %v11591_v51, %v1648_v6  ;;  %v2312_v19 = vadd.f32 %v12824_v25, %v2232_v18  ;;  %v12827_v51 = vld [vmem:[#allocation12_spill] sm:$0xff]  ;;  %v12830_v36 = vld [vmem:[#allocation41_spill] sm:$0xff] }
 0x40d   :  { %v12121_v63 = vpop.f32.mrf.mxu1  ;;  %v5806_v33 = vadd.f32 %v12104_v26, %v5726_v41  ;;  %v5051_v13 = vadd.f32 %v12830_v36, %v4973_v58  ;;  %v5307_v0 = vadd.f32 %v12831_v24, %v5227_v29  ;;  %v90_v41 = vld [vmem:[%s12737_s0] sm:$0xff] }
 0x40e   :  { %v12125_v38 = vadd.f32 %v6053_v49, %v5554_v44  ;;  %v6302_v17 = vpop.f32.mrf.mxu0  ;;  %v1814_v57 = vadd.f32 %v12827_v51, %v1734_v21  ;;  %v2393_v2 = vadd.f32 %v12829_v40, %v2312_v19  ;;  %v12832_v44 = vld [vmem:[#allocation14_spill] sm:$0xff]  ;;  %v92_v51 = vmul.f32 0.15595986, %v90_v41 }
 0x40f   :  { %v10867_v61 = vpop.f32.mrf.mxu1  ;;  %v5887_v43 = vadd.f32 %v12114_v52, %v5806_v33  ;;  %v5388_v46 = vadd.f32 %v12834_v45, %v5307_v0 }
 0x410   :  { %v10882_v54 = vpop.f32.mrf.mxu0  ;;  %v6229_v5 = vadd.f32 %v10867_v61, %v6147_v59  ;;  %v1895_v49 = vadd.f32 %v12832_v44, %v1814_v57  ;;  %v91_v59 = vld [vmem:[%s12737_s0 + $0x8] sm:$0xff] }
 0x411   :  { %v6222_v22 = vpop.f32.mrf.mxu1  ;;  %v5969_v52 = vadd.f32 %v12109_v23, %v5887_v43  ;;  %v93_v58 = vmul.f32 0.15595986, %v91_v59  ;;  %v12842_v43 = vld [vmem:[#allocation24_spill] sm:$0xff]  ;;  %v12853_v59 = vld [vmem:[#allocation33_spill] sm:$0xff] }
 0x412   :  { %v6465_v39 = vpop.f32.mrf.mxu0  ;;  %v6223_v60 = vadd.f32 %v6222_v22, %v6137_v11  ;;  %v6310_v4 = vadd.f32 %v10872_v62, %v6229_v5  ;;  %v12833_v62 = vld [vmem:[#allocation17_spill] sm:$0xff]  ;;  %v1977_v27 = vadd.f32 %v12835_v8, %v1895_v49  ;;  %v12837_v11 = vld [vmem:[#allocation44_spill] sm:$0xff]  ;;  %v12850_v8 = vld [vmem:[#allocation27_spill] sm:$0xff] }
 0x413   :  { %v10877_v34 = vpop.f32.mrf.mxu1  ;;  %v2475_v28 = vadd.f32 %v12833_v62, %v2393_v2  ;;  %v5470_v5 = vadd.f32 %v12837_v11, %v5388_v46  ;;  %v12847_v46 = vld [vmem:[#allocation34_spill] sm:$0xff]  ;;  %v12862_v11 = vand.u32 4294901760, %v12853_v59 }
 0x414   :  { %v10892_v9 = vpop.f32.mrf.mxu0  ;;  %v6303_v50 = vadd.f32 %v6302_v17, %v6223_v60  ;;  %v6392_v14 = vadd.f32 %v10877_v34, %v6310_v4 }
 0x415   :  { %v6383_v15 = vpop.f32.mrf.mxu1  ;;  %v6646_v53 = vadd.f32 %v10892_v9, %v5057_v7  ;;  %v2553_v10 = vadd.f32 %v12836_v37, %v2475_v28  ;;  %v5548_v7 = vadd.f32 %v12102_v1, %v5470_v5  ;;  %v12845_v28 = vld [vmem:[#allocation30_spill] sm:$0xff] }
 0x416   :  { %v6635_v12 = vpop.f32.mrf.mxu0  ;;  %v6384_v6 = vadd.f32 %v6383_v15, %v6303_v50  ;;  %v6472_v21 = vadd.f32 %v10882_v54, %v6392_v14  ;;  %v12838_v15 = vld [vmem:[#allocation15_spill] sm:$0xff]  ;;  %v6047_v54 = vadd.f32 %v12121_v63, %v5969_v52  ;;  %v12843_v14 = vld [vmem:[#allocation26_spill] sm:$0xff] }
 0x417   :  { %v10887_v55 = vpop.f32.mrf.mxu1  ;;  %v6636_v56 = vadd.f32 %v6635_v12, %v5051_v13  ;;  %v2055_v3 = vadd.f32 %v12838_v15, %v1977_v27  ;;  %v12854_v52 = vld [vmem:[#allocation35_spill] sm:$0xff] }
 0x418   :  { %v10902_v47 = vpop.f32.mrf.mxu0  ;;  %v6466_v9 = vadd.f32 %v6465_v39, %v6384_v6  ;;  %v6550_v29 = vadd.f32 %v10887_v55, %v6472_v21  ;;  %v7052_v2 = vadd.f32 %v6047_v54, %v5548_v7  ;;  %v12855_v21 = vld [vmem:[#allocation36_spill] sm:$0xff]  ;;  %v12863_v5 = vand.u32 4294901760, %v12854_v52 }
 0x419   :  { %v6543_v30 = vpop.f32.mrf.mxu1  ;;  %v2562_v57 = vadd.f32 %v2553_v10, %v2055_v3  ;;  %v12859_v10 = vand.u32 4294901760, %v12850_v8 }
 0x41a   :  { %v6801_v48 = vpop.f32.mrf.mxu0  ;;  %v6544_v33 = vadd.f32 %v6543_v30, %v6466_v9  ;;  %v12840_v30 = vld [vmem:[#allocation22_spill] sm:$0xff]  ;;  %v12864_v9 = vand.u32 4294901760, %v12855_v21 }
 0x41b   :  { %v10897_v35 = vpop.f32.mrf.mxu1  ;;  %v2564_v24 = vadd.f32 %v2562_v57, %v92_v51  ;;  %v10126_v51 = vld [vmem:[%s12744_s7 + $0x20] sm:$0xff] }
 0x41c   :  { %v6728_v26 = vadd.f32 %v10897_v35, %v6646_v53 }
 0x41d   :  { %v6721_v61 = vpop.f32.mrf.mxu1  ;;  %v10912_v31 = vpop.f32.mrf.mxu0 }
 0x41e   :  { %v6809_v18 = vadd.f32 %v10902_v47, %v6728_v26  ;;  %v6722_v22 = vadd.f32 %v6721_v61, %v6636_v56  ;;  %v12839_v47 = vld [vmem:[#allocation20_spill] sm:$0xff] }
 0x41f   :  { %v10907_v17 = vpop.f32.mrf.mxu1  ;;  %v6964_v32 = vpop.f32.mrf.mxu0  ;;  %v2565_v40 = vadd.f32 %v12839_v47, %v93_v58  ;;  %v12844_v26 = vld [vmem:[#allocation28_spill] sm:$0xff] }
 0x420   :  { %v6802_v20 = vadd.f32 %v6801_v48, %v6722_v22  ;;  %v6891_v34 = vadd.f32 %v10907_v17, %v6809_v18  ;;  %v12841_v48 = vmov 0.0   ;;  %v12846_v61 = vld [vmem:[#allocation32_spill] sm:$0xff]  ;;  %v12848_v18 = vld [vmem:[#allocation21_spill] sm:$0xff] }
 0x421   :  { %v6882_v16 = vpop.f32.mrf.mxu1  ;;  %v12849_v22 = vld [vmem:[#allocation25_spill] sm:$0xff] }
 0x422   :  { %v6971_v25 = vadd.f32 %v10912_v31, %v6891_v34  ;;  %v6883_v19 = vadd.f32 %v6882_v16, %v6802_v20  ;;  %v12851_v17 = vld [vmem:[#allocation29_spill] sm:$0xff]  ;;  %v12852_v31 = vld [vmem:[#allocation31_spill] sm:$0xff]  ;;  %v12858_v37 = vand.u32 4294901760, %v12849_v22 }
 0x423   :  { %v10917_v23 = vpop.f32.mrf.mxu1  ;;  %v12856_v20 = vld [vmem:[#allocation23_spill] sm:$0xff]  ;;  %v12860_v16 = vand.u32 4294901760, %v12851_v17  ;;  %v12861_v41 = vand.u32 4294901760, %v12852_v31 }
 0x424   :  { %v6965_v60 = vadd.f32 %v6964_v32, %v6883_v19  ;;  %v7049_v12 = vadd.f32 %v10917_v23, %v6971_v25  ;;  %v12857_v34 = vand.u32 4294901760, %v12856_v20  ;;  %v10129_v20 = vld [vmem:[%s12744_s7 + $0x38] sm:$0xff] }
 0x425   :  { %v7042_v42 = vpop.f32.mrf.mxu1 }
 0x426   :  { %v7055_v4 = vadd.f32 %v7049_v12, %v6550_v29  ;;  %v7043_v39 = vadd.f32 %v7042_v42, %v6965_v60  ;;  %v7689_v42 = vsel %vm97_vm1, %v10126_v51, 0 }
 0x427   :  { %v12221_v7 = vand.u32 4294901760, %v7689_v42 }
 0x428   :  { %v7057_v36 = vadd.f32 %v7055_v4, %v12125_v38  ;;  %v7054_v13 = vadd.f32 %v7043_v39, %v6544_v33 }
 0x429   :  { %v12224_v47 = vsub.f32 %v7689_v42, %v12221_v7 }
 0x42a   :  { %v7059_v63 = vadd.f32 %v7057_v36, %v2565_v40  ;;  %v7056_v55 = vadd.f32 %v7054_v13, %v7052_v2 }
 0x42b   :  { %v7769_v13 = vand.u32 4294901760, %v12224_v47 }
 0x42c   :  { %v7058_v0 = vadd.f32 %v7056_v55, %v2564_v24  ;;  %v7077_v53 = vsel %vm7072_vm5, %v7059_v63, 0 }
 0x42d   :  { %v7163_v50 = vand.u32 4294901760, %v7077_v53 }
 0x42e   :  { %v7074_v44 = vsel %vm7072_vm5, %v7058_v0, 0 }
 0x42f   :  { %v7152_v49 = vand.u32 4294901760, %v7074_v44  ;;  %v7164_v35 = vsub.f32 %v7077_v53, %v7163_v50  ;;  %v7770_v53 = vsub.f32 %v12224_v47, %v7769_v13 }
 0x431   :  { %v7153_v1 = vsub.f32 %v7074_v44, %v7152_v49  ;;  %7280 = vmatmul.mubr.f32.vlgmr.msra.gmra.mxu1 %v7152_v49  ;;  %v7165_v56 = vand.u32 4294901760, %v7164_v35 }
 0x432   :  { %7417 = vmatpush1.msra.mxu1 %v12840_v30  ;;  %7285 = vmatprep.mubr.f32.mxu1 %v12841_v48 }
 0x433   :  { %7419 = vmatprep.subr.mxu1 %v12842_v43  ;;  %v7154_v38 = vand.u32 4294901760, %v7153_v1  ;;  %v7166_v6 = vsub.f32 %v7164_v35, %v7165_v56 }
 0x434   :  { %7421 = vmatpush1.msra.mxu1 %v12843_v14 }
 0x435   :  { %7287 = vmatmul.mubr.f32.gmra.mxu1 %v7163_v50  ;;  %7423 = vmatprep.subr.mxu1 %v12844_v26  ;;  %v7155_v62 = vsub.f32 %v7153_v1, %v7154_v38  ;;  %v7167_v27 = vand.u32 4294901760, %v7166_v6 }
 0x436   :  { %7425 = vmatpush1.msra.mxu1 %v12845_v28  ;;  %7462 = vmatprep.mubr.f32.mxu1 %v12841_v48 }
 0x437   :  { %7427 = vmatprep.subr.mxu1 %v12846_v61  ;;  %v7156_v45 = vand.u32 4294901760, %v7155_v62 }
 0x438   :  { %7429 = vmatpush1.msra.mxu1 %v12847_v46 }
 0x439   :  { %7157 = vmatmul.mubr.f32.vlgmr.msra.gmra.mxu0 %v7156_v45  ;;  %7466 = vmatmul.mubr.f32.vlgmr.msra.gmra.mxu1 %v7154_v38 }
 0x43a   :  { %7609 = vmatprep.subr.mxu1 %v12848_v18  ;;  %7322 = vmatpush1.msra.mxu0 %v12849_v22 }
 0x43b   :  { %7611 = vmatpush1.msra.mxu1 %v12840_v30  ;;  %7325 = vmatprep.subr.mxu0 %v12850_v8 }
 0x43c   :  { %7613 = vmatprep.subr.mxu1 %v12842_v43  ;;  %7162 = vmatprep.mubr.f32.mxu0 %v12841_v48 }
 0x43d   :  { %7328 = vmatpush1.msra.mxu0 %v12851_v17  ;;  %7471 = vmatprep.mubr.f32.mxu1 %v12841_v48 }
 0x43e   :  { %7615 = vmatpush1.msra.mxu1 %v12843_v14  ;;  %7168 = vmatmul.mubr.f32.gmra.mxu0 %v7167_v27 }
 0x43f   :  { %7331 = vmatprep.subr.mxu0 %v12852_v31  ;;  %7475 = vmatmul.mubr.f32.gmra.mxu1 %v7165_v56  ;;  %v10127_v31 = vld [vmem:[%s12744_s7 + $0x28] sm:$0xff] }
 0x440   :  { %7617 = vmatprep.subr.mxu1 %v12844_v26  ;;  %7334 = vmatpush1.msra.mxu0 %v12853_v59  ;;  %v10128_v59 = vld [vmem:[%s12744_s7 + $0x30] sm:$0xff] }
 0x441   :  { %7619 = vmatpush1.msra.mxu1 %v12845_v28  ;;  %7337 = vmatprep.subr.mxu0 %v12854_v52  ;;  %v7692_v52 = vsel %vm97_vm1, %v10127_v31, 0 }
 0x442   :  { %7621 = vmatprep.subr.mxu1 %v12846_v61  ;;  %7340 = vmatpush1.msra.mxu0 %v12855_v21  ;;  %v7695_v21 = vsel %vm97_vm1, %v10128_v59, 0 }
 0x443   :  { %7373 = vmatprep.mubr.f32.mxu0 %v12841_v48  ;;  %7623 = vmatpush1.msra.mxu1 %v12847_v46 }
 0x444   :  { %7656 = vmatprep.mubr.f32.mxu1 %v12841_v48  ;;  %7376 = vmatmul.mubr.f32.vlgmr.msra.gmra.mxu0 %v7153_v1  ;;  %v7771_v1 = vand.u32 4294901760, %v7770_v53 }
 0x445   :  { %7508 = vmatprep.subr.mxu0 %v12857_v34  ;;  %7658 = vmatmul.mubr.f32.vlgmr.msra.gmra.mxu1 %v7152_v49  ;;  %v12258_v34 = vand.u32 4294901760, %v7692_v52 }
 0x446   :  { %7512 = vmatpush1.msra.mxu0 %v12858_v37  ;;  %7381 = vmatprep.mubr.f32.mxu0 %v12841_v48  ;;  %v12260_v37 = vand.u32 4294901760, %v7695_v21 }
 0x447   :  { %7516 = vmatprep.subr.mxu0 %v12859_v10  ;;  %7663 = vmatprep.mubr.f32.mxu1 %v12841_v48  ;;  %v7698_v10 = vsel %vm97_vm1, %v10129_v20, 0 }
 0x448   :  { %7520 = vmatpush1.msra.mxu0 %v12860_v16  ;;  %v12264_v16 = vsub.f32 %v7692_v52, %v12258_v34 }
 0x449   :  { %7384 = vmatmul.mubr.f32.gmra.mxu0 %v7164_v35  ;;  %7524 = vmatprep.subr.mxu0 %v12861_v41  ;;  %v12266_v41 = vand.u32 4294901760, %v7698_v10 }
 0x44a   :  { %7665 = vmatmul.mubr.f32.gmra.mxu1 %v7163_v50  ;;  %7528 = vmatpush1.msra.mxu0 %v12862_v11  ;;  %v12269_v11 = vsub.f32 %v7695_v21, %v12260_v37 }
 0x44b   :  { %7532 = vmatprep.subr.mxu0 %v12863_v5  ;;  %7569 = vmatprep.mubr.f32.mxu0 %v12841_v48  ;;  %v7779_v5 = vand.u32 4294901760, %v12264_v16 }
 0x44c   :  { %7536 = vmatpush1.msra.mxu0 %v12864_v9  ;;  %10932 = vmatprep.mubr.f32.mxu1 %v12221_v7  ;;  %v12273_v9 = vsub.f32 %v7698_v10, %v12266_v41 }
 0x44d   :  { %7571 = vmatmul.mubr.f32.vlgmr.msra.gmra.mxu0 %v7152_v49 }
 0x44e   :  { %7576 = vmatprep.mubr.f32.mxu0 %v12841_v48 }
 0x451   :  { %7578 = vmatmul.mubr.f32.gmra.mxu0 %v7163_v50 }
 0x452   :  { %10922 = vmatprep.mubr.f32.mxu0 %v7771_v1  ;;  %v10137_v1 = vld [vmem:[%s12744_s7 + $0x78] sm:$0xff] }
 0x4f1   :  { %v7281_v25 = vpop.f32.mrf.mxu1 }
 0x4f3   :  { %v7283_v19 = vpop.f32.mrf.mxu1 }
 0x4f5   :  { %v7288_v15 = vpop.f32.mrf.mxu1 }
 0x4f7   :  { %v7290_v3 = vpop.f32.mrf.mxu1 }
 0x4f9   :  { %v7158_v58 = vpop.f32.mrf.mxu0  ;;  %v7467_v32 = vpop.f32.mrf.mxu1 }
 0x4fa   :  { %v7282_v33 = vadd.f32 %v7281_v25, %v7158_v58  ;;  %v7780_v58 = vsub.f32 %v12264_v16, %v7779_v5 }
 0x4fb   :  { %v7160_v23 = vpop.f32.mrf.mxu0  ;;  %v7469_v29 = vpop.f32.mrf.mxu1 }
 0x4fc   :  { %v7284_v40 = vadd.f32 %v7283_v19, %v7160_v23  ;;  %v7789_v19 = vand.u32 4294901760, %v12269_v11 }
 0x4fe   :  { %v7169_v54 = vpop.f32.mrf.mxu0 }
 0x4ff   :  { %v7476_v12 = vpop.f32.mrf.mxu1  ;;  %v7289_v24 = vadd.f32 %v7288_v15, %v7169_v54  ;;  %v7790_v54 = vsub.f32 %v12269_v11, %v7789_v19 }
 0x500   :  { %v7171_v60 = vpop.f32.mrf.mxu0 }
 0x501   :  { %v7478_v39 = vpop.f32.mrf.mxu1  ;;  %v7291_v50 = vadd.f32 %v7290_v3, %v7171_v60  ;;  %v7791_v42 = vand.u32 4294901760, %v7790_v54  ;;  %v7673_v54 = vld [vmem:[%s12744_s7 + $0x10] sm:$0xff] }
 0x504   :  { %v7377_v57 = vpop.f32.mrf.mxu0 }
 0x505   :  { %v7378_v2 = vadd.f32 %v7377_v57, %v7282_v33  ;;  %v7659_v55 = vpop.f32.mrf.mxu1 }
 0x506   :  { %v7379_v4 = vpop.f32.mrf.mxu0 }
 0x507   :  { %v7380_v63 = vadd.f32 %v7379_v4, %v7284_v40  ;;  %v7468_v49 = vadd.f32 %v7467_v32, %v7378_v2  ;;  %v7661_v38 = vpop.f32.mrf.mxu1  ;;  %v7799_v32 = vand.u32 4294901760, %v12273_v9  ;;  %v10134_v4 = vld [vmem:[%s12744_s7 + $0x60] sm:$0xff] }
 0x509   :  { %v7385_v36 = vpop.f32.mrf.mxu0  ;;  %v7470_v43 = vadd.f32 %v7469_v29, %v7380_v63  ;;  %v7800_v51 = vsub.f32 %v12273_v9, %v7799_v32  ;;  %v8307_v63 = vsel %vm97_vm1, %v10134_v4, 0 }
 0x50a   :  { %v7386_v44 = vadd.f32 %v7385_v36, %v7289_v24  ;;  %v7666_v46 = vpop.f32.mrf.mxu1 }
 0x50b   :  { %v7387_v0 = vpop.f32.mrf.mxu0 }
 0x50c   :  { %v7388_v30 = vadd.f32 %v7387_v0, %v7291_v50  ;;  %v7477_v62 = vadd.f32 %v7476_v12, %v7386_v44  ;;  %v7668_v27 = vpop.f32.mrf.mxu1  ;;  %v7781_v12 = vand.u32 4294901760, %v7780_v58  ;;  %v12305_v50 = vand.u32 4294901760, %v8307_v63 }
 0x50d   :  { %v7572_v35 = vpop.f32.mrf.mxu0 }
 0x50e   :  { %v7573_v48 = vadd.f32 %v7572_v35, %v7468_v49  ;;  %v7479_v45 = vadd.f32 %v7478_v39, %v7388_v30  ;;  %v7801_v39 = vand.u32 4294901760, %v7800_v51  ;;  %v10136_v49 = vld [vmem:[%s12744_s7 + $0x70] sm:$0xff]  ;;  %v8913_v51 = vsel %vm97_vm1, %v7673_v54, 0 }
 0x50f   :  { %v7574_v14 = vpop.f32.mrf.mxu0 }
 0x510   :  { %v12231_v56 = vadd.f32 %v7659_v55, %v7573_v48  ;;  %v7575_v26 = vadd.f32 %v7574_v14, %v7470_v43  ;;  %v10135_v55 = vld [vmem:[%s12744_s7 + $0x68] sm:$0xff]  ;;  %v12322_v43 = vsub.f32 %v8307_v63, %v12305_v50  ;;  %v8316_v14 = vsel %vm97_vm1, %v10137_v1, 0 }
 0x511   :  { %v7579_v28 = vpop.f32.mrf.mxu0  ;;  %v8310_v44 = vsel %vm97_vm1, %v10135_v55, 0 }
 0x512   :  { %v7580_v61 = vadd.f32 %v7579_v28, %v7477_v62  ;;  %7682 = vrot.lane.b32.xlu0 %v12231_v56, %s11263_s1  ;;  %v12235_v18 = vadd.f32 %v7661_v38, %v7575_v26  ;;  %v12314_v35 = vand.u32 4294901760, %v8310_v44  ;;  %v8313_v38 = vsel %vm97_vm1, %v10136_v49, 0 }
 0x513   :  { %v7581_v6 = vpop.f32.mrf.mxu0  ;;  %v12335_v28 = vand.u32 4294901760, %v8313_v38 }
 0x514   :  { %v12237_v22 = vadd.f32 %v7666_v46, %v7580_v61  ;;  %v7582_v8 = vadd.f32 %v7581_v6, %v7479_v45  ;;  %v12333_v62 = vsub.f32 %v8310_v44, %v12314_v35  ;;  %v8387_v45 = vand.u32 4294901760, %v12322_v43 }
 0x515   :  { %v12344_v46 = vand.u32 4294901760, %v8316_v14 }
 0x516   :  { %7684 = vrot.lane.b32.xlu1 %v12237_v22, %s11263_s1  ;;  %8300 = vrot.lane.b32.xlu0 %v12235_v18, %s11263_s1  ;;  %v12243_v17 = vadd.f32 %v7668_v27, %v7582_v8  ;;  %v8397_v8 = vand.u32 4294901760, %v12333_v62  ;;  %v12353_v27 = vsub.f32 %v8313_v38, %v12335_v28  ;;  %v8388_v59 = vsub.f32 %v12322_v43, %v8387_v45 }
 0x518   :  { %v8398_v52 = vsub.f32 %v12333_v62, %v8397_v8  ;;  %v8407_v21 = vand.u32 4294901760, %v12353_v27  ;;  %v8389_v10 = vand.u32 4294901760, %v8388_v59 }
 0x51a   :  { %8302 = vrot.lane.b32.xlu1 %v12243_v17, %s11263_s1 }
 0x584   :  { %v7683_v25 = vpop.permute.xlu0 %7682 }
 0x585   :  { %v12276_v15 = vand.u32 4294901760, %v7683_v25 }
 0x587   :  { %v7844_v3 = vsub.f32 %v7683_v25, %v12276_v15 }
 0x588   :  { %v7685_v23 = vpop.permute.xlu1 %7684  ;;  %v8301_v30 = vpop.permute.xlu0 %8300 }
 0x589   :  { %v12286_v29 = vand.u32 4294901760, %v7685_v23  ;;  %v7845_v57 = vand.u32 4294901760, %v7844_v3  ;;  %v12328_v26 = vand.u32 4294901760, %v8301_v30 }
 0x58b   :  { %v7837_v60 = vsub.f32 %v7685_v23, %v12286_v29  ;;  %10918 = vmatprep.subr.mxu0 %v12286_v29  ;;  %v7846_v2 = vsub.f32 %v7844_v3, %v7845_v57  ;;  %v8462_v6 = vsub.f32 %v8301_v30, %v12328_v26 }
 0x58c   :  { %10919 = vmatpush3.msra.mxu0 %v12286_v29  ;;  %v8303_v36 = vpop.permute.xlu1 %8302 }
 0x58d   :  { %10920 = vmatprep.subr.mxu0 %v12276_v15  ;;  %v7838_v33 = vand.u32 4294901760, %v7837_v60  ;;  %v7847_v0 = vand.u32 4294901760, %v7846_v2  ;;  %v12303_v53 = vand.u32 4294901760, %v8303_v36 }
 0x58e   :  { %10921 = vmatpush3.msra.mxu0 %v12276_v15 }
 0x58f   :  { %10923 = vmatmul.mubr.f32.vlgmr.msra.gmra.mxu0 %v7781_v12  ;;  %10938 = vmatprep.subr.mxu0 %v7837_v60  ;;  %v7839_v40 = vsub.f32 %v7837_v60, %v7838_v33  ;;  %v8455_v48 = vsub.f32 %v8303_v36, %v12303_v53 }
 0x590   :  { %10939 = vmatpush3.msra.mxu0 %v7837_v60  ;;  %10925 = vmatprep.mubr.f32.mxu0 %v7791_v42  ;;  %v12431_v42 = vand.u32 4294901760, %v12231_v56 }
 0x591   :  { %10940 = vmatprep.subr.mxu0 %v7844_v3  ;;  %v7840_v24 = vand.u32 4294901760, %v7839_v40  ;;  %v12337_v61 = vand.u32 4294901760, %v8455_v48 }
 0x592   :  { %10941 = vmatpush3.msra.mxu0 %v7844_v3  ;;  %v7671_v3 = vld [vmem:[%s12744_s7] sm:$0xff]  ;;  %v9062_v2 = vsub.f32 %v12231_v56, %v12431_v42 }
 0x593   :  { %10926 = vmatmul.mubr.f32.gmra.mxu0 %v7801_v39  ;;  %10928 = vmatprep.subr.mxu1 %v7840_v24  ;;  %v8457_v31 = vsub.f32 %v8455_v48, %v12337_v61 }
 0x594   :  { %10958 = vmatprep.subr.mxu0 %v7838_v33  ;;  %10929 = vmatpush3.msra.mxu1 %v7840_v24  ;;  %v9063_v44 = vand.u32 4294901760, %v9062_v2 }
 0x595   :  { %10930 = vmatprep.subr.mxu1 %v7847_v0  ;;  %10942 = vmatprep.mubr.f32.mxu0 %v12224_v47  ;;  %v12363_v47 = vsub.f32 %v8316_v14, %v12344_v46  ;;  %v8458_v20 = vand.u32 4294901760, %v8457_v31  ;;  %v10133_v31 = vld [vmem:[%s12744_s7 + $0x58] sm:$0xff] }
 0x596   :  { %10931 = vmatpush3.msra.mxu1 %v7847_v0 }
 0x597   :  { %10933 = vmatmul.mubr.f32.vlgmr.msra.gmra.mxu1 %v12258_v34  ;;  %10943 = vmatmul.mubr.f32.vlgmr.msra.gmra.mxu0 %v12264_v16  ;;  %v8417_v16 = vand.u32 4294901760, %v12363_v47 }
 0x598   :  { %10948 = vmatprep.subr.mxu1 %v12286_v29  ;;  %10959 = vmatpush3.msra.mxu0 %v7838_v33  ;;  %v12438_v33 = vand.u32 4294901760, %v8913_v51 }
 0x599   :  { %10949 = vmatpush3.msra.mxu1 %v12286_v29  ;;  %10960 = vmatprep.subr.mxu0 %v7845_v57 }
 0x59a   :  { %10950 = vmatprep.subr.mxu1 %v12276_v15  ;;  %10961 = vmatpush3.msra.mxu0 %v7845_v57  ;;  %v12456_v24 = vsub.f32 %v8913_v51, %v12438_v33 }
 0x59b   :  { %10935 = vmatprep.mubr.f32.mxu1 %v12260_v37  ;;  %10945 = vmatprep.mubr.f32.mxu0 %v12269_v11  ;;  %v8418_v11 = vsub.f32 %v12363_v47, %v8417_v16 }
 0x59c   :  { %10951 = vmatpush3.msra.mxu1 %v12276_v15  ;;  %10978 = vmatprep.subr.mxu0 %v12303_v53  ;;  %v9007_v49 = vand.u32 4294901760, %v12456_v24 }
 0x59d   :  { %10936 = vmatmul.mubr.f32.gmra.mxu1 %v12266_v41  ;;  %10946 = vmatmul.mubr.f32.gmra.mxu0 %v12273_v9  ;;  %v8419_v58 = vand.u32 4294901760, %v8418_v11 }
 0x59e   :  { %10968 = vmatprep.subr.mxu1 %v12286_v29  ;;  %10952 = vmatprep.mubr.f32.mxu1 %v7769_v13  ;;  %v8463_v13 = vand.u32 4294901760, %v8462_v6  ;;  %v9008_v38 = vsub.f32 %v12456_v24, %v9007_v49 }
 0x59f   :  { %10962 = vmatprep.mubr.f32.mxu0 %v12221_v7 }
 0x5a0   :  { %v8464_v25 = vsub.f32 %v8462_v6, %v8463_v13 }
 0x5a1   :  { %10953 = vmatmul.mubr.f32.vlgmr.msra.gmra.mxu1 %v7779_v5  ;;  %10963 = vmatmul.mubr.f32.vlgmr.msra.gmra.mxu0 %v12258_v34  ;;  %v8399_v5 = vand.u32 4294901760, %v8398_v52  ;;  %v9516_v52 = vsel %vm97_vm1, %v10133_v31, 0 }
 0x5a2   :  { %10969 = vmatpush3.msra.mxu1 %v12286_v29  ;;  %10979 = vmatpush3.msra.mxu0 %v12303_v53  ;;  %v8465_v9 = vand.u32 4294901760, %v8464_v25  ;;  %v7674_v29 = vld [vmem:[%s12744_s7 + $0x18] sm:$0xff] }
 0x5a3   :  { %10970 = vmatprep.subr.mxu1 %v12276_v15  ;;  %10980 = vmatprep.subr.mxu0 %v12328_v26  ;;  %v8916_v57 = vsel %vm97_vm1, %v7674_v29, 0 }
 0x5a4   :  { %10971 = vmatpush3.msra.mxu1 %v12276_v15  ;;  %10981 = vmatpush3.msra.mxu0 %v12328_v26  ;;  %v8408_v15 = vsub.f32 %v12353_v27, %v8407_v21  ;;  %v12447_v40 = vand.u32 4294901760, %v8916_v57 }
 0x5a5   :  { %10955 = vmatprep.mubr.f32.mxu1 %v7789_v19  ;;  %10965 = vmatprep.mubr.f32.mxu0 %v12260_v37 }
 0x5a6   :  { %10988 = vmatprep.subr.mxu1 %v8458_v20  ;;  %10998 = vmatprep.subr.mxu0 %v8455_v48  ;;  %v8409_v19 = vand.u32 4294901760, %v8408_v15  ;;  %v12466_v0 = vsub.f32 %v8916_v57, %v12447_v40 }
 0x5a7   :  { %10956 = vmatmul.mubr.f32.gmra.mxu1 %v7799_v32  ;;  %10966 = vmatmul.mubr.f32.gmra.mxu0 %v12266_v41  ;;  %v12402_v32 = vand.u32 4294901760, %v12237_v22 }
 0x5a8   :  { %10972 = vmatprep.mubr.f32.mxu1 %v12221_v7  ;;  %10982 = vmatprep.mubr.f32.mxu0 %v8389_v10  ;;  %v8907_v7 = vsel %vm97_vm1, %v7671_v3, 0 }
 0x5a9   :  { %v9055_v60 = vsub.f32 %v12237_v22, %v12402_v32 }
 0x5ab   :  { %10973 = vmatmul.mubr.f32.vlgmr.msra.gmra.mxu1 %v12258_v34  ;;  %10983 = vmatmul.mubr.f32.vlgmr.msra.gmra.mxu0 %v8399_v5  ;;  %v7672_v34 = vld [vmem:[%s12744_s7 + $0x8] sm:$0xff]  ;;  %v12442_v4 = vand.u32 4294901760, %v9055_v60  ;;  %v12548_v5 = vand.u32 4294901760, %v9516_v52 }
 0x5ac   :  { %10989 = vmatpush3.msra.mxu1 %v8458_v20  ;;  %10999 = vmatpush3.msra.mxu0 %v8455_v48  ;;  %v8910_v23 = vsel %vm97_vm1, %v7672_v34, 0 }
 0x5ad   :  { %10990 = vmatprep.subr.mxu1 %v8465_v9  ;;  %11000 = vmatprep.subr.mxu0 %v8462_v6  ;;  %v9057_v63 = vsub.f32 %v9055_v60, %v12442_v4  ;;  %v12566_v3 = vsub.f32 %v9516_v52, %v12548_v5 }
 0x5ae   :  { %10991 = vmatpush3.msra.mxu1 %v8465_v9  ;;  %11001 = vmatpush3.msra.mxu0 %v8462_v6  ;;  %v12505_v6 = vand.u32 4294901760, %v12243_v17 }
 0x5af   :  { %10975 = vmatprep.mubr.f32.mxu1 %v12260_v37  ;;  %10985 = vmatprep.mubr.f32.mxu0 %v8409_v19  ;;  %v12406_v37 = vand.u32 4294901760, %v8907_v7  ;;  %v9058_v1 = vand.u32 4294901760, %v9057_v63 }
 0x5b0   :  { %11008 = vmatprep.subr.mxu1 %v12303_v53  ;;  %11018 = vmatprep.subr.mxu0 %v12337_v61  ;;  %v9655_v59 = vsub.f32 %v12243_v17, %v12505_v6 }
 0x5b1   :  { %10976 = vmatmul.mubr.f32.gmra.mxu1 %v12266_v41  ;;  %10986 = vmatmul.mubr.f32.gmra.mxu0 %v8419_v58  ;;  %v12414_v41 = vand.u32 4294901760, %v8910_v23  ;;  %v12424_v12 = vsub.f32 %v8907_v7, %v12406_v37 }
 0x5b2   :  { %10992 = vmatprep.mubr.f32.mxu1 %v12305_v50  ;;  %11002 = vmatprep.mubr.f32.mxu0 %v12322_v43  ;;  %v9064_v43 = vsub.f32 %v9062_v2, %v9063_v44  ;;  %v9656_v10 = vand.u32 4294901760, %v9655_v59 }
 0x5b3   :  { %v12436_v22 = vsub.f32 %v8910_v23, %v12414_v41  ;;  %v8987_v39 = vand.u32 4294901760, %v12424_v12 }
 0x5b4   :  { %v9657_v9 = vsub.f32 %v9655_v59, %v9656_v10 }
 0x5b5   :  { %10993 = vmatmul.mubr.f32.vlgmr.msra.gmra.mxu1 %v12314_v35  ;;  %11003 = vmatmul.mubr.f32.vlgmr.msra.gmra.mxu0 %v12333_v62  ;;  %v8997_v36 = vand.u32 4294901760, %v12436_v22  ;;  %v8988_v55 = vsub.f32 %v12424_v12, %v8987_v39  ;;  %v9009_v62 = vand.u32 4294901760, %v9008_v38 }
 0x5b6   :  { %11009 = vmatpush3.msra.mxu1 %v12303_v53  ;;  %11019 = vmatpush3.msra.mxu0 %v12337_v61  ;;  %v10130_v61 = vld [vmem:[%s12744_s7 + $0x40] sm:$0xff]  ;;  %v9658_v34 = vand.u32 4294901760, %v9657_v9 }
 0x5b7   :  { %11010 = vmatprep.subr.mxu1 %v12328_v26  ;;  %11020 = vmatprep.subr.mxu0 %v8463_v13  ;;  %v8998_v56 = vsub.f32 %v12436_v22, %v8997_v36  ;;  %v8989_v30 = vand.u32 4294901760, %v8988_v55 }
 0x5b8   :  { %11011 = vmatpush3.msra.mxu1 %v12328_v26  ;;  %11021 = vmatpush3.msra.mxu0 %v8463_v13 }
 0x5b9   :  { %10995 = vmatprep.mubr.f32.mxu1 %v12335_v28  ;;  %11005 = vmatprep.mubr.f32.mxu0 %v12353_v27  ;;  %v8999_v48 = vand.u32 4294901760, %v8998_v56  ;;  %v10132_v27 = vld [vmem:[%s12744_s7 + $0x50] sm:$0xff] }
 0x5ba   :  { %11028 = vmatprep.subr.mxu1 %v12303_v53  ;;  %11038 = vmatprep.subr.mxu0 %v12402_v32  ;;  %v9513_v13 = vsel %vm97_vm1, %v10132_v27, 0 }
 0x5bb   :  { %10996 = vmatmul.mubr.f32.gmra.mxu1 %v12344_v46  ;;  %11006 = vmatmul.mubr.f32.gmra.mxu0 %v12363_v47  ;;  %v12541_v20 = vand.u32 4294901760, %v9513_v13 }
 0x5bc   :  { %11012 = vmatprep.mubr.f32.mxu1 %v8387_v45  ;;  %11022 = vmatprep.mubr.f32.mxu0 %v12305_v50 }
 0x5bd   :  { %v12557_v11 = vsub.f32 %v9513_v13, %v12541_v20 }
 0x5bf   :  { %11013 = vmatmul.mubr.f32.vlgmr.msra.gmra.mxu1 %v8397_v8  ;;  %11023 = vmatmul.mubr.f32.vlgmr.msra.gmra.mxu0 %v12314_v35  ;;  %v9607_v7 = vand.u32 4294901760, %v12557_v11 }
 0x5c0   :  { %11029 = vmatpush3.msra.mxu1 %v12303_v53  ;;  %11039 = vmatpush3.msra.mxu0 %v12402_v32  ;;  %v9017_v53 = vand.u32 4294901760, %v12466_v0 }
 0x5c1   :  { %11030 = vmatprep.subr.mxu1 %v12328_v26  ;;  %11040 = vmatprep.subr.mxu0 %v12431_v42 }
 0x5c2   :  { %11031 = vmatpush3.msra.mxu1 %v12328_v26  ;;  %11041 = vmatpush3.msra.mxu0 %v12431_v42  ;;  %v9018_v14 = vsub.f32 %v12466_v0, %v9017_v53  ;;  %v9065_v26 = vand.u32 4294901760, %v9064_v43 }
 0x5c3   :  { %11015 = vmatprep.mubr.f32.mxu1 %v8407_v21  ;;  %11025 = vmatprep.mubr.f32.mxu0 %v12335_v28  ;;  %v12534_v21 = vand.u32 4294901760, %v12235_v18 }
 0x5c4   :  { %11048 = vmatprep.subr.mxu1 %v9058_v1  ;;  %11058 = vmatprep.subr.mxu0 %v9055_v60  ;;  %v9019_v45 = vand.u32 4294901760, %v9018_v14 }
 0x5c5   :  { %11016 = vmatmul.mubr.f32.gmra.mxu1 %v8417_v16  ;;  %11026 = vmatmul.mubr.f32.gmra.mxu0 %v12344_v46  ;;  %v9662_v25 = vsub.f32 %v12235_v18, %v12534_v21 }
 0x5c6   :  { %11032 = vmatprep.mubr.f32.mxu1 %v12305_v50  ;;  %11042 = vmatprep.mubr.f32.mxu0 %v8989_v30  ;;  %v9507_v50 = vsel %vm97_vm1, %v10130_v61, 0 }
 0x5c7   :  { %v9663_v58 = vand.u32 4294901760, %v9662_v25 }
 0x5c9   :  { %11033 = vmatmul.mubr.f32.vlgmr.msra.gmra.mxu1 %v12314_v35  ;;  %11043 = vmatmul.mubr.f32.vlgmr.msra.gmra.mxu0 %v8999_v48  ;;  %v10131_v35 = vld [vmem:[%s12744_s7 + $0x48] sm:$0xff]  ;;  %v9664_v29 = vsub.f32 %v9662_v25, %v9663_v58 }
 0x5ca   :  { %11049 = vmatpush3.msra.mxu1 %v9058_v1  ;;  %11059 = vmatpush3.msra.mxu0 %v9055_v60  ;;  %v9510_v8 = vsel %vm97_vm1, %v10131_v35, 0  ;;  %v9608_v60 = vsub.f32 %v12557_v11, %v9607_v7 }
 0x5cb   :  { %11050 = vmatprep.subr.mxu1 %v9065_v26  ;;  %11060 = vmatprep.subr.mxu0 %v9062_v2  ;;  %v9665_v51 = vand.u32 4294901760, %v9664_v29 }
 0x5cc   :  { %11051 = vmatpush3.msra.mxu1 %v9065_v26  ;;  %11061 = vmatpush3.msra.mxu0 %v9062_v2  ;;  %v9609_v57 = vand.u32 4294901760, %v9608_v60 }
 0x5cd   :  { %11035 = vmatprep.mubr.f32.mxu1 %v12335_v28  ;;  %11045 = vmatprep.mubr.f32.mxu0 %v9009_v62  ;;  %v12509_v28 = vand.u32 4294901760, %v9507_v50 }
 0x5ce   :  { %11068 = vmatprep.subr.mxu1 %v12402_v32  ;;  %11078 = vmatprep.subr.mxu0 %v12442_v4 }
 0x5cf   :  { %11036 = vmatmul.mubr.f32.gmra.mxu1 %v12344_v46  ;;  %11046 = vmatmul.mubr.f32.gmra.mxu0 %v9019_v45  ;;  %v12517_v46 = vand.u32 4294901760, %v9510_v8  ;;  %v12527_v47 = vsub.f32 %v9507_v50, %v12509_v28 }
 0x5d0   :  { %11052 = vmatprep.mubr.f32.mxu1 %v12406_v37  ;;  %11062 = vmatprep.mubr.f32.mxu0 %v12424_v12 }
 0x5d1   :  { %v12539_v17 = vsub.f32 %v9510_v8, %v12517_v46  ;;  %v9587_v16 = vand.u32 4294901760, %v12527_v47 }
 0x5d3   :  { %11053 = vmatmul.mubr.f32.vlgmr.msra.gmra.mxu1 %v12414_v41  ;;  %11063 = vmatmul.mubr.f32.vlgmr.msra.gmra.mxu0 %v12436_v22  ;;  %v9597_v15 = vand.u32 4294901760, %v12539_v17  ;;  %v9588_v19 = vsub.f32 %v12527_v47, %v9587_v16 }
 0x5d4   :  { %11069 = vmatpush3.msra.mxu1 %v12402_v32  ;;  %11079 = vmatpush3.msra.mxu0 %v12442_v4 }
 0x5d5   :  { %11070 = vmatprep.subr.mxu1 %v12431_v42  ;;  %11080 = vmatprep.subr.mxu0 %v9063_v44  ;;  %v9598_v18 = vsub.f32 %v12539_v17, %v9597_v15  ;;  %v9589_v23 = vand.u32 4294901760, %v9588_v19 }
 0x5d6   :  { %11071 = vmatpush3.msra.mxu1 %v12431_v42  ;;  %11081 = vmatpush3.msra.mxu0 %v9063_v44 }
 0x5d7   :  { %11055 = vmatprep.mubr.f32.mxu1 %v12438_v33  ;;  %11065 = vmatprep.mubr.f32.mxu0 %v12456_v24  ;;  %v9599_v54 = vand.u32 4294901760, %v9598_v18 }
 0x5d8   :  { %11088 = vmatprep.subr.mxu1 %v12402_v32  ;;  %11098 = vmatprep.subr.mxu0 %v12505_v6 }
 0x5d9   :  { %11056 = vmatmul.mubr.f32.gmra.mxu1 %v12447_v40  ;;  %11066 = vmatmul.mubr.f32.gmra.mxu0 %v12466_v0 }
 0x5da   :  { %11072 = vmatprep.mubr.f32.mxu1 %v8987_v39  ;;  %11082 = vmatprep.mubr.f32.mxu0 %v12406_v37 }
 0x5dd   :  { %11073 = vmatmul.mubr.f32.vlgmr.msra.gmra.mxu1 %v8997_v36  ;;  %11083 = vmatmul.mubr.f32.vlgmr.msra.gmra.mxu0 %v12414_v41 }
 0x5de   :  { %11089 = vmatpush3.msra.mxu1 %v12402_v32  ;;  %11099 = vmatpush3.msra.mxu0 %v12505_v6  ;;  %v9617_v32 = vand.u32 4294901760, %v12566_v3 }
 0x5df   :  { %11090 = vmatprep.subr.mxu1 %v12431_v42  ;;  %11100 = vmatprep.subr.mxu0 %v12534_v21 }
 0x5e0   :  { %11091 = vmatpush3.msra.mxu1 %v12431_v42  ;;  %11101 = vmatpush3.msra.mxu0 %v12534_v21  ;;  %v9618_v12 = vsub.f32 %v12566_v3, %v9617_v32 }
 0x5e1   :  { %11075 = vmatprep.mubr.f32.mxu1 %v9007_v49  ;;  %11085 = vmatprep.mubr.f32.mxu0 %v12438_v33 }
 0x5e2   :  { %11108 = vmatprep.subr.mxu1 %v9658_v34  ;;  %11118 = vmatprep.subr.mxu0 %v9655_v59  ;;  %v9619_v42 = vand.u32 4294901760, %v9618_v12 }
 0x5e3   :  { %11076 = vmatmul.mubr.f32.gmra.mxu1 %v9017_v53  ;;  %11086 = vmatmul.mubr.f32.gmra.mxu0 %v12447_v40 }
 0x5e4   :  { %11092 = vmatprep.mubr.f32.mxu1 %v12406_v37  ;;  %11102 = vmatprep.mubr.f32.mxu0 %v9589_v23 }
 0x5e7   :  { %11093 = vmatmul.mubr.f32.vlgmr.msra.gmra.mxu1 %v12414_v41  ;;  %11103 = vmatmul.mubr.f32.vlgmr.msra.gmra.mxu0 %v9599_v54 }
 0x5e8   :  { %11109 = vmatpush3.msra.mxu1 %v9658_v34  ;;  %11119 = vmatpush3.msra.mxu0 %v9655_v59 }
 0x5e9   :  { %11110 = vmatprep.subr.mxu1 %v9665_v51  ;;  %11120 = vmatprep.subr.mxu0 %v9662_v25 }
 0x5ea   :  { %11111 = vmatpush3.msra.mxu1 %v9665_v51  ;;  %11121 = vmatpush3.msra.mxu0 %v9662_v25 }
 0x5eb   :  { %11095 = vmatprep.mubr.f32.mxu1 %v12438_v33  ;;  %11105 = vmatprep.mubr.f32.mxu0 %v9609_v57 }
 0x5ec   :  { %11128 = vmatprep.subr.mxu1 %v12505_v6  ;;  %11138 = vmatprep.subr.mxu0 %v9656_v10 }
 0x5ed   :  { %11096 = vmatmul.mubr.f32.gmra.mxu1 %v12447_v40  ;;  %11106 = vmatmul.mubr.f32.gmra.mxu0 %v9619_v42 }
 0x5ee   :  { %11112 = vmatprep.mubr.f32.mxu1 %v12509_v28  ;;  %11122 = vmatprep.mubr.f32.mxu0 %v12527_v47 }
 0x5f1   :  { %11113 = vmatmul.mubr.f32.vlgmr.msra.gmra.mxu1 %v12517_v46  ;;  %11123 = vmatmul.mubr.f32.vlgmr.msra.gmra.mxu0 %v12539_v17 }
 0x5f2   :  { %11129 = vmatpush3.msra.mxu1 %v12505_v6  ;;  %11139 = vmatpush3.msra.mxu0 %v9656_v10 }
 0x5f3   :  { %11130 = vmatprep.subr.mxu1 %v12534_v21  ;;  %11140 = vmatprep.subr.mxu0 %v9663_v58 }
 0x5f4   :  { %11131 = vmatpush3.msra.mxu1 %v12534_v21  ;;  %11141 = vmatpush3.msra.mxu0 %v9663_v58 }
 0x5f5   :  { %11115 = vmatprep.mubr.f32.mxu1 %v12541_v20  ;;  %11148 = vmatprep.subr.mxu1 %v12505_v6 }
 0x5f6   :  { %11116 = vmatmul.mubr.f32.gmra.mxu1 %v12548_v5  ;;  %11125 = vmatprep.mubr.f32.mxu0 %v12557_v11 }
 0x5f7   :  { %11126 = vmatmul.mubr.f32.gmra.mxu0 %v12566_v3  ;;  %11132 = vmatprep.mubr.f32.mxu1 %v9587_v16 }
 0x5f8   :  { %11142 = vmatprep.mubr.f32.mxu0 %v12509_v28 }
 0x5fa   :  { %11133 = vmatmul.mubr.f32.vlgmr.msra.gmra.mxu1 %v9597_v15 }
 0x5fb   :  { %11149 = vmatpush3.msra.mxu1 %v12505_v6  ;;  %11143 = vmatmul.mubr.f32.vlgmr.msra.gmra.mxu0 %v12517_v46 }
 0x5fc   :  { %11150 = vmatprep.subr.mxu1 %v12534_v21  ;;  %11135 = vmatprep.mubr.f32.mxu1 %v9607_v7 }
 0x5fd   :  { %11151 = vmatpush3.msra.mxu1 %v12534_v21  ;;  %11145 = vmatprep.mubr.f32.mxu0 %v12541_v20 }
 0x5fe   :  { %11136 = vmatmul.mubr.f32.gmra.mxu1 %v9617_v32 }
 0x5ff   :  { %11146 = vmatmul.mubr.f32.gmra.mxu0 %v12548_v5  ;;  %11152 = vmatprep.mubr.f32.mxu1 %v12509_v28 }
 0x602   :  { %11153 = vmatmul.mubr.f32.vlgmr.msra.gmra.mxu1 %v12517_v46 }
 0x603   :  { %11155 = vmatprep.mubr.f32.mxu1 %v12541_v20 }
 0x606   :  { %11156 = vmatmul.mubr.f32.gmra.mxu1 %v12548_v5 }
 0x64f   :  { %v10924_v37 = vpop.f32.mrf.mxu0 }
 0x651   :  { %v7773_v41 = vpop.f32.mrf.mxu0 }
 0x653   :  { %v10927_v22 = vpop.f32.mrf.mxu0 }
 0x655   :  { %v7793_v33 = vpop.f32.mrf.mxu0 }
 0x657   :  { %v10934_v4 = vpop.f32.mrf.mxu1  ;;  %v10944_v39 = vpop.f32.mrf.mxu0 }
 0x658   :  { %v7891_v40 = vadd.f32 %v10934_v4, %v10924_v37 }
 0x659   :  { %v7884_v2 = vpop.f32.mrf.mxu1  ;;  %v7978_v36 = vpop.f32.mrf.mxu0 }
 0x65a   :  { %v7986_v24 = vadd.f32 %v10944_v39, %v7891_v40  ;;  %v7885_v63 = vadd.f32 %v7884_v2, %v7773_v41 }
 0x65c   :  { %v7979_v55 = vadd.f32 %v7978_v36, %v7885_v63 }
 0x65d   :  { %v10937_v0 = vpop.f32.mrf.mxu1  ;;  %v10947_v56 = vpop.f32.mrf.mxu0 }
 0x65e   :  { %v7903_v44 = vadd.f32 %v10937_v0, %v10927_v22 }
 0x65f   :  { %v7896_v49 = vpop.f32.mrf.mxu1  ;;  %v7992_v1 = vpop.f32.mrf.mxu0 }
 0x660   :  { %v8000_v30 = vadd.f32 %v10947_v56, %v7903_v44  ;;  %v7897_v53 = vadd.f32 %v7896_v49, %v7793_v33 }
 0x661   :  { %v10954_v48 = vpop.f32.mrf.mxu1  ;;  %v12619_v43 = vpop.f32.mrf.mxu0 }
 0x662   :  { %v7993_v38 = vadd.f32 %v7992_v1, %v7897_v53  ;;  %v12621_v14 = vadd.f32 %v10954_v48, %v7986_v24 }
 0x663   :  { %v8074_v26 = vpop.f32.mrf.mxu1  ;;  %v12623_v62 = vpop.f32.mrf.mxu0 }
 0x664   :  { %v12625_v61 = vadd.f32 %v8074_v26, %v7979_v55 }
 0x667   :  { %v10957_v45 = vpop.f32.mrf.mxu1  ;;  %v12627_v50 = vpop.f32.mrf.mxu0 }
 0x668   :  { %v12629_v35 = vadd.f32 %v10957_v45, %v8000_v30 }
 0x669   :  { %v8090_v6 = vpop.f32.mrf.mxu1  ;;  %v12631_v28 = vpop.f32.mrf.mxu0 }
 0x66a   :  { %v12633_v8 = vadd.f32 %v8090_v6, %v7993_v38 }
 0x66b   :  { %v12635_v27 = vpop.f32.mrf.mxu1  ;;  %v10984_v46 = vpop.f32.mrf.mxu0 }
 0x66d   :  { %v12637_v31 = vpop.f32.mrf.mxu1  ;;  %v8391_v59 = vpop.f32.mrf.mxu0 }
 0x671   :  { %v12639_v47 = vpop.f32.mrf.mxu1  ;;  %v10987_v13 = vpop.f32.mrf.mxu0 }
 0x673   :  { %v12641_v52 = vpop.f32.mrf.mxu1  ;;  %v8411_v21 = vpop.f32.mrf.mxu0 }
 0x675   :  { %v10994_v17 = vpop.f32.mrf.mxu1  ;;  %v11004_v20 = vpop.f32.mrf.mxu0 }
 0x676   :  { %v8509_v1 = vadd.f32 %v10994_v17, %v10984_v46 }
 0x677   :  { %v8502_v10 = vpop.f32.mrf.mxu1  ;;  %v8596_v16 = vpop.f32.mrf.mxu0 }
 0x678   :  { %v8503_v48 = vadd.f32 %v8502_v10, %v8391_v59  ;;  %v8604_v45 = vadd.f32 %v11004_v20, %v8509_v1  ;;  %v8182_v59 = vadd.f32 %v12619_v43, %v12621_v14 }
 0x67b   :  { %v10997_v5 = vpop.f32.mrf.mxu1  ;;  %v11007_v25 = vpop.f32.mrf.mxu0 }
 0x67c   :  { %v8521_v6 = vadd.f32 %v10997_v5, %v10987_v13  ;;  %v8176_v13 = vadd.f32 %v12623_v62, %v12625_v61 }
 0x67d   :  { %v8514_v15 = vpop.f32.mrf.mxu1  ;;  %v8610_v11 = vpop.f32.mrf.mxu0 }
 0x67f   :  { %v11014_v9 = vpop.f32.mrf.mxu1  ;;  %v11024_v19 = vpop.f32.mrf.mxu0 }
 0x681   :  { %v8692_v3 = vpop.f32.mrf.mxu1  ;;  %v8793_v18 = vpop.f32.mrf.mxu0 }
 0x685   :  { %v11017_v58 = vpop.f32.mrf.mxu1  ;;  %v11027_v7 = vpop.f32.mrf.mxu0 }
 0x687   :  { %v8708_v34 = vpop.f32.mrf.mxu1  ;;  %v12643_v23 = vpop.f32.mrf.mxu0 }
 0x689   :  { %v11034_v32 = vpop.f32.mrf.mxu1  ;;  %v11044_v54 = vpop.f32.mrf.mxu0 }
 0x68b   :  { %v8884_v29 = vpop.f32.mrf.mxu1  ;;  %v8991_v60 = vpop.f32.mrf.mxu0 }
 0x68f   :  { %v11037_v12 = vpop.f32.mrf.mxu1  ;;  %v12645_v51 = vpop.f32.mrf.mxu0 }
 0x691   :  { %v12647_v57 = vpop.f32.mrf.mxu1  ;;  %v12649_v42 = vpop.f32.mrf.mxu0 }
 0x693   :  { %v11054_v37 = vpop.f32.mrf.mxu1  ;;  %v12651_v41 = vpop.f32.mrf.mxu0 }
 0x695   :  { %v9102_v22 = vpop.f32.mrf.mxu1  ;;  %v12653_v33 = vpop.f32.mrf.mxu0 }
 0x699   :  { %v12655_v4 = vpop.f32.mrf.mxu1  ;;  %v12657_v39 = vpop.f32.mrf.mxu0 }
 0x69a   :  { %12865 = vst [vmem:[#allocation37_spill] sm:$0xff] %v12657_v39 }
 0x69b   :  { %v12659_v40 = vpop.f32.mrf.mxu1  ;;  %v12661_v2 = vpop.f32.mrf.mxu0 }
 0x69c   :  { %12866 = vst [vmem:[#allocation39_spill] sm:$0xff] %v12661_v2  ;;  %v8701_v2 = vadd.f32 %v11014_v9, %v8604_v45 }
 0x69d   :  { %v12663_v36 = vpop.f32.mrf.mxu1  ;;  %v12665_v24 = vpop.f32.mrf.mxu0 }
 0x69e   :  { %12867 = vst [vmem:[#allocation16_spill] sm:$0xff] %v12665_v24  ;;  %v8515_v24 = vadd.f32 %v8514_v15, %v8411_v21  ;;  %v8800_v10 = vadd.f32 %v11024_v19, %v8701_v2  ;;  %v8188_v2 = vadd.f32 %v12631_v28, %v12633_v8 }
 0x69f   :  { %v12667_v63 = vpop.f32.mrf.mxu1  ;;  %v12669_v55 = vpop.f32.mrf.mxu0 }
 0x6a0   :  { %12868 = vst [vmem:[#allocation38_spill] sm:$0xff] %v12667_v63  ;;  %12869 = vst [vmem:[#allocation43_spill] sm:$0xff] %v12669_v55  ;;  %v8597_v55 = vadd.f32 %v8596_v16, %v8503_v48  ;;  %v8618_v63 = vadd.f32 %v11007_v25, %v8521_v6  ;;  %v8611_v17 = vadd.f32 %v8610_v11, %v8515_v24 }
 0x6a1   :  { %v8273_v16 = vadd.f32 %v12635_v27, %v8182_v59  ;;  %v8891_v25 = vadd.f32 %v11034_v32, %v8800_v10  ;;  %v8194_v11 = vadd.f32 %v12627_v50, %v12629_v35  ;;  %v8279_v35 = vadd.f32 %v12641_v52, %v8188_v2 }
 0x6a2   :  { %v8709_v21 = vadd.f32 %v8708_v34, %v8611_v17 }
 0x6a3   :  { %v12671_v0 = vpop.f32.mrf.mxu1  ;;  %v12673_v56 = vpop.f32.mrf.mxu0  ;;  %v9002_v14 = vadd.f32 %v11044_v54, %v8273_v16  ;;  %v8285_v62 = vadd.f32 %v12639_v47, %v8194_v11  ;;  %v12877_v17 = vld [vmem:[#allocation39_spill] sm:$0xff] }
 0x6a4   :  { %12870 = vst [vmem:[#allocation12_spill] sm:$0xff] %v12671_v0  ;;  %12871 = vst [vmem:[#allocation40_spill] sm:$0xff] %v12673_v56  ;;  %v8806_v61 = vadd.f32 %v12643_v23, %v8709_v21  ;;  %v9012_v23 = vadd.f32 %v12649_v42, %v8279_v35 }
 0x6a5   :  { %v12675_v44 = vpop.f32.mrf.mxu1  ;;  %v12677_v49 = vpop.f32.mrf.mxu0  ;;  %v9109_v32 = vadd.f32 %v11054_v37, %v9002_v14 }
 0x6a6   :  { %12872 = vst [vmem:[#allocation18_spill] sm:$0xff] %v12675_v44  ;;  %12873 = vst [vmem:[#allocation41_spill] sm:$0xff] %v12677_v49  ;;  %v8693_v44 = vadd.f32 %v8692_v3, %v8597_v55  ;;  %v8717_v49 = vadd.f32 %v11017_v58, %v8618_v63  ;;  %v8267_v3 = vadd.f32 %v12637_v31, %v8176_v13  ;;  %v12879_v13 = vld [vmem:[#allocation16_spill] sm:$0xff] }
 0x6a7   :  { %v12679_v30 = vpop.f32.mrf.mxu1  ;;  %v11104_v53 = vpop.f32.mrf.mxu0  ;;  %v9022_v31 = vadd.f32 %v12645_v51, %v8285_v62  ;;  %v9204_v37 = vadd.f32 %v12651_v41, %v9109_v32 }
 0x6a8   :  { %v8794_v5 = vadd.f32 %v8793_v18, %v8693_v44  ;;  %v8812_v43 = vadd.f32 %v11027_v7, %v8717_v49  ;;  %v9602_v58 = vadd.f32 %v11104_v53, %v8891_v25  ;;  %v8992_v27 = vadd.f32 %v8991_v60, %v8267_v3  ;;  %v12880_v25 = vld [vmem:[#allocation43_spill] sm:$0xff] }
 0x6a9   :  { %v12681_v38 = vpop.f32.mrf.mxu1  ;;  %v9591_v26 = vpop.f32.mrf.mxu0  ;;  %v9121_v60 = vadd.f32 %v12655_v4, %v9022_v31 }
 0x6aa   :  { %12874 = vst [vmem:[#allocation42_spill] sm:$0xff] %v12681_v38  ;;  %v8885_v19 = vadd.f32 %v8884_v29, %v8794_v5  ;;  %v8903_v34 = vadd.f32 %v11037_v12, %v8812_v43  ;;  %v9103_v7 = vadd.f32 %v9102_v22, %v8992_v27  ;;  %v8897_v29 = vadd.f32 %v12647_v57, %v8806_v61  ;;  %v7061_v27 = vld [vmem:[#allocation7 + $0x8] sm:$0xff] }
 0x6ab   :  { %v9115_v22 = vadd.f32 %v12659_v40, %v9012_v23  ;;  %v9301_v57 = vadd.f32 %v12663_v36, %v9204_v37  ;;  %v12878_v10 = vld [vmem:[#allocation12_spill] sm:$0xff]  ;;  %v7063_v23 = vld [vmem:[#allocation7 + $0x18] sm:$0xff] }
 0x6ac   :  { %v9592_v24 = vadd.f32 %v9591_v26, %v8885_v19  ;;  %v9197_v51 = vadd.f32 %v12653_v33, %v9103_v7  ;;  %v12876_v26 = vld [vmem:[#allocation38_spill] sm:$0xff]  ;;  %v12882_v2 = vld [vmem:[#allocation40_spill] sm:$0xff] }
 0x6ad   :  { %v12683_v0 = vpop.f32.mrf.mxu1  ;;  %v11107_v56 = vpop.f32.mrf.mxu0  ;;  %v9211_v59 = vadd.f32 %v12877_v17, %v9115_v22  ;;  %v9400_v21 = vadd.f32 %v12879_v13, %v9301_v57  ;;  %v12884_v35 = vld [vmem:[#allocation41_spill] sm:$0xff] }
 0x6ae   :  { %v9622_v28 = vadd.f32 %v11107_v56, %v8903_v34  ;;  %v9293_v45 = vadd.f32 %v12876_v26, %v9197_v51 }
 0x6af   :  { %v12685_v39 = vpop.f32.mrf.mxu1  ;;  %v9611_v46 = vpop.f32.mrf.mxu0  ;;  %v9491_v43 = vadd.f32 %v12679_v30, %v9400_v21 }
 0x6b0   :  { %v9612_v55 = vadd.f32 %v9611_v46, %v8897_v29 }
 0x6b1   :  { %v11114_v38 = vpop.f32.mrf.mxu1  ;;  %v11124_v20 = vpop.f32.mrf.mxu0  ;;  %v12883_v34 = vld [vmem:[#allocation42_spill] sm:$0xff] }
 0x6b2   :  { %v9709_v63 = vadd.f32 %v11114_v38, %v9602_v58  ;;  %v12875_v38 = vld [vmem:[#allocation37_spill] sm:$0xff] }
 0x6b3   :  { %v9702_v15 = vpop.f32.mrf.mxu1  ;;  %v9796_v9 = vpop.f32.mrf.mxu0  ;;  %v9218_v4 = vadd.f32 %v12875_v38, %v9121_v60 }
 0x6b4   :  { %v9703_v8 = vadd.f32 %v9702_v15, %v9592_v24  ;;  %v9804_v44 = vadd.f32 %v11124_v20, %v9709_v63  ;;  %v9394_v15 = vadd.f32 %v12880_v25, %v9293_v45 }
 0x6b5   :  { %v9317_v33 = vadd.f32 %v12878_v10, %v9218_v4 }
 0x6b6   :  { %v11117_v18 = vpop.f32.mrf.mxu1  ;;  %v9797_v56 = vadd.f32 %v9796_v9, %v9703_v8  ;;  %v12881_v9 = vld [vmem:[#allocation18_spill] sm:$0xff]  ;;  %v9485_v32 = vadd.f32 %v12883_v34, %v9394_v15 }
 0x6b7   :  { %v11127_v50 = vpop.f32.mrf.mxu0  ;;  %v9721_v49 = vadd.f32 %v11117_v18, %v9622_v28  ;;  %v9309_v11 = vadd.f32 %v12881_v9, %v9211_v59  ;;  %v9412_v62 = vadd.f32 %v12882_v2, %v9317_v33 }
 0x6b8   :  { %v9714_v54 = vpop.f32.mrf.mxu1 }
 0x6b9   :  { %v9810_v47 = vpop.f32.mrf.mxu0  ;;  %v9715_v53 = vadd.f32 %v9714_v54, %v9612_v55  ;;  %v9818_v6 = vadd.f32 %v11127_v50, %v9721_v49  ;;  %v9406_v31 = vadd.f32 %v12884_v35, %v9309_v11  ;;  %v9503_v7 = vadd.f32 %v12683_v0, %v9412_v62  ;;  %v7060_v54 = vld [vmem:[#allocation7] sm:$0xff]  ;;  %v7062_v0 = vld [vmem:[#allocation7 + $0x10] sm:$0xff] }
 0x6ba   :  { %v11134_v12 = vpop.f32.mrf.mxu1 }
 0x6bb   :  { %v11144_v52 = vpop.f32.mrf.mxu0  ;;  %v9901_v48 = vadd.f32 %v11134_v12, %v9804_v44  ;;  %v9811_v36 = vadd.f32 %v9810_v47, %v9715_v53  ;;  %v9497_v12 = vadd.f32 %v12685_v39, %v9406_v31 }
 0x6bc   :  { %v9892_v1 = vpop.f32.mrf.mxu1 }
 0x6bd   :  { %v9993_v42 = vpop.f32.mrf.mxu0  ;;  %v9893_v46 = vadd.f32 %v9892_v1, %v9797_v56  ;;  %v10000_v16 = vadd.f32 %v11144_v52, %v9901_v48 }
 0x6be   :  { %v11137_v41 = vpop.f32.mrf.mxu1 }
 0x6bf   :  { %v11147_v40 = vpop.f32.mrf.mxu0  ;;  %v9917_v5 = vadd.f32 %v11137_v41, %v9818_v6  ;;  %v9994_v14 = vadd.f32 %v9993_v42, %v9893_v46 }
 0x6c0   :  { %v9908_v20 = vpop.f32.mrf.mxu1 }
 0x6c1   :  { %v9909_v19 = vadd.f32 %v9908_v20, %v9811_v36  ;;  %v10005_v61 = vpop.f32.mrf.mxu0  ;;  %v10012_v24 = vadd.f32 %v11147_v40, %v9917_v5 }
 0x6c2   :  { %v11154_v3 = vpop.f32.mrf.mxu1 }
 0x6c3   :  { %v10091_v58 = vadd.f32 %v11154_v3, %v10000_v16  ;;  %v10006_v29 = vadd.f32 %v10005_v61, %v9909_v19 }
 0x6c4   :  { %v10084_v18 = vpop.f32.mrf.mxu1 }
 0x6c5   :  { %v10107_v63 = vadd.f32 %v10091_v58, %v9491_v43  ;;  %v10085_v50 = vadd.f32 %v10084_v18, %v9994_v14 }
 0x6c6   :  { %v11157_v30 = vpop.f32.mrf.mxu1 }
 0x6c7   :  { %v10111_v28 = vadd.f32 %v10107_v63, %v7061_v27  ;;  %v10106_v8 = vadd.f32 %v10085_v50, %v9485_v32  ;;  %v10103_v47 = vadd.f32 %v11157_v30, %v10012_v24 }
 0x6c8   :  { %v10096_v60 = vpop.f32.mrf.mxu1 }
 0x6c9   :  { %10116 = vst.msk [vmem:[%s12747_s10 + $0x8] sm:$0xff] %vm10114_vm6, %v10111_v28  ;;  %v10110_v37 = vadd.f32 %v10106_v8, %v7060_v54  ;;  %v10109_v55 = vadd.f32 %v10103_v47, %v9503_v7  ;;  %v10097_v44 = vadd.f32 %v10096_v60, %v10006_v29 }
 0x6cb   :  { %10115 = vst.msk [vmem:[%s12747_s10] sm:$0xff] %vm10114_vm6, %v10110_v37  ;;  %v10113_v49 = vadd.f32 %v10109_v55, %v7063_v23  ;;  %v10108_v52 = vadd.f32 %v10097_v44, %v9497_v12 }
 0x6cd   :  { %10118 = vst.msk [vmem:[%s12747_s10 + $0x18] sm:$0xff] %vm10114_vm6, %v10113_v49  ;;  %v10112_v39 = vadd.f32 %v10108_v52, %v7062_v0 }
 0x6cf   :  { %10117 = vst.msk [vmem:[%s12747_s10 + $0x10] sm:$0xff] %vm10114_vm6, %v10112_v39 }
 0x6d0   :  { %10123 = vsyncpa [#allocation3], 1 }
 0x6d1   :  { %10124 = vsyncpa [#allocation5], 1 }
 0x6d2   :  { %10125 = vsyncpa [#allocation8], 1 }

</bundles_post_ra>
